<compile_context>
chip_gen: v7x
topology: tpu7x:2x2x1
jax: 0.10.0
libtpu: 0.0.40
codegen_flags: <defaults>
</compile_context>

<pallas_src>
import numpy as np

import jax
import jax.numpy as jnp
from jax.experimental import pallas as pl
from jax.experimental.pallas import tpu as pltpu

SELU_ALPHA = 1.6732632423543772848170429916717
SELU_SCALE = 1.0507009873554804934193349852946


def _selu(x):
    neg = SELU_ALPHA * (jnp.exp(jnp.minimum(x, 0.0)) - 1.0)
    return SELU_SCALE * jnp.where(x > 0, x, neg)


# ---------------------------------------------------------------------------
# One-time parameter preparation (hoisted out of the forward pass)
# ---------------------------------------------------------------------------
def _conv_taps(h_in, w_in, h_out, w_out, k, stride, pad):
    """Tap-scatter matrices for Conv2d: (k*k, h_in*w_in, h_out*w_out)."""
    s = np.zeros((k * k, h_in * w_in, h_out * w_out), np.float32)
    for ky in range(k):
        for kx in range(k):
            t = ky * k + kx
            for oy in range(h_out):
                iy = oy * stride - pad + ky
                if not (0 <= iy < h_in):
                    continue
                for ox in range(w_out):
                    ix = ox * stride - pad + kx
                    if not (0 <= ix < w_in):
                        continue
                    s[t, iy * w_in + ix, oy * w_out + ox] = 1.0
    return s


def _deconv_taps(h_in, w_in, h_out, w_out, k, stride, pad):
    """Tap-scatter matrices for ConvTranspose2d: (k*k, h_in*w_in, h_out*w_out)."""
    s = np.zeros((k * k, h_in * w_in, h_out * w_out), np.float32)
    for ky in range(k):
        for kx in range(k):
            t = ky * k + kx
            for iy in range(h_in):
                oy = iy * stride - pad + ky
                if not (0 <= oy < h_out):
                    continue
                for ix in range(w_in):
                    ox = ix * stride - pad + kx
                    if not (0 <= ox < w_out):
                        continue
                    s[t, iy * w_in + ix, oy * w_out + ox] = 1.0
    return s


def prepare_params(params):
    """Fold BN, stack per-tap weights into (T*Cout, Cin), build S matrices."""
    g = lambda name: np.asarray(params[name], np.float32)

    def fold_1x1_bn(wk, bk, bn):
        w = g(wk)[:, :, 0, 0]                                  # (Cout, Cin)
        scale = g(bn + "_gamma") / np.sqrt(g(bn + "_var") + 1e-5)
        w_eff = w * scale[:, None]
        b_eff = (g(bk) - g(bn + "_mean")) * scale + g(bn + "_beta")
        return w_eff, b_eff

    w3, b3 = fold_1x1_bn("L3_w", "L3_b", "B3")                 # (48, 384)
    w2, b2 = fold_1x1_bn("L2_w", "L2_b", "B2")                 # (48, 192)
    w1, b1 = fold_1x1_bn("L1_w", "L1_b", "B1")                 # (48, 96)

    def stack_deconv(w):     # torch (Cin, Cout, K, K) -> (K*K*Cout, Cin)
        k = w.shape[2]
        return np.concatenate([w[:, :, ky, kx].T
                               for ky in range(k) for kx in range(k)], axis=0)

    def stack_conv(w):       # torch (Cout, Cin, K, K) -> (K*K*Cout, Cin)
        k = w.shape[2]
        return np.concatenate([w[:, :, ky, kx]
                               for ky in range(k) for kx in range(k)], axis=0)

    wd1 = stack_deconv(g("deconv1_w"))                         # (144, 48)
    wd2 = stack_deconv(g("deconv2_w"))                         # (400, 16)
    wc1 = stack_conv(g("convdown1_w"))                         # (144, 64)
    wc2 = stack_conv(g("convdown2_w"))                         # (72, 64)
    wc1a, wc1b = wc1[:, :16], wc1[:, 16:]                      # up1 / T3 parts
    wc2a, wc2b = wc2[:, :16], wc2[:, 16:]                      # up2 / T2 parts

    sd1 = _deconv_taps(4, 4, 8, 8, 3, 2, 1)                    # (9, 16, 64)
    sc1 = _conv_taps(8, 8, 6, 6, 3, 1, 0)                      # (9, 64, 36)
    sd2 = _deconv_taps(6, 6, 16, 16, 5, 2, 0)                  # (25, 36, 256)
    sc2 = _conv_taps(16, 16, 8, 8, 3, 2, 1)                    # (9, 256, 64)

    bf = lambda a: jnp.asarray(a, jnp.bfloat16)
    col = lambda a: jnp.asarray(np.asarray(a, np.float32).reshape(-1, 1))
    return (
        bf(w3), col(b3), bf(w2), col(b2), bf(w1), col(b1),
        bf(wd1), bf(sd1), col(g("deconv1_b")),
        bf(wc1a), bf(wc1b), bf(sc1), col(g("convdown1_b")),
        bf(wd2), bf(sd2), col(g("deconv2_b")),
        bf(wc2a), bf(wc2b), bf(sc2), col(g("convdown2_b")),
    )


# ---------------------------------------------------------------------------
# The single fused decoder kernel (one grid step == one batch element)
# ---------------------------------------------------------------------------
def _decoder_kernel(f3_ref, f2_ref, f1_ref,
                    w3_ref, b3_ref, w2_ref, b2_ref, w1_ref, b1_ref,
                    wd1_ref, sd1_ref, bd1_ref,
                    wc1a_ref, wc1b_ref, sc1_ref, bc1_ref,
                    wd2_ref, sd2_ref, bd2_ref,
                    wc2a_ref, wc2b_ref, sc2_ref, bc2_ref,
                    out_ref):
    bf16 = jnp.bfloat16
    f32 = jnp.float32

    def pointwise(w_ref, b_ref, x_ref):
        # folded 1x1 conv + BN + SELU, channels-first: (Cout,Cin)@(Cin,HW)
        y = jnp.dot(w_ref[...], x_ref[...].astype(bf16),
                    preferred_element_type=f32)
        return _selu(y + b_ref[...]).astype(bf16)

    t4 = pointwise(w3_ref, b3_ref, f3_ref)                     # (48, 16)
    t3 = pointwise(w2_ref, b2_ref, f2_ref)                     # (48, 64)
    t2 = pointwise(w1_ref, b1_ref, f1_ref)                     # (48, 256)

    def spatial(parts, s_ref, b_ref, n_taps, c_out):
        # parts: [(w_stack_ref (T*Cout, Cin_p), x (Cin_p, in_sp)), ...]
        # Z = sum_parts W_stack @ x    (concat fused across parts)
        # out = sum_t Z[t*Cout:(t+1)*Cout] @ S[t]  + b
        z = None
        for w_ref, x in parts:
            zz = jnp.dot(w_ref[...], x, preferred_element_type=f32)
            z = zz if z is None else z + zz                    # (T*Cout, in_sp) f32
        acc = None
        for t in range(n_taps):
            zt = z[t * c_out:(t + 1) * c_out].astype(bf16)     # (Cout, in_sp)
            c = jnp.dot(zt, s_ref[t], preferred_element_type=f32)
            acc = c if acc is None else acc + c                # (Cout, out_sp)
        return acc + b_ref[...]

    # deconv1: ConvTranspose2d(48,16,3,s=2,p=1,out_pad=1): 4x4 -> 8x8
    up1 = spatial([(wd1_ref, t4)], sd1_ref, bd1_ref, 9, 16).astype(bf16)

    # concat([up1, T3]) + Conv2d(64,16,3) + SELU (+ dropout=id): 8x8 -> 6x6
    s4 = _selu(spatial([(wc1a_ref, up1), (wc1b_ref, t3)],
                       sc1_ref, bc1_ref, 9, 16)).astype(bf16)

    # deconv2: ConvTranspose2d(16,16,5,s=2,p=0,out_pad=1): 6x6 -> 16x16
    up2 = spatial([(wd2_ref, s4)], sd2_ref, bd2_ref, 25, 16).astype(bf16)

    # concat([up2, T2]) (+ dropout=id) + Conv2d(64,8,3,s=2,p=1): 16x16 -> 8x8
    out = spatial([(wc2a_ref, up2), (wc2b_ref, t2)],
                  sc2_ref, bc2_ref, 9, 8)                      # (8, 64) f32

    out_ref[...] = out.astype(out_ref.dtype)


# ---------------------------------------------------------------------------
# Forward wrapper
# ---------------------------------------------------------------------------
def decoder_forward(prep, f1_nchw, f2_nchw, f3_nchw):
    B = f1_nchw.shape[0]
    # NCHW -> channels-first 2D, (B*C, H*W): metadata-only reshapes.
    f3r = f3_nchw.reshape(B * 384, 16)
    f2r = f2_nchw.reshape(B * 192, 64)
    f1r = f1_nchw.reshape(B * 96, 256)

    def batch_spec(rows, cols):
        return pl.BlockSpec((rows, cols), lambda b: (b, 0))

    def full_spec(a):
        n = a.ndim
        return pl.BlockSpec(tuple(a.shape), lambda b, _n=n: (0,) * _n)

    in_specs = [batch_spec(384, 16), batch_spec(192, 64), batch_spec(96, 256)]
    in_specs += [full_spec(a) for a in prep]

    out2d = pl.pallas_call(
        _decoder_kernel,
        out_shape=jax.ShapeDtypeStruct((B * 8, 64), jnp.float32),
        grid=(B,),
        in_specs=in_specs,
        out_specs=pl.BlockSpec((8, 64), lambda b: (b, 0)),
        compiler_params=pltpu.CompilerParams(
            dimension_semantics=("parallel",)),
    )(f3r, f2r, f1r, *prep)

    # (B*8, 64) channels-first rows -> (B, 512) == torch NCHW flatten(1).
    return out2d.reshape(B, 8 * 8 * 8)


# ---------------------------------------------------------------------------
# Parameter init (deterministic, synthetic, torch-layout shapes)
# ---------------------------------------------------------------------------
def init_params(key):
    keys = iter(jax.random.split(key, 32))
    nrm = lambda shape, s=0.1: s * jax.random.normal(next(keys), shape, jnp.float32)
    uni = lambda shape, lo, hi: jax.random.uniform(next(keys), shape, jnp.float32, lo, hi)

    p = {}
    p["L3_w"], p["L3_b"] = nrm((48, 384, 1, 1)), nrm((48,))
    p["L2_w"], p["L2_b"] = nrm((48, 192, 1, 1)), nrm((48,))
    p["L1_w"], p["L1_b"] = nrm((48, 96, 1, 1)),  nrm((48,))
    for name in ("B3", "B2", "B1"):
        p[f"{name}_gamma"] = uni((48,), 0.5, 1.5)
        p[f"{name}_beta"] = nrm((48,))
        p[f"{name}_mean"] = nrm((48,))
        p[f"{name}_var"] = uni((48,), 0.5, 1.5)
    p["deconv1_w"], p["deconv1_b"] = nrm((48, 16, 3, 3)), nrm((16,))      # (Cin,Cout,K,K)
    p["convdown1_w"], p["convdown1_b"] = nrm((16, 64, 3, 3)), nrm((16,))  # (Cout,Cin,K,K)
    p["deconv2_w"], p["deconv2_b"] = nrm((16, 16, 5, 5)), nrm((16,))
    p["convdown2_w"], p["convdown2_b"] = nrm((8, 64, 3, 3)), nrm((8,))
    return p


if __name__ == "__main__":
    key = jax.random.PRNGKey(0)
    k_par, k0, k1, k2, k3 = jax.random.split(key, 5)

    params = init_params(k_par)
    prep = prepare_params(params)          # one-time weight prep (outside jit)

    B = 2
    features = [
        jax.random.normal(k0, (B, 48, 32, 32), jnp.float32),   # features[0] (unused)
        jax.random.normal(k1, (B, 96, 16, 16), jnp.float32),   # features[1]
        jax.random.normal(k2, (B, 192, 8, 8), jnp.float32),    # features[2]
        jax.random.normal(k3, (B, 384, 4, 4), jnp.float32),    # features[3]
    ]

    fwd = jax.jit(decoder_forward)
    out = fwd(prep, features[1], features[2], features[3])
    out = jax.block_until_ready(out)

    assert out.shape == (B, 8 * 8 * 8), out.shape
    assert jnp.all(jnp.isfinite(out))
    print("KERNEL_OK")
</pallas_src>

<mosaic_0001>
module attributes {stable_mosaic.version = 11 : i64} {
  func.func @_decoder_kernel(%arg0: i32, %arg1: memref<384x16xf32, #tpu.memory_space<vmem>>, %arg2: memref<192x64xf32, #tpu.memory_space<vmem>>, %arg3: memref<96x256xf32, #tpu.memory_space<vmem>>, %arg4: memref<48x384xbf16, #tpu.memory_space<vmem>>, %arg5: memref<48x1xf32, #tpu.memory_space<vmem>>, %arg6: memref<48x192xbf16, #tpu.memory_space<vmem>>, %arg7: memref<48x1xf32, #tpu.memory_space<vmem>>, %arg8: memref<48x96xbf16, #tpu.memory_space<vmem>>, %arg9: memref<48x1xf32, #tpu.memory_space<vmem>>, %arg10: memref<144x48xbf16, #tpu.memory_space<vmem>>, %arg11: memref<9x16x64xbf16, #tpu.memory_space<vmem>>, %arg12: memref<16x1xf32, #tpu.memory_space<vmem>>, %arg13: memref<144x16xbf16, #tpu.memory_space<vmem>>, %arg14: memref<144x48xbf16, #tpu.memory_space<vmem>>, %arg15: memref<9x64x36xbf16, #tpu.memory_space<vmem>>, %arg16: memref<16x1xf32, #tpu.memory_space<vmem>>, %arg17: memref<400x16xbf16, #tpu.memory_space<vmem>>, %arg18: memref<25x36x256xbf16, #tpu.memory_space<vmem>>, %arg19: memref<16x1xf32, #tpu.memory_space<vmem>>, %arg20: memref<72x16xbf16, #tpu.memory_space<vmem>>, %arg21: memref<72x48xbf16, #tpu.memory_space<vmem>>, %arg22: memref<9x256x64xbf16, #tpu.memory_space<vmem>>, %arg23: memref<8x1xf32, #tpu.memory_space<vmem>>, %arg24: memref<8x64xf32, #tpu.memory_space<vmem>>) attributes {dimension_semantics = [#tpu.dimension_semantics<parallel>], iteration_bounds = array<i64: 2>, scalar_prefetch = 0 : i64, scratch_operands = 0 : i64, tpu.core_type = #tpu.core_type<tc>, window_params = [{transform_indices = @transform_0, window_bounds = array<i64: 384, 16>}, {transform_indices = @transform_1, window_bounds = array<i64: 192, 64>}, {transform_indices = @transform_2, window_bounds = array<i64: 96, 256>}, {pipeline_mode = #tpu.pipeline_mode<synchronous>, transform_indices = @transform_3, window_bounds = array<i64: 48, 384>}, {pipeline_mode = #tpu.pipeline_mode<synchronous>, transform_indices = @transform_4, window_bounds = array<i64: 48, 1>}, {pipeline_mode = #tpu.pipeline_mode<synchronous>, transform_indices = @transform_5, window_bounds = array<i64: 48, 192>}, {pipeline_mode = #tpu.pipeline_mode<synchronous>, transform_indices = @transform_6, window_bounds = array<i64: 48, 1>}, {pipeline_mode = #tpu.pipeline_mode<synchronous>, transform_indices = @transform_7, window_bounds = array<i64: 48, 96>}, {pipeline_mode = #tpu.pipeline_mode<synchronous>, transform_indices = @transform_8, window_bounds = array<i64: 48, 1>}, {pipeline_mode = #tpu.pipeline_mode<synchronous>, transform_indices = @transform_9, window_bounds = array<i64: 144, 48>}, {pipeline_mode = #tpu.pipeline_mode<synchronous>, transform_indices = @transform_10, window_bounds = array<i64: 9, 16, 64>}, {pipeline_mode = #tpu.pipeline_mode<synchronous>, transform_indices = @transform_11, window_bounds = array<i64: 16, 1>}, {pipeline_mode = #tpu.pipeline_mode<synchronous>, transform_indices = @transform_12, window_bounds = array<i64: 144, 16>}, {pipeline_mode = #tpu.pipeline_mode<synchronous>, transform_indices = @transform_13, window_bounds = array<i64: 144, 48>}, {pipeline_mode = #tpu.pipeline_mode<synchronous>, transform_indices = @transform_14, window_bounds = array<i64: 9, 64, 36>}, {pipeline_mode = #tpu.pipeline_mode<synchronous>, transform_indices = @transform_15, window_bounds = array<i64: 16, 1>}, {pipeline_mode = #tpu.pipeline_mode<synchronous>, transform_indices = @transform_16, window_bounds = array<i64: 400, 16>}, {pipeline_mode = #tpu.pipeline_mode<synchronous>, transform_indices = @transform_17, window_bounds = array<i64: 25, 36, 256>}, {pipeline_mode = #tpu.pipeline_mode<synchronous>, transform_indices = @transform_18, window_bounds = array<i64: 16, 1>}, {pipeline_mode = #tpu.pipeline_mode<synchronous>, transform_indices = @transform_19, window_bounds = array<i64: 72, 16>}, {pipeline_mode = #tpu.pipeline_mode<synchronous>, transform_indices = @transform_20, window_bounds = array<i64: 72, 48>}, {pipeline_mode = #tpu.pipeline_mode<synchronous>, transform_indices = @transform_21, window_bounds = array<i64: 9, 256, 64>}, {pipeline_mode = #tpu.pipeline_mode<synchronous>, transform_indices = @transform_22, window_bounds = array<i64: 8, 1>}, {transform_indices = @transform_23, window_bounds = array<i64: 8, 64>}]} {
    %c0 = arith.constant 0 : index
    %c0_0 = arith.constant 0 : index
    %0 = vector.load %arg4[%c0, %c0_0] : memref<48x384xbf16, #tpu.memory_space<vmem>>, vector<48x384xbf16>
    %c0_1 = arith.constant 0 : index
    %c0_2 = arith.constant 0 : index
    %1 = vector.load %arg1[%c0_1, %c0_2] : memref<384x16xf32, #tpu.memory_space<vmem>>, vector<384x16xf32>
    %2 = arith.truncf %1 : vector<384x16xf32> to vector<384x16xbf16>
    %cst = arith.constant dense<0.000000e+00> : vector<48x16xf32>
    %3 = tpu.matmul %0, %2, %cst {dimension_numbers = #tpu.dot_dimension_numbers<[1], [0], [0], [1], [0, 0, 1, 1], [], []>} : vector<48x384xbf16>, vector<384x16xbf16>, vector<48x16xf32> -> vector<48x16xf32>
    %c0_3 = arith.constant 0 : index
    %c0_4 = arith.constant 0 : index
    %4 = vector.load %arg5[%c0_3, %c0_4] : memref<48x1xf32, #tpu.memory_space<vmem>>, vector<48x1xf32>
    %5 = vector.broadcast %4 : vector<48x1xf32> to vector<48x16xf32>
    %6 = arith.addf %3, %5 : vector<48x16xf32>
    %cst_5 = arith.constant 0.000000e+00 : f32
    %7 = vector.broadcast %cst_5 : f32 to vector<48x16xf32>
    %8 = arith.minimumf %6, %7 : vector<48x16xf32>
    %9 = math.exp %8 : vector<48x16xf32>
    %cst_6 = arith.constant 1.000000e+00 : f32
    %10 = vector.broadcast %cst_6 : f32 to vector<48x16xf32>
    %11 = arith.subf %9, %10 : vector<48x16xf32>
    %cst_7 = arith.constant 1.67326319 : f32
    %12 = vector.broadcast %cst_7 : f32 to vector<48x16xf32>
    %13 = arith.mulf %12, %11 : vector<48x16xf32>
    %cst_8 = arith.constant 0.000000e+00 : f32
    %14 = vector.broadcast %cst_8 : f32 to vector<48x16xf32>
    %15 = arith.cmpf ogt, %6, %14 : vector<48x16xf32>
    %16 = arith.select %15, %6, %13 : vector<48x16xi1>, vector<48x16xf32>
    %cst_9 = arith.constant 1.05070102 : f32
    %17 = vector.broadcast %cst_9 : f32 to vector<48x16xf32>
    %18 = arith.mulf %17, %16 : vector<48x16xf32>
    %19 = arith.truncf %18 : vector<48x16xf32> to vector<48x16xbf16>
    %c0_10 = arith.constant 0 : index
    %c0_11 = arith.constant 0 : index
    %20 = vector.load %arg6[%c0_10, %c0_11] : memref<48x192xbf16, #tpu.memory_space<vmem>>, vector<48x192xbf16>
    %c0_12 = arith.constant 0 : index
    %c0_13 = arith.constant 0 : index
    %21 = vector.load %arg2[%c0_12, %c0_13] : memref<192x64xf32, #tpu.memory_space<vmem>>, vector<192x64xf32>
    %22 = arith.truncf %21 : vector<192x64xf32> to vector<192x64xbf16>
    %cst_14 = arith.constant dense<0.000000e+00> : vector<48x64xf32>
    %23 = tpu.matmul %20, %22, %cst_14 {dimension_numbers = #tpu.dot_dimension_numbers<[1], [0], [0], [1], [0, 0, 1, 1], [], []>} : vector<48x192xbf16>, vector<192x64xbf16>, vector<48x64xf32> -> vector<48x64xf32>
    %c0_15 = arith.constant 0 : index
    %c0_16 = arith.constant 0 : index
    %24 = vector.load %arg7[%c0_15, %c0_16] : memref<48x1xf32, #tpu.memory_space<vmem>>, vector<48x1xf32>
    %25 = vector.broadcast %24 : vector<48x1xf32> to vector<48x64xf32>
    %26 = arith.addf %23, %25 : vector<48x64xf32>
    %cst_17 = arith.constant 0.000000e+00 : f32
    %27 = vector.broadcast %cst_17 : f32 to vector<48x64xf32>
    %28 = arith.minimumf %26, %27 : vector<48x64xf32>
    %29 = math.exp %28 : vector<48x64xf32>
    %cst_18 = arith.constant 1.000000e+00 : f32
    %30 = vector.broadcast %cst_18 : f32 to vector<48x64xf32>
    %31 = arith.subf %29, %30 : vector<48x64xf32>
    %cst_19 = arith.constant 1.67326319 : f32
    %32 = vector.broadcast %cst_19 : f32 to vector<48x64xf32>
    %33 = arith.mulf %32, %31 : vector<48x64xf32>
    %cst_20 = arith.constant 0.000000e+00 : f32
    %34 = vector.broadcast %cst_20 : f32 to vector<48x64xf32>
    %35 = arith.cmpf ogt, %26, %34 : vector<48x64xf32>
    %36 = arith.select %35, %26, %33 : vector<48x64xi1>, vector<48x64xf32>
    %cst_21 = arith.constant 1.05070102 : f32
    %37 = vector.broadcast %cst_21 : f32 to vector<48x64xf32>
    %38 = arith.mulf %37, %36 : vector<48x64xf32>
    %39 = arith.truncf %38 : vector<48x64xf32> to vector<48x64xbf16>
    %c0_22 = arith.constant 0 : index
    %c0_23 = arith.constant 0 : index
    %40 = vector.load %arg8[%c0_22, %c0_23] : memref<48x96xbf16, #tpu.memory_space<vmem>>, vector<48x96xbf16>
    %c0_24 = arith.constant 0 : index
    %c0_25 = arith.constant 0 : index
    %41 = vector.load %arg3[%c0_24, %c0_25] : memref<96x256xf32, #tpu.memory_space<vmem>>, vector<96x256xf32>
    %42 = arith.truncf %41 : vector<96x256xf32> to vector<96x256xbf16>
    %cst_26 = arith.constant dense<0.000000e+00> : vector<48x256xf32>
    %43 = tpu.matmul %40, %42, %cst_26 {dimension_numbers = #tpu.dot_dimension_numbers<[1], [0], [0], [1], [0, 0, 1, 1], [], []>} : vector<48x96xbf16>, vector<96x256xbf16>, vector<48x256xf32> -> vector<48x256xf32>
    %c0_27 = arith.constant 0 : index
    %c0_28 = arith.constant 0 : index
    %44 = vector.load %arg9[%c0_27, %c0_28] : memref<48x1xf32, #tpu.memory_space<vmem>>, vector<48x1xf32>
    %45 = vector.broadcast %44 : vector<48x1xf32> to vector<48x256xf32>
    %46 = arith.addf %43, %45 : vector<48x256xf32>
    %cst_29 = arith.constant 0.000000e+00 : f32
    %47 = vector.broadcast %cst_29 : f32 to vector<48x256xf32>
    %48 = arith.minimumf %46, %47 : vector<48x256xf32>
    %49 = math.exp %48 : vector<48x256xf32>
    %cst_30 = arith.constant 1.000000e+00 : f32
    %50 = vector.broadcast %cst_30 : f32 to vector<48x256xf32>
    %51 = arith.subf %49, %50 : vector<48x256xf32>
    %cst_31 = arith.constant 1.67326319 : f32
    %52 = vector.broadcast %cst_31 : f32 to vector<48x256xf32>
    %53 = arith.mulf %52, %51 : vector<48x256xf32>
    %cst_32 = arith.constant 0.000000e+00 : f32
    %54 = vector.broadcast %cst_32 : f32 to vector<48x256xf32>
    %55 = arith.cmpf ogt, %46, %54 : vector<48x256xf32>
    %56 = arith.select %55, %46, %53 : vector<48x256xi1>, vector<48x256xf32>
    %cst_33 = arith.constant 1.05070102 : f32
    %57 = vector.broadcast %cst_33 : f32 to vector<48x256xf32>
    %58 = arith.mulf %57, %56 : vector<48x256xf32>
    %59 = arith.truncf %58 : vector<48x256xf32> to vector<48x256xbf16>
    %c0_34 = arith.constant 0 : index
    %c0_35 = arith.constant 0 : index
    %60 = vector.load %arg10[%c0_34, %c0_35] : memref<144x48xbf16, #tpu.memory_space<vmem>>, vector<144x48xbf16>
    %cst_36 = arith.constant dense<0.000000e+00> : vector<144x16xf32>
    %61 = tpu.matmul %60, %19, %cst_36 {dimension_numbers = #tpu.dot_dimension_numbers<[1], [0], [0], [1], [0, 0, 1, 1], [], []>} : vector<144x48xbf16>, vector<48x16xbf16>, vector<144x16xf32> -> vector<144x16xf32>
    %62 = vector.extract_strided_slice %61 {offsets = [0, 0], sizes = [16, 16], strides = [1, 1]} : vector<144x16xf32> to vector<16x16xf32>
    %63 = arith.truncf %62 : vector<16x16xf32> to vector<16x16xbf16>
    %c0_37 = arith.constant 0 : index
    %c0_38 = arith.constant 0 : index
    %c0_39 = arith.constant 0 : index
    %64 = vector.load %arg11[%c0_37, %c0_38, %c0_39] : memref<9x16x64xbf16, #tpu.memory_space<vmem>>, vector<1x16x64xbf16>
    %65 = vector.shape_cast %64 : vector<1x16x64xbf16> to vector<16x64xbf16>
    %cst_40 = arith.constant dense<0.000000e+00> : vector<16x64xf32>
    %66 = tpu.matmul %63, %65, %cst_40 {dimension_numbers = #tpu.dot_dimension_numbers<[1], [0], [0], [1], [0, 0, 1, 1], [], []>} : vector<16x16xbf16>, vector<16x64xbf16>, vector<16x64xf32> -> vector<16x64xf32>
    %67 = vector.extract_strided_slice %61 {offsets = [16, 0], sizes = [16, 16], strides = [1, 1]} : vector<144x16xf32> to vector<16x16xf32>
    %68 = arith.truncf %67 : vector<16x16xf32> to vector<16x16xbf16>
    %c1 = arith.constant 1 : index
    %c0_41 = arith.constant 0 : index
    %c0_42 = arith.constant 0 : index
    %69 = vector.load %arg11[%c1, %c0_41, %c0_42] : memref<9x16x64xbf16, #tpu.memory_space<vmem>>, vector<1x16x64xbf16>
    %70 = vector.shape_cast %69 : vector<1x16x64xbf16> to vector<16x64xbf16>
    %cst_43 = arith.constant dense<0.000000e+00> : vector<16x64xf32>
    %71 = tpu.matmul %68, %70, %cst_43 {dimension_numbers = #tpu.dot_dimension_numbers<[1], [0], [0], [1], [0, 0, 1, 1], [], []>} : vector<16x16xbf16>, vector<16x64xbf16>, vector<16x64xf32> -> vector<16x64xf32>
    %72 = arith.addf %66, %71 : vector<16x64xf32>
    %73 = vector.extract_strided_slice %61 {offsets = [32, 0], sizes = [16, 16], strides = [1, 1]} : vector<144x16xf32> to vector<16x16xf32>
    %74 = arith.truncf %73 : vector<16x16xf32> to vector<16x16xbf16>
    %c2 = arith.constant 2 : index
    %c0_44 = arith.constant 0 : index
    %c0_45 = arith.constant 0 : index
    %75 = vector.load %arg11[%c2, %c0_44, %c0_45] : memref<9x16x64xbf16, #tpu.memory_space<vmem>>, vector<1x16x64xbf16>
    %76 = vector.shape_cast %75 : vector<1x16x64xbf16> to vector<16x64xbf16>
    %cst_46 = arith.constant dense<0.000000e+00> : vector<16x64xf32>
    %77 = tpu.matmul %74, %76, %cst_46 {dimension_numbers = #tpu.dot_dimension_numbers<[1], [0], [0], [1], [0, 0, 1, 1], [], []>} : vector<16x16xbf16>, vector<16x64xbf16>, vector<16x64xf32> -> vector<16x64xf32>
    %78 = arith.addf %72, %77 : vector<16x64xf32>
    %79 = vector.extract_strided_slice %61 {offsets = [48, 0], sizes = [16, 16], strides = [1, 1]} : vector<144x16xf32> to vector<16x16xf32>
    %80 = arith.truncf %79 : vector<16x16xf32> to vector<16x16xbf16>
    %c3 = arith.constant 3 : index
    %c0_47 = arith.constant 0 : index
    %c0_48 = arith.constant 0 : index
    %81 = vector.load %arg11[%c3, %c0_47, %c0_48] : memref<9x16x64xbf16, #tpu.memory_space<vmem>>, vector<1x16x64xbf16>
    %82 = vector.shape_cast %81 : vector<1x16x64xbf16> to vector<16x64xbf16>
    %cst_49 = arith.constant dense<0.000000e+00> : vector<16x64xf32>
    %83 = tpu.matmul %80, %82, %cst_49 {dimension_numbers = #tpu.dot_dimension_numbers<[1], [0], [0], [1], [0, 0, 1, 1], [], []>} : vector<16x16xbf16>, vector<16x64xbf16>, vector<16x64xf32> -> vector<16x64xf32>
    %84 = arith.addf %78, %83 : vector<16x64xf32>
    %85 = vector.extract_strided_slice %61 {offsets = [64, 0], sizes = [16, 16], strides = [1, 1]} : vector<144x16xf32> to vector<16x16xf32>
    %86 = arith.truncf %85 : vector<16x16xf32> to vector<16x16xbf16>
    %c4 = arith.constant 4 : index
    %c0_50 = arith.constant 0 : index
    %c0_51 = arith.constant 0 : index
    %87 = vector.load %arg11[%c4, %c0_50, %c0_51] : memref<9x16x64xbf16, #tpu.memory_space<vmem>>, vector<1x16x64xbf16>
    %88 = vector.shape_cast %87 : vector<1x16x64xbf16> to vector<16x64xbf16>
    %cst_52 = arith.constant dense<0.000000e+00> : vector<16x64xf32>
    %89 = tpu.matmul %86, %88, %cst_52 {dimension_numbers = #tpu.dot_dimension_numbers<[1], [0], [0], [1], [0, 0, 1, 1], [], []>} : vector<16x16xbf16>, vector<16x64xbf16>, vector<16x64xf32> -> vector<16x64xf32>
    %90 = arith.addf %84, %89 : vector<16x64xf32>
    %91 = vector.extract_strided_slice %61 {offsets = [80, 0], sizes = [16, 16], strides = [1, 1]} : vector<144x16xf32> to vector<16x16xf32>
    %92 = arith.truncf %91 : vector<16x16xf32> to vector<16x16xbf16>
    %c5 = arith.constant 5 : index
    %c0_53 = arith.constant 0 : index
    %c0_54 = arith.constant 0 : index
    %93 = vector.load %arg11[%c5, %c0_53, %c0_54] : memref<9x16x64xbf16, #tpu.memory_space<vmem>>, vector<1x16x64xbf16>
    %94 = vector.shape_cast %93 : vector<1x16x64xbf16> to vector<16x64xbf16>
    %cst_55 = arith.constant dense<0.000000e+00> : vector<16x64xf32>
    %95 = tpu.matmul %92, %94, %cst_55 {dimension_numbers = #tpu.dot_dimension_numbers<[1], [0], [0], [1], [0, 0, 1, 1], [], []>} : vector<16x16xbf16>, vector<16x64xbf16>, vector<16x64xf32> -> vector<16x64xf32>
    %96 = arith.addf %90, %95 : vector<16x64xf32>
    %97 = vector.extract_strided_slice %61 {offsets = [96, 0], sizes = [16, 16], strides = [1, 1]} : vector<144x16xf32> to vector<16x16xf32>
    %98 = arith.truncf %97 : vector<16x16xf32> to vector<16x16xbf16>
    %c6 = arith.constant 6 : index
    %c0_56 = arith.constant 0 : index
    %c0_57 = arith.constant 0 : index
    %99 = vector.load %arg11[%c6, %c0_56, %c0_57] : memref<9x16x64xbf16, #tpu.memory_space<vmem>>, vector<1x16x64xbf16>
    %100 = vector.shape_cast %99 : vector<1x16x64xbf16> to vector<16x64xbf16>
    %cst_58 = arith.constant dense<0.000000e+00> : vector<16x64xf32>
    %101 = tpu.matmul %98, %100, %cst_58 {dimension_numbers = #tpu.dot_dimension_numbers<[1], [0], [0], [1], [0, 0, 1, 1], [], []>} : vector<16x16xbf16>, vector<16x64xbf16>, vector<16x64xf32> -> vector<16x64xf32>
    %102 = arith.addf %96, %101 : vector<16x64xf32>
    %103 = vector.extract_strided_slice %61 {offsets = [112, 0], sizes = [16, 16], strides = [1, 1]} : vector<144x16xf32> to vector<16x16xf32>
    %104 = arith.truncf %103 : vector<16x16xf32> to vector<16x16xbf16>
    %c7 = arith.constant 7 : index
    %c0_59 = arith.constant 0 : index
    %c0_60 = arith.constant 0 : index
    %105 = vector.load %arg11[%c7, %c0_59, %c0_60] : memref<9x16x64xbf16, #tpu.memory_space<vmem>>, vector<1x16x64xbf16>
    %106 = vector.shape_cast %105 : vector<1x16x64xbf16> to vector<16x64xbf16>
    %cst_61 = arith.constant dense<0.000000e+00> : vector<16x64xf32>
    %107 = tpu.matmul %104, %106, %cst_61 {dimension_numbers = #tpu.dot_dimension_numbers<[1], [0], [0], [1], [0, 0, 1, 1], [], []>} : vector<16x16xbf16>, vector<16x64xbf16>, vector<16x64xf32> -> vector<16x64xf32>
    %108 = arith.addf %102, %107 : vector<16x64xf32>
    %109 = vector.extract_strided_slice %61 {offsets = [128, 0], sizes = [16, 16], strides = [1, 1]} : vector<144x16xf32> to vector<16x16xf32>
    %110 = arith.truncf %109 : vector<16x16xf32> to vector<16x16xbf16>
    %c8 = arith.constant 8 : index
    %c0_62 = arith.constant 0 : index
    %c0_63 = arith.constant 0 : index
    %111 = vector.load %arg11[%c8, %c0_62, %c0_63] : memref<9x16x64xbf16, #tpu.memory_space<vmem>>, vector<1x16x64xbf16>
    %112 = vector.shape_cast %111 : vector<1x16x64xbf16> to vector<16x64xbf16>
    %cst_64 = arith.constant dense<0.000000e+00> : vector<16x64xf32>
    %113 = tpu.matmul %110, %112, %cst_64 {dimension_numbers = #tpu.dot_dimension_numbers<[1], [0], [0], [1], [0, 0, 1, 1], [], []>} : vector<16x16xbf16>, vector<16x64xbf16>, vector<16x64xf32> -> vector<16x64xf32>
    %114 = arith.addf %108, %113 : vector<16x64xf32>
    %c0_65 = arith.constant 0 : index
    %c0_66 = arith.constant 0 : index
    %115 = vector.load %arg12[%c0_65, %c0_66] : memref<16x1xf32, #tpu.memory_space<vmem>>, vector<16x1xf32>
    %116 = vector.broadcast %115 : vector<16x1xf32> to vector<16x64xf32>
    %117 = arith.addf %114, %116 : vector<16x64xf32>
    %118 = arith.truncf %117 : vector<16x64xf32> to vector<16x64xbf16>
    %c0_67 = arith.constant 0 : index
    %c0_68 = arith.constant 0 : index
    %119 = vector.load %arg13[%c0_67, %c0_68] : memref<144x16xbf16, #tpu.memory_space<vmem>>, vector<144x16xbf16>
    %cst_69 = arith.constant dense<0.000000e+00> : vector<144x64xf32>
    %120 = tpu.matmul %119, %118, %cst_69 {dimension_numbers = #tpu.dot_dimension_numbers<[1], [0], [0], [1], [0, 0, 1, 1], [], []>} : vector<144x16xbf16>, vector<16x64xbf16>, vector<144x64xf32> -> vector<144x64xf32>
    %c0_70 = arith.constant 0 : index
    %c0_71 = arith.constant 0 : index
    %121 = vector.load %arg14[%c0_70, %c0_71] : memref<144x48xbf16, #tpu.memory_space<vmem>>, vector<144x48xbf16>
    %cst_72 = arith.constant dense<0.000000e+00> : vector<144x64xf32>
    %122 = tpu.matmul %121, %39, %cst_72 {dimension_numbers = #tpu.dot_dimension_numbers<[1], [0], [0], [1], [0, 0, 1, 1], [], []>} : vector<144x48xbf16>, vector<48x64xbf16>, vector<144x64xf32> -> vector<144x64xf32>
    %123 = arith.addf %120, %122 : vector<144x64xf32>
    %124 = vector.extract_strided_slice %123 {offsets = [0, 0], sizes = [16, 64], strides = [1, 1]} : vector<144x64xf32> to vector<16x64xf32>
    %125 = arith.truncf %124 : vector<16x64xf32> to vector<16x64xbf16>
    %c0_73 = arith.constant 0 : index
    %c0_74 = arith.constant 0 : index
    %c0_75 = arith.constant 0 : index
    %126 = vector.load %arg15[%c0_73, %c0_74, %c0_75] : memref<9x64x36xbf16, #tpu.memory_space<vmem>>, vector<1x64x36xbf16>
    %127 = vector.shape_cast %126 : vector<1x64x36xbf16> to vector<64x36xbf16>
    %cst_76 = arith.constant dense<0.000000e+00> : vector<16x36xf32>
    %128 = tpu.matmul %125, %127, %cst_76 {dimension_numbers = #tpu.dot_dimension_numbers<[1], [0], [0], [1], [0, 0, 1, 1], [], []>} : vector<16x64xbf16>, vector<64x36xbf16>, vector<16x36xf32> -> vector<16x36xf32>
    %129 = vector.extract_strided_slice %123 {offsets = [16, 0], sizes = [16, 64], strides = [1, 1]} : vector<144x64xf32> to vector<16x64xf32>
    %130 = arith.truncf %129 : vector<16x64xf32> to vector<16x64xbf16>
    %c1_77 = arith.constant 1 : index
    %c0_78 = arith.constant 0 : index
    %c0_79 = arith.constant 0 : index
    %131 = vector.load %arg15[%c1_77, %c0_78, %c0_79] : memref<9x64x36xbf16, #tpu.memory_space<vmem>>, vector<1x64x36xbf16>
    %132 = vector.shape_cast %131 : vector<1x64x36xbf16> to vector<64x36xbf16>
    %cst_80 = arith.constant dense<0.000000e+00> : vector<16x36xf32>
    %133 = tpu.matmul %130, %132, %cst_80 {dimension_numbers = #tpu.dot_dimension_numbers<[1], [0], [0], [1], [0, 0, 1, 1], [], []>} : vector<16x64xbf16>, vector<64x36xbf16>, vector<16x36xf32> -> vector<16x36xf32>
    %134 = arith.addf %128, %133 : vector<16x36xf32>
    %135 = vector.extract_strided_slice %123 {offsets = [32, 0], sizes = [16, 64], strides = [1, 1]} : vector<144x64xf32> to vector<16x64xf32>
    %136 = arith.truncf %135 : vector<16x64xf32> to vector<16x64xbf16>
    %c2_81 = arith.constant 2 : index
    %c0_82 = arith.constant 0 : index
    %c0_83 = arith.constant 0 : index
    %137 = vector.load %arg15[%c2_81, %c0_82, %c0_83] : memref<9x64x36xbf16, #tpu.memory_space<vmem>>, vector<1x64x36xbf16>
    %138 = vector.shape_cast %137 : vector<1x64x36xbf16> to vector<64x36xbf16>
    %cst_84 = arith.constant dense<0.000000e+00> : vector<16x36xf32>
    %139 = tpu.matmul %136, %138, %cst_84 {dimension_numbers = #tpu.dot_dimension_numbers<[1], [0], [0], [1], [0, 0, 1, 1], [], []>} : vector<16x64xbf16>, vector<64x36xbf16>, vector<16x36xf32> -> vector<16x36xf32>
    %140 = arith.addf %134, %139 : vector<16x36xf32>
    %141 = vector.extract_strided_slice %123 {offsets = [48, 0], sizes = [16, 64], strides = [1, 1]} : vector<144x64xf32> to vector<16x64xf32>
    %142 = arith.truncf %141 : vector<16x64xf32> to vector<16x64xbf16>
    %c3_85 = arith.constant 3 : index
    %c0_86 = arith.constant 0 : index
    %c0_87 = arith.constant 0 : index
    %143 = vector.load %arg15[%c3_85, %c0_86, %c0_87] : memref<9x64x36xbf16, #tpu.memory_space<vmem>>, vector<1x64x36xbf16>
    %144 = vector.shape_cast %143 : vector<1x64x36xbf16> to vector<64x36xbf16>
    %cst_88 = arith.constant dense<0.000000e+00> : vector<16x36xf32>
    %145 = tpu.matmul %142, %144, %cst_88 {dimension_numbers = #tpu.dot_dimension_numbers<[1], [0], [0], [1], [0, 0, 1, 1], [], []>} : vector<16x64xbf16>, vector<64x36xbf16>, vector<16x36xf32> -> vector<16x36xf32>
    %146 = arith.addf %140, %145 : vector<16x36xf32>
    %147 = vector.extract_strided_slice %123 {offsets = [64, 0], sizes = [16, 64], strides = [1, 1]} : vector<144x64xf32> to vector<16x64xf32>
    %148 = arith.truncf %147 : vector<16x64xf32> to vector<16x64xbf16>
    %c4_89 = arith.constant 4 : index
    %c0_90 = arith.constant 0 : index
    %c0_91 = arith.constant 0 : index
    %149 = vector.load %arg15[%c4_89, %c0_90, %c0_91] : memref<9x64x36xbf16, #tpu.memory_space<vmem>>, vector<1x64x36xbf16>
    %150 = vector.shape_cast %149 : vector<1x64x36xbf16> to vector<64x36xbf16>
    %cst_92 = arith.constant dense<0.000000e+00> : vector<16x36xf32>
    %151 = tpu.matmul %148, %150, %cst_92 {dimension_numbers = #tpu.dot_dimension_numbers<[1], [0], [0], [1], [0, 0, 1, 1], [], []>} : vector<16x64xbf16>, vector<64x36xbf16>, vector<16x36xf32> -> vector<16x36xf32>
    %152 = arith.addf %146, %151 : vector<16x36xf32>
    %153 = vector.extract_strided_slice %123 {offsets = [80, 0], sizes = [16, 64], strides = [1, 1]} : vector<144x64xf32> to vector<16x64xf32>
    %154 = arith.truncf %153 : vector<16x64xf32> to vector<16x64xbf16>
    %c5_93 = arith.constant 5 : index
    %c0_94 = arith.constant 0 : index
    %c0_95 = arith.constant 0 : index
    %155 = vector.load %arg15[%c5_93, %c0_94, %c0_95] : memref<9x64x36xbf16, #tpu.memory_space<vmem>>, vector<1x64x36xbf16>
    %156 = vector.shape_cast %155 : vector<1x64x36xbf16> to vector<64x36xbf16>
    %cst_96 = arith.constant dense<0.000000e+00> : vector<16x36xf32>
    %157 = tpu.matmul %154, %156, %cst_96 {dimension_numbers = #tpu.dot_dimension_numbers<[1], [0], [0], [1], [0, 0, 1, 1], [], []>} : vector<16x64xbf16>, vector<64x36xbf16>, vector<16x36xf32> -> vector<16x36xf32>
    %158 = arith.addf %152, %157 : vector<16x36xf32>
    %159 = vector.extract_strided_slice %123 {offsets = [96, 0], sizes = [16, 64], strides = [1, 1]} : vector<144x64xf32> to vector<16x64xf32>
    %160 = arith.truncf %159 : vector<16x64xf32> to vector<16x64xbf16>
    %c6_97 = arith.constant 6 : index
    %c0_98 = arith.constant 0 : index
    %c0_99 = arith.constant 0 : index
    %161 = vector.load %arg15[%c6_97, %c0_98, %c0_99] : memref<9x64x36xbf16, #tpu.memory_space<vmem>>, vector<1x64x36xbf16>
    %162 = vector.shape_cast %161 : vector<1x64x36xbf16> to vector<64x36xbf16>
    %cst_100 = arith.constant dense<0.000000e+00> : vector<16x36xf32>
    %163 = tpu.matmul %160, %162, %cst_100 {dimension_numbers = #tpu.dot_dimension_numbers<[1], [0], [0], [1], [0, 0, 1, 1], [], []>} : vector<16x64xbf16>, vector<64x36xbf16>, vector<16x36xf32> -> vector<16x36xf32>
    %164 = arith.addf %158, %163 : vector<16x36xf32>
    %165 = vector.extract_strided_slice %123 {offsets = [112, 0], sizes = [16, 64], strides = [1, 1]} : vector<144x64xf32> to vector<16x64xf32>
    %166 = arith.truncf %165 : vector<16x64xf32> to vector<16x64xbf16>
    %c7_101 = arith.constant 7 : index
    %c0_102 = arith.constant 0 : index
    %c0_103 = arith.constant 0 : index
    %167 = vector.load %arg15[%c7_101, %c0_102, %c0_103] : memref<9x64x36xbf16, #tpu.memory_space<vmem>>, vector<1x64x36xbf16>
    %168 = vector.shape_cast %167 : vector<1x64x36xbf16> to vector<64x36xbf16>
    %cst_104 = arith.constant dense<0.000000e+00> : vector<16x36xf32>
    %169 = tpu.matmul %166, %168, %cst_104 {dimension_numbers = #tpu.dot_dimension_numbers<[1], [0], [0], [1], [0, 0, 1, 1], [], []>} : vector<16x64xbf16>, vector<64x36xbf16>, vector<16x36xf32> -> vector<16x36xf32>
    %170 = arith.addf %164, %169 : vector<16x36xf32>
    %171 = vector.extract_strided_slice %123 {offsets = [128, 0], sizes = [16, 64], strides = [1, 1]} : vector<144x64xf32> to vector<16x64xf32>
    %172 = arith.truncf %171 : vector<16x64xf32> to vector<16x64xbf16>
    %c8_105 = arith.constant 8 : index
    %c0_106 = arith.constant 0 : index
    %c0_107 = arith.constant 0 : index
    %173 = vector.load %arg15[%c8_105, %c0_106, %c0_107] : memref<9x64x36xbf16, #tpu.memory_space<vmem>>, vector<1x64x36xbf16>
    %174 = vector.shape_cast %173 : vector<1x64x36xbf16> to vector<64x36xbf16>
    %cst_108 = arith.constant dense<0.000000e+00> : vector<16x36xf32>
    %175 = tpu.matmul %172, %174, %cst_108 {dimension_numbers = #tpu.dot_dimension_numbers<[1], [0], [0], [1], [0, 0, 1, 1], [], []>} : vector<16x64xbf16>, vector<64x36xbf16>, vector<16x36xf32> -> vector<16x36xf32>
    %176 = arith.addf %170, %175 : vector<16x36xf32>
    %c0_109 = arith.constant 0 : index
    %c0_110 = arith.constant 0 : index
    %177 = vector.load %arg16[%c0_109, %c0_110] : memref<16x1xf32, #tpu.memory_space<vmem>>, vector<16x1xf32>
    %178 = vector.broadcast %177 : vector<16x1xf32> to vector<16x36xf32>
    %179 = arith.addf %176, %178 : vector<16x36xf32>
    %cst_111 = arith.constant 0.000000e+00 : f32
    %180 = vector.broadcast %cst_111 : f32 to vector<16x36xf32>
    %181 = arith.minimumf %179, %180 : vector<16x36xf32>
    %182 = math.exp %181 : vector<16x36xf32>
    %cst_112 = arith.constant 1.000000e+00 : f32
    %183 = vector.broadcast %cst_112 : f32 to vector<16x36xf32>
    %184 = arith.subf %182, %183 : vector<16x36xf32>
    %cst_113 = arith.constant 1.67326319 : f32
    %185 = vector.broadcast %cst_113 : f32 to vector<16x36xf32>
    %186 = arith.mulf %185, %184 : vector<16x36xf32>
    %cst_114 = arith.constant 0.000000e+00 : f32
    %187 = vector.broadcast %cst_114 : f32 to vector<16x36xf32>
    %188 = arith.cmpf ogt, %179, %187 : vector<16x36xf32>
    %189 = arith.select %188, %179, %186 : vector<16x36xi1>, vector<16x36xf32>
    %cst_115 = arith.constant 1.05070102 : f32
    %190 = vector.broadcast %cst_115 : f32 to vector<16x36xf32>
    %191 = arith.mulf %190, %189 : vector<16x36xf32>
    %192 = arith.truncf %191 : vector<16x36xf32> to vector<16x36xbf16>
    %c0_116 = arith.constant 0 : index
    %c0_117 = arith.constant 0 : index
    %193 = vector.load %arg17[%c0_116, %c0_117] : memref<400x16xbf16, #tpu.memory_space<vmem>>, vector<400x16xbf16>
    %cst_118 = arith.constant dense<0.000000e+00> : vector<400x36xf32>
    %194 = tpu.matmul %193, %192, %cst_118 {dimension_numbers = #tpu.dot_dimension_numbers<[1], [0], [0], [1], [0, 0, 1, 1], [], []>} : vector<400x16xbf16>, vector<16x36xbf16>, vector<400x36xf32> -> vector<400x36xf32>
    %195 = vector.extract_strided_slice %194 {offsets = [0, 0], sizes = [16, 36], strides = [1, 1]} : vector<400x36xf32> to vector<16x36xf32>
    %196 = arith.truncf %195 : vector<16x36xf32> to vector<16x36xbf16>
    %c0_119 = arith.constant 0 : index
    %c0_120 = arith.constant 0 : index
    %c0_121 = arith.constant 0 : index
    %197 = vector.load %arg18[%c0_119, %c0_120, %c0_121] : memref<25x36x256xbf16, #tpu.memory_space<vmem>>, vector<1x36x256xbf16>
    %198 = vector.shape_cast %197 : vector<1x36x256xbf16> to vector<36x256xbf16>
    %cst_122 = arith.constant dense<0.000000e+00> : vector<16x256xf32>
    %199 = tpu.matmul %196, %198, %cst_122 {dimension_numbers = #tpu.dot_dimension_numbers<[1], [0], [0], [1], [0, 0, 1, 1], [], []>} : vector<16x36xbf16>, vector<36x256xbf16>, vector<16x256xf32> -> vector<16x256xf32>
    %200 = vector.extract_strided_slice %194 {offsets = [16, 0], sizes = [16, 36], strides = [1, 1]} : vector<400x36xf32> to vector<16x36xf32>
    %201 = arith.truncf %200 : vector<16x36xf32> to vector<16x36xbf16>
    %c1_123 = arith.constant 1 : index
    %c0_124 = arith.constant 0 : index
    %c0_125 = arith.constant 0 : index
    %202 = vector.load %arg18[%c1_123, %c0_124, %c0_125] : memref<25x36x256xbf16, #tpu.memory_space<vmem>>, vector<1x36x256xbf16>
    %203 = vector.shape_cast %202 : vector<1x36x256xbf16> to vector<36x256xbf16>
    %cst_126 = arith.constant dense<0.000000e+00> : vector<16x256xf32>
    %204 = tpu.matmul %201, %203, %cst_126 {dimension_numbers = #tpu.dot_dimension_numbers<[1], [0], [0], [1], [0, 0, 1, 1], [], []>} : vector<16x36xbf16>, vector<36x256xbf16>, vector<16x256xf32> -> vector<16x256xf32>
    %205 = arith.addf %199, %204 : vector<16x256xf32>
    %206 = vector.extract_strided_slice %194 {offsets = [32, 0], sizes = [16, 36], strides = [1, 1]} : vector<400x36xf32> to vector<16x36xf32>
    %207 = arith.truncf %206 : vector<16x36xf32> to vector<16x36xbf16>
    %c2_127 = arith.constant 2 : index
    %c0_128 = arith.constant 0 : index
    %c0_129 = arith.constant 0 : index
    %208 = vector.load %arg18[%c2_127, %c0_128, %c0_129] : memref<25x36x256xbf16, #tpu.memory_space<vmem>>, vector<1x36x256xbf16>
    %209 = vector.shape_cast %208 : vector<1x36x256xbf16> to vector<36x256xbf16>
    %cst_130 = arith.constant dense<0.000000e+00> : vector<16x256xf32>
    %210 = tpu.matmul %207, %209, %cst_130 {dimension_numbers = #tpu.dot_dimension_numbers<[1], [0], [0], [1], [0, 0, 1, 1], [], []>} : vector<16x36xbf16>, vector<36x256xbf16>, vector<16x256xf32> -> vector<16x256xf32>
    %211 = arith.addf %205, %210 : vector<16x256xf32>
    %212 = vector.extract_strided_slice %194 {offsets = [48, 0], sizes = [16, 36], strides = [1, 1]} : vector<400x36xf32> to vector<16x36xf32>
    %213 = arith.truncf %212 : vector<16x36xf32> to vector<16x36xbf16>
    %c3_131 = arith.constant 3 : index
    %c0_132 = arith.constant 0 : index
    %c0_133 = arith.constant 0 : index
    %214 = vector.load %arg18[%c3_131, %c0_132, %c0_133] : memref<25x36x256xbf16, #tpu.memory_space<vmem>>, vector<1x36x256xbf16>
    %215 = vector.shape_cast %214 : vector<1x36x256xbf16> to vector<36x256xbf16>
    %cst_134 = arith.constant dense<0.000000e+00> : vector<16x256xf32>
    %216 = tpu.matmul %213, %215, %cst_134 {dimension_numbers = #tpu.dot_dimension_numbers<[1], [0], [0], [1], [0, 0, 1, 1], [], []>} : vector<16x36xbf16>, vector<36x256xbf16>, vector<16x256xf32> -> vector<16x256xf32>
    %217 = arith.addf %211, %216 : vector<16x256xf32>
    %218 = vector.extract_strided_slice %194 {offsets = [64, 0], sizes = [16, 36], strides = [1, 1]} : vector<400x36xf32> to vector<16x36xf32>
    %219 = arith.truncf %218 : vector<16x36xf32> to vector<16x36xbf16>
    %c4_135 = arith.constant 4 : index
    %c0_136 = arith.constant 0 : index
    %c0_137 = arith.constant 0 : index
    %220 = vector.load %arg18[%c4_135, %c0_136, %c0_137] : memref<25x36x256xbf16, #tpu.memory_space<vmem>>, vector<1x36x256xbf16>
    %221 = vector.shape_cast %220 : vector<1x36x256xbf16> to vector<36x256xbf16>
    %cst_138 = arith.constant dense<0.000000e+00> : vector<16x256xf32>
    %222 = tpu.matmul %219, %221, %cst_138 {dimension_numbers = #tpu.dot_dimension_numbers<[1], [0], [0], [1], [0, 0, 1, 1], [], []>} : vector<16x36xbf16>, vector<36x256xbf16>, vector<16x256xf32> -> vector<16x256xf32>
    %223 = arith.addf %217, %222 : vector<16x256xf32>
    %224 = vector.extract_strided_slice %194 {offsets = [80, 0], sizes = [16, 36], strides = [1, 1]} : vector<400x36xf32> to vector<16x36xf32>
    %225 = arith.truncf %224 : vector<16x36xf32> to vector<16x36xbf16>
    %c5_139 = arith.constant 5 : index
    %c0_140 = arith.constant 0 : index
    %c0_141 = arith.constant 0 : index
    %226 = vector.load %arg18[%c5_139, %c0_140, %c0_141] : memref<25x36x256xbf16, #tpu.memory_space<vmem>>, vector<1x36x256xbf16>
    %227 = vector.shape_cast %226 : vector<1x36x256xbf16> to vector<36x256xbf16>
    %cst_142 = arith.constant dense<0.000000e+00> : vector<16x256xf32>
    %228 = tpu.matmul %225, %227, %cst_142 {dimension_numbers = #tpu.dot_dimension_numbers<[1], [0], [0], [1], [0, 0, 1, 1], [], []>} : vector<16x36xbf16>, vector<36x256xbf16>, vector<16x256xf32> -> vector<16x256xf32>
    %229 = arith.addf %223, %228 : vector<16x256xf32>
    %230 = vector.extract_strided_slice %194 {offsets = [96, 0], sizes = [16, 36], strides = [1, 1]} : vector<400x36xf32> to vector<16x36xf32>
    %231 = arith.truncf %230 : vector<16x36xf32> to vector<16x36xbf16>
    %c6_143 = arith.constant 6 : index
    %c0_144 = arith.constant 0 : index
    %c0_145 = arith.constant 0 : index
    %232 = vector.load %arg18[%c6_143, %c0_144, %c0_145] : memref<25x36x256xbf16, #tpu.memory_space<vmem>>, vector<1x36x256xbf16>
    %233 = vector.shape_cast %232 : vector<1x36x256xbf16> to vector<36x256xbf16>
    %cst_146 = arith.constant dense<0.000000e+00> : vector<16x256xf32>
    %234 = tpu.matmul %231, %233, %cst_146 {dimension_numbers = #tpu.dot_dimension_numbers<[1], [0], [0], [1], [0, 0, 1, 1], [], []>} : vector<16x36xbf16>, vector<36x256xbf16>, vector<16x256xf32> -> vector<16x256xf32>
    %235 = arith.addf %229, %234 : vector<16x256xf32>
    %236 = vector.extract_strided_slice %194 {offsets = [112, 0], sizes = [16, 36], strides = [1, 1]} : vector<400x36xf32> to vector<16x36xf32>
    %237 = arith.truncf %236 : vector<16x36xf32> to vector<16x36xbf16>
    %c7_147 = arith.constant 7 : index
    %c0_148 = arith.constant 0 : index
    %c0_149 = arith.constant 0 : index
    %238 = vector.load %arg18[%c7_147, %c0_148, %c0_149] : memref<25x36x256xbf16, #tpu.memory_space<vmem>>, vector<1x36x256xbf16>
    %239 = vector.shape_cast %238 : vector<1x36x256xbf16> to vector<36x256xbf16>
    %cst_150 = arith.constant dense<0.000000e+00> : vector<16x256xf32>
    %240 = tpu.matmul %237, %239, %cst_150 {dimension_numbers = #tpu.dot_dimension_numbers<[1], [0], [0], [1], [0, 0, 1, 1], [], []>} : vector<16x36xbf16>, vector<36x256xbf16>, vector<16x256xf32> -> vector<16x256xf32>
    %241 = arith.addf %235, %240 : vector<16x256xf32>
    %242 = vector.extract_strided_slice %194 {offsets = [128, 0], sizes = [16, 36], strides = [1, 1]} : vector<400x36xf32> to vector<16x36xf32>
    %243 = arith.truncf %242 : vector<16x36xf32> to vector<16x36xbf16>
    %c8_151 = arith.constant 8 : index
    %c0_152 = arith.constant 0 : index
    %c0_153 = arith.constant 0 : index
    %244 = vector.load %arg18[%c8_151, %c0_152, %c0_153] : memref<25x36x256xbf16, #tpu.memory_space<vmem>>, vector<1x36x256xbf16>
    %245 = vector.shape_cast %244 : vector<1x36x256xbf16> to vector<36x256xbf16>
    %cst_154 = arith.constant dense<0.000000e+00> : vector<16x256xf32>
    %246 = tpu.matmul %243, %245, %cst_154 {dimension_numbers = #tpu.dot_dimension_numbers<[1], [0], [0], [1], [0, 0, 1, 1], [], []>} : vector<16x36xbf16>, vector<36x256xbf16>, vector<16x256xf32> -> vector<16x256xf32>
    %247 = arith.addf %241, %246 : vector<16x256xf32>
    %248 = vector.extract_strided_slice %194 {offsets = [144, 0], sizes = [16, 36], strides = [1, 1]} : vector<400x36xf32> to vector<16x36xf32>
    %249 = arith.truncf %248 : vector<16x36xf32> to vector<16x36xbf16>
    %c9 = arith.constant 9 : index
    %c0_155 = arith.constant 0 : index
    %c0_156 = arith.constant 0 : index
    %250 = vector.load %arg18[%c9, %c0_155, %c0_156] : memref<25x36x256xbf16, #tpu.memory_space<vmem>>, vector<1x36x256xbf16>
    %251 = vector.shape_cast %250 : vector<1x36x256xbf16> to vector<36x256xbf16>
    %cst_157 = arith.constant dense<0.000000e+00> : vector<16x256xf32>
    %252 = tpu.matmul %249, %251, %cst_157 {dimension_numbers = #tpu.dot_dimension_numbers<[1], [0], [0], [1], [0, 0, 1, 1], [], []>} : vector<16x36xbf16>, vector<36x256xbf16>, vector<16x256xf32> -> vector<16x256xf32>
    %253 = arith.addf %247, %252 : vector<16x256xf32>
    %254 = vector.extract_strided_slice %194 {offsets = [160, 0], sizes = [16, 36], strides = [1, 1]} : vector<400x36xf32> to vector<16x36xf32>
    %255 = arith.truncf %254 : vector<16x36xf32> to vector<16x36xbf16>
    %c10 = arith.constant 10 : index
    %c0_158 = arith.constant 0 : index
    %c0_159 = arith.constant 0 : index
    %256 = vector.load %arg18[%c10, %c0_158, %c0_159] : memref<25x36x256xbf16, #tpu.memory_space<vmem>>, vector<1x36x256xbf16>
    %257 = vector.shape_cast %256 : vector<1x36x256xbf16> to vector<36x256xbf16>
    %cst_160 = arith.constant dense<0.000000e+00> : vector<16x256xf32>
    %258 = tpu.matmul %255, %257, %cst_160 {dimension_numbers = #tpu.dot_dimension_numbers<[1], [0], [0], [1], [0, 0, 1, 1], [], []>} : vector<16x36xbf16>, vector<36x256xbf16>, vector<16x256xf32> -> vector<16x256xf32>
    %259 = arith.addf %253, %258 : vector<16x256xf32>
    %260 = vector.extract_strided_slice %194 {offsets = [176, 0], sizes = [16, 36], strides = [1, 1]} : vector<400x36xf32> to vector<16x36xf32>
    %261 = arith.truncf %260 : vector<16x36xf32> to vector<16x36xbf16>
    %c11 = arith.constant 11 : index
    %c0_161 = arith.constant 0 : index
    %c0_162 = arith.constant 0 : index
    %262 = vector.load %arg18[%c11, %c0_161, %c0_162] : memref<25x36x256xbf16, #tpu.memory_space<vmem>>, vector<1x36x256xbf16>
    %263 = vector.shape_cast %262 : vector<1x36x256xbf16> to vector<36x256xbf16>
    %cst_163 = arith.constant dense<0.000000e+00> : vector<16x256xf32>
    %264 = tpu.matmul %261, %263, %cst_163 {dimension_numbers = #tpu.dot_dimension_numbers<[1], [0], [0], [1], [0, 0, 1, 1], [], []>} : vector<16x36xbf16>, vector<36x256xbf16>, vector<16x256xf32> -> vector<16x256xf32>
    %265 = arith.addf %259, %264 : vector<16x256xf32>
    %266 = vector.extract_strided_slice %194 {offsets = [192, 0], sizes = [16, 36], strides = [1, 1]} : vector<400x36xf32> to vector<16x36xf32>
    %267 = arith.truncf %266 : vector<16x36xf32> to vector<16x36xbf16>
    %c12 = arith.constant 12 : index
    %c0_164 = arith.constant 0 : index
    %c0_165 = arith.constant 0 : index
    %268 = vector.load %arg18[%c12, %c0_164, %c0_165] : memref<25x36x256xbf16, #tpu.memory_space<vmem>>, vector<1x36x256xbf16>
    %269 = vector.shape_cast %268 : vector<1x36x256xbf16> to vector<36x256xbf16>
    %cst_166 = arith.constant dense<0.000000e+00> : vector<16x256xf32>
    %270 = tpu.matmul %267, %269, %cst_166 {dimension_numbers = #tpu.dot_dimension_numbers<[1], [0], [0], [1], [0, 0, 1, 1], [], []>} : vector<16x36xbf16>, vector<36x256xbf16>, vector<16x256xf32> -> vector<16x256xf32>
    %271 = arith.addf %265, %270 : vector<16x256xf32>
    %272 = vector.extract_strided_slice %194 {offsets = [208, 0], sizes = [16, 36], strides = [1, 1]} : vector<400x36xf32> to vector<16x36xf32>
    %273 = arith.truncf %272 : vector<16x36xf32> to vector<16x36xbf16>
    %c13 = arith.constant 13 : index
    %c0_167 = arith.constant 0 : index
    %c0_168 = arith.constant 0 : index
    %274 = vector.load %arg18[%c13, %c0_167, %c0_168] : memref<25x36x256xbf16, #tpu.memory_space<vmem>>, vector<1x36x256xbf16>
    %275 = vector.shape_cast %274 : vector<1x36x256xbf16> to vector<36x256xbf16>
    %cst_169 = arith.constant dense<0.000000e+00> : vector<16x256xf32>
    %276 = tpu.matmul %273, %275, %cst_169 {dimension_numbers = #tpu.dot_dimension_numbers<[1], [0], [0], [1], [0, 0, 1, 1], [], []>} : vector<16x36xbf16>, vector<36x256xbf16>, vector<16x256xf32> -> vector<16x256xf32>
    %277 = arith.addf %271, %276 : vector<16x256xf32>
    %278 = vector.extract_strided_slice %194 {offsets = [224, 0], sizes = [16, 36], strides = [1, 1]} : vector<400x36xf32> to vector<16x36xf32>
    %279 = arith.truncf %278 : vector<16x36xf32> to vector<16x36xbf16>
    %c14 = arith.constant 14 : index
    %c0_170 = arith.constant 0 : index
    %c0_171 = arith.constant 0 : index
    %280 = vector.load %arg18[%c14, %c0_170, %c0_171] : memref<25x36x256xbf16, #tpu.memory_space<vmem>>, vector<1x36x256xbf16>
    %281 = vector.shape_cast %280 : vector<1x36x256xbf16> to vector<36x256xbf16>
    %cst_172 = arith.constant dense<0.000000e+00> : vector<16x256xf32>
    %282 = tpu.matmul %279, %281, %cst_172 {dimension_numbers = #tpu.dot_dimension_numbers<[1], [0], [0], [1], [0, 0, 1, 1], [], []>} : vector<16x36xbf16>, vector<36x256xbf16>, vector<16x256xf32> -> vector<16x256xf32>
    %283 = arith.addf %277, %282 : vector<16x256xf32>
    %284 = vector.extract_strided_slice %194 {offsets = [240, 0], sizes = [16, 36], strides = [1, 1]} : vector<400x36xf32> to vector<16x36xf32>
    %285 = arith.truncf %284 : vector<16x36xf32> to vector<16x36xbf16>
    %c15 = arith.constant 15 : index
    %c0_173 = arith.constant 0 : index
    %c0_174 = arith.constant 0 : index
    %286 = vector.load %arg18[%c15, %c0_173, %c0_174] : memref<25x36x256xbf16, #tpu.memory_space<vmem>>, vector<1x36x256xbf16>
    %287 = vector.shape_cast %286 : vector<1x36x256xbf16> to vector<36x256xbf16>
    %cst_175 = arith.constant dense<0.000000e+00> : vector<16x256xf32>
    %288 = tpu.matmul %285, %287, %cst_175 {dimension_numbers = #tpu.dot_dimension_numbers<[1], [0], [0], [1], [0, 0, 1, 1], [], []>} : vector<16x36xbf16>, vector<36x256xbf16>, vector<16x256xf32> -> vector<16x256xf32>
    %289 = arith.addf %283, %288 : vector<16x256xf32>
    %290 = vector.extract_strided_slice %194 {offsets = [256, 0], sizes = [16, 36], strides = [1, 1]} : vector<400x36xf32> to vector<16x36xf32>
    %291 = arith.truncf %290 : vector<16x36xf32> to vector<16x36xbf16>
    %c16 = arith.constant 16 : index
    %c0_176 = arith.constant 0 : index
    %c0_177 = arith.constant 0 : index
    %292 = vector.load %arg18[%c16, %c0_176, %c0_177] : memref<25x36x256xbf16, #tpu.memory_space<vmem>>, vector<1x36x256xbf16>
    %293 = vector.shape_cast %292 : vector<1x36x256xbf16> to vector<36x256xbf16>
    %cst_178 = arith.constant dense<0.000000e+00> : vector<16x256xf32>
    %294 = tpu.matmul %291, %293, %cst_178 {dimension_numbers = #tpu.dot_dimension_numbers<[1], [0], [0], [1], [0, 0, 1, 1], [], []>} : vector<16x36xbf16>, vector<36x256xbf16>, vector<16x256xf32> -> vector<16x256xf32>
    %295 = arith.addf %289, %294 : vector<16x256xf32>
    %296 = vector.extract_strided_slice %194 {offsets = [272, 0], sizes = [16, 36], strides = [1, 1]} : vector<400x36xf32> to vector<16x36xf32>
    %297 = arith.truncf %296 : vector<16x36xf32> to vector<16x36xbf16>
    %c17 = arith.constant 17 : index
    %c0_179 = arith.constant 0 : index
    %c0_180 = arith.constant 0 : index
    %298 = vector.load %arg18[%c17, %c0_179, %c0_180] : memref<25x36x256xbf16, #tpu.memory_space<vmem>>, vector<1x36x256xbf16>
    %299 = vector.shape_cast %298 : vector<1x36x256xbf16> to vector<36x256xbf16>
    %cst_181 = arith.constant dense<0.000000e+00> : vector<16x256xf32>
    %300 = tpu.matmul %297, %299, %cst_181 {dimension_numbers = #tpu.dot_dimension_numbers<[1], [0], [0], [1], [0, 0, 1, 1], [], []>} : vector<16x36xbf16>, vector<36x256xbf16>, vector<16x256xf32> -> vector<16x256xf32>
    %301 = arith.addf %295, %300 : vector<16x256xf32>
    %302 = vector.extract_strided_slice %194 {offsets = [288, 0], sizes = [16, 36], strides = [1, 1]} : vector<400x36xf32> to vector<16x36xf32>
    %303 = arith.truncf %302 : vector<16x36xf32> to vector<16x36xbf16>
    %c18 = arith.constant 18 : index
    %c0_182 = arith.constant 0 : index
    %c0_183 = arith.constant 0 : index
    %304 = vector.load %arg18[%c18, %c0_182, %c0_183] : memref<25x36x256xbf16, #tpu.memory_space<vmem>>, vector<1x36x256xbf16>
    %305 = vector.shape_cast %304 : vector<1x36x256xbf16> to vector<36x256xbf16>
    %cst_184 = arith.constant dense<0.000000e+00> : vector<16x256xf32>
    %306 = tpu.matmul %303, %305, %cst_184 {dimension_numbers = #tpu.dot_dimension_numbers<[1], [0], [0], [1], [0, 0, 1, 1], [], []>} : vector<16x36xbf16>, vector<36x256xbf16>, vector<16x256xf32> -> vector<16x256xf32>
    %307 = arith.addf %301, %306 : vector<16x256xf32>
    %308 = vector.extract_strided_slice %194 {offsets = [304, 0], sizes = [16, 36], strides = [1, 1]} : vector<400x36xf32> to vector<16x36xf32>
    %309 = arith.truncf %308 : vector<16x36xf32> to vector<16x36xbf16>
    %c19 = arith.constant 19 : index
    %c0_185 = arith.constant 0 : index
    %c0_186 = arith.constant 0 : index
    %310 = vector.load %arg18[%c19, %c0_185, %c0_186] : memref<25x36x256xbf16, #tpu.memory_space<vmem>>, vector<1x36x256xbf16>
    %311 = vector.shape_cast %310 : vector<1x36x256xbf16> to vector<36x256xbf16>
    %cst_187 = arith.constant dense<0.000000e+00> : vector<16x256xf32>
    %312 = tpu.matmul %309, %311, %cst_187 {dimension_numbers = #tpu.dot_dimension_numbers<[1], [0], [0], [1], [0, 0, 1, 1], [], []>} : vector<16x36xbf16>, vector<36x256xbf16>, vector<16x256xf32> -> vector<16x256xf32>
    %313 = arith.addf %307, %312 : vector<16x256xf32>
    %314 = vector.extract_strided_slice %194 {offsets = [320, 0], sizes = [16, 36], strides = [1, 1]} : vector<400x36xf32> to vector<16x36xf32>
    %315 = arith.truncf %314 : vector<16x36xf32> to vector<16x36xbf16>
    %c20 = arith.constant 20 : index
    %c0_188 = arith.constant 0 : index
    %c0_189 = arith.constant 0 : index
    %316 = vector.load %arg18[%c20, %c0_188, %c0_189] : memref<25x36x256xbf16, #tpu.memory_space<vmem>>, vector<1x36x256xbf16>
    %317 = vector.shape_cast %316 : vector<1x36x256xbf16> to vector<36x256xbf16>
    %cst_190 = arith.constant dense<0.000000e+00> : vector<16x256xf32>
    %318 = tpu.matmul %315, %317, %cst_190 {dimension_numbers = #tpu.dot_dimension_numbers<[1], [0], [0], [1], [0, 0, 1, 1], [], []>} : vector<16x36xbf16>, vector<36x256xbf16>, vector<16x256xf32> -> vector<16x256xf32>
    %319 = arith.addf %313, %318 : vector<16x256xf32>
    %320 = vector.extract_strided_slice %194 {offsets = [336, 0], sizes = [16, 36], strides = [1, 1]} : vector<400x36xf32> to vector<16x36xf32>
    %321 = arith.truncf %320 : vector<16x36xf32> to vector<16x36xbf16>
    %c21 = arith.constant 21 : index
    %c0_191 = arith.constant 0 : index
    %c0_192 = arith.constant 0 : index
    %322 = vector.load %arg18[%c21, %c0_191, %c0_192] : memref<25x36x256xbf16, #tpu.memory_space<vmem>>, vector<1x36x256xbf16>
    %323 = vector.shape_cast %322 : vector<1x36x256xbf16> to vector<36x256xbf16>
    %cst_193 = arith.constant dense<0.000000e+00> : vector<16x256xf32>
    %324 = tpu.matmul %321, %323, %cst_193 {dimension_numbers = #tpu.dot_dimension_numbers<[1], [0], [0], [1], [0, 0, 1, 1], [], []>} : vector<16x36xbf16>, vector<36x256xbf16>, vector<16x256xf32> -> vector<16x256xf32>
    %325 = arith.addf %319, %324 : vector<16x256xf32>
    %326 = vector.extract_strided_slice %194 {offsets = [352, 0], sizes = [16, 36], strides = [1, 1]} : vector<400x36xf32> to vector<16x36xf32>
    %327 = arith.truncf %326 : vector<16x36xf32> to vector<16x36xbf16>
    %c22 = arith.constant 22 : index
    %c0_194 = arith.constant 0 : index
    %c0_195 = arith.constant 0 : index
    %328 = vector.load %arg18[%c22, %c0_194, %c0_195] : memref<25x36x256xbf16, #tpu.memory_space<vmem>>, vector<1x36x256xbf16>
    %329 = vector.shape_cast %328 : vector<1x36x256xbf16> to vector<36x256xbf16>
    %cst_196 = arith.constant dense<0.000000e+00> : vector<16x256xf32>
    %330 = tpu.matmul %327, %329, %cst_196 {dimension_numbers = #tpu.dot_dimension_numbers<[1], [0], [0], [1], [0, 0, 1, 1], [], []>} : vector<16x36xbf16>, vector<36x256xbf16>, vector<16x256xf32> -> vector<16x256xf32>
    %331 = arith.addf %325, %330 : vector<16x256xf32>
    %332 = vector.extract_strided_slice %194 {offsets = [368, 0], sizes = [16, 36], strides = [1, 1]} : vector<400x36xf32> to vector<16x36xf32>
    %333 = arith.truncf %332 : vector<16x36xf32> to vector<16x36xbf16>
    %c23 = arith.constant 23 : index
    %c0_197 = arith.constant 0 : index
    %c0_198 = arith.constant 0 : index
    %334 = vector.load %arg18[%c23, %c0_197, %c0_198] : memref<25x36x256xbf16, #tpu.memory_space<vmem>>, vector<1x36x256xbf16>
    %335 = vector.shape_cast %334 : vector<1x36x256xbf16> to vector<36x256xbf16>
    %cst_199 = arith.constant dense<0.000000e+00> : vector<16x256xf32>
    %336 = tpu.matmul %333, %335, %cst_199 {dimension_numbers = #tpu.dot_dimension_numbers<[1], [0], [0], [1], [0, 0, 1, 1], [], []>} : vector<16x36xbf16>, vector<36x256xbf16>, vector<16x256xf32> -> vector<16x256xf32>
    %337 = arith.addf %331, %336 : vector<16x256xf32>
    %338 = vector.extract_strided_slice %194 {offsets = [384, 0], sizes = [16, 36], strides = [1, 1]} : vector<400x36xf32> to vector<16x36xf32>
    %339 = arith.truncf %338 : vector<16x36xf32> to vector<16x36xbf16>
    %c24 = arith.constant 24 : index
    %c0_200 = arith.constant 0 : index
    %c0_201 = arith.constant 0 : index
    %340 = vector.load %arg18[%c24, %c0_200, %c0_201] : memref<25x36x256xbf16, #tpu.memory_space<vmem>>, vector<1x36x256xbf16>
    %341 = vector.shape_cast %340 : vector<1x36x256xbf16> to vector<36x256xbf16>
    %cst_202 = arith.constant dense<0.000000e+00> : vector<16x256xf32>
    %342 = tpu.matmul %339, %341, %cst_202 {dimension_numbers = #tpu.dot_dimension_numbers<[1], [0], [0], [1], [0, 0, 1, 1], [], []>} : vector<16x36xbf16>, vector<36x256xbf16>, vector<16x256xf32> -> vector<16x256xf32>
    %343 = arith.addf %337, %342 : vector<16x256xf32>
    %c0_203 = arith.constant 0 : index
    %c0_204 = arith.constant 0 : index
    %344 = vector.load %arg19[%c0_203, %c0_204] : memref<16x1xf32, #tpu.memory_space<vmem>>, vector<16x1xf32>
    %345 = vector.broadcast %344 : vector<16x1xf32> to vector<16x256xf32>
    %346 = arith.addf %343, %345 : vector<16x256xf32>
    %347 = arith.truncf %346 : vector<16x256xf32> to vector<16x256xbf16>
    %c0_205 = arith.constant 0 : index
    %c0_206 = arith.constant 0 : index
    %348 = vector.load %arg20[%c0_205, %c0_206] : memref<72x16xbf16, #tpu.memory_space<vmem>>, vector<72x16xbf16>
    %cst_207 = arith.constant dense<0.000000e+00> : vector<72x256xf32>
    %349 = tpu.matmul %348, %347, %cst_207 {dimension_numbers = #tpu.dot_dimension_numbers<[1], [0], [0], [1], [0, 0, 1, 1], [], []>} : vector<72x16xbf16>, vector<16x256xbf16>, vector<72x256xf32> -> vector<72x256xf32>
    %c0_208 = arith.constant 0 : index
    %c0_209 = arith.constant 0 : index
    %350 = vector.load %arg21[%c0_208, %c0_209] : memref<72x48xbf16, #tpu.memory_space<vmem>>, vector<72x48xbf16>
    %cst_210 = arith.constant dense<0.000000e+00> : vector<72x256xf32>
    %351 = tpu.matmul %350, %59, %cst_210 {dimension_numbers = #tpu.dot_dimension_numbers<[1], [0], [0], [1], [0, 0, 1, 1], [], []>} : vector<72x48xbf16>, vector<48x256xbf16>, vector<72x256xf32> -> vector<72x256xf32>
    %352 = arith.addf %349, %351 : vector<72x256xf32>
    %353 = vector.extract_strided_slice %352 {offsets = [0, 0], sizes = [8, 256], strides = [1, 1]} : vector<72x256xf32> to vector<8x256xf32>
    %354 = arith.truncf %353 : vector<8x256xf32> to vector<8x256xbf16>
    %c0_211 = arith.constant 0 : index
    %c0_212 = arith.constant 0 : index
    %c0_213 = arith.constant 0 : index
    %355 = vector.load %arg22[%c0_211, %c0_212, %c0_213] : memref<9x256x64xbf16, #tpu.memory_space<vmem>>, vector<1x256x64xbf16>
    %356 = vector.shape_cast %355 : vector<1x256x64xbf16> to vector<256x64xbf16>
    %cst_214 = arith.constant dense<0.000000e+00> : vector<8x64xf32>
    %357 = tpu.matmul %354, %356, %cst_214 {dimension_numbers = #tpu.dot_dimension_numbers<[1], [0], [0], [1], [0, 0, 1, 1], [], []>} : vector<8x256xbf16>, vector<256x64xbf16>, vector<8x64xf32> -> vector<8x64xf32>
    %358 = vector.extract_strided_slice %352 {offsets = [8, 0], sizes = [8, 256], strides = [1, 1]} : vector<72x256xf32> to vector<8x256xf32>
    %359 = arith.truncf %358 : vector<8x256xf32> to vector<8x256xbf16>
    %c1_215 = arith.constant 1 : index
    %c0_216 = arith.constant 0 : index
    %c0_217 = arith.constant 0 : index
    %360 = vector.load %arg22[%c1_215, %c0_216, %c0_217] : memref<9x256x64xbf16, #tpu.memory_space<vmem>>, vector<1x256x64xbf16>
    %361 = vector.shape_cast %360 : vector<1x256x64xbf16> to vector<256x64xbf16>
    %cst_218 = arith.constant dense<0.000000e+00> : vector<8x64xf32>
    %362 = tpu.matmul %359, %361, %cst_218 {dimension_numbers = #tpu.dot_dimension_numbers<[1], [0], [0], [1], [0, 0, 1, 1], [], []>} : vector<8x256xbf16>, vector<256x64xbf16>, vector<8x64xf32> -> vector<8x64xf32>
    %363 = arith.addf %357, %362 : vector<8x64xf32>
    %364 = vector.extract_strided_slice %352 {offsets = [16, 0], sizes = [8, 256], strides = [1, 1]} : vector<72x256xf32> to vector<8x256xf32>
    %365 = arith.truncf %364 : vector<8x256xf32> to vector<8x256xbf16>
    %c2_219 = arith.constant 2 : index
    %c0_220 = arith.constant 0 : index
    %c0_221 = arith.constant 0 : index
    %366 = vector.load %arg22[%c2_219, %c0_220, %c0_221] : memref<9x256x64xbf16, #tpu.memory_space<vmem>>, vector<1x256x64xbf16>
    %367 = vector.shape_cast %366 : vector<1x256x64xbf16> to vector<256x64xbf16>
    %cst_222 = arith.constant dense<0.000000e+00> : vector<8x64xf32>
    %368 = tpu.matmul %365, %367, %cst_222 {dimension_numbers = #tpu.dot_dimension_numbers<[1], [0], [0], [1], [0, 0, 1, 1], [], []>} : vector<8x256xbf16>, vector<256x64xbf16>, vector<8x64xf32> -> vector<8x64xf32>
    %369 = arith.addf %363, %368 : vector<8x64xf32>
    %370 = vector.extract_strided_slice %352 {offsets = [24, 0], sizes = [8, 256], strides = [1, 1]} : vector<72x256xf32> to vector<8x256xf32>
    %371 = arith.truncf %370 : vector<8x256xf32> to vector<8x256xbf16>
    %c3_223 = arith.constant 3 : index
    %c0_224 = arith.constant 0 : index
    %c0_225 = arith.constant 0 : index
    %372 = vector.load %arg22[%c3_223, %c0_224, %c0_225] : memref<9x256x64xbf16, #tpu.memory_space<vmem>>, vector<1x256x64xbf16>
    %373 = vector.shape_cast %372 : vector<1x256x64xbf16> to vector<256x64xbf16>
    %cst_226 = arith.constant dense<0.000000e+00> : vector<8x64xf32>
    %374 = tpu.matmul %371, %373, %cst_226 {dimension_numbers = #tpu.dot_dimension_numbers<[1], [0], [0], [1], [0, 0, 1, 1], [], []>} : vector<8x256xbf16>, vector<256x64xbf16>, vector<8x64xf32> -> vector<8x64xf32>
    %375 = arith.addf %369, %374 : vector<8x64xf32>
    %376 = vector.extract_strided_slice %352 {offsets = [32, 0], sizes = [8, 256], strides = [1, 1]} : vector<72x256xf32> to vector<8x256xf32>
    %377 = arith.truncf %376 : vector<8x256xf32> to vector<8x256xbf16>
    %c4_227 = arith.constant 4 : index
    %c0_228 = arith.constant 0 : index
    %c0_229 = arith.constant 0 : index
    %378 = vector.load %arg22[%c4_227, %c0_228, %c0_229] : memref<9x256x64xbf16, #tpu.memory_space<vmem>>, vector<1x256x64xbf16>
    %379 = vector.shape_cast %378 : vector<1x256x64xbf16> to vector<256x64xbf16>
    %cst_230 = arith.constant dense<0.000000e+00> : vector<8x64xf32>
    %380 = tpu.matmul %377, %379, %cst_230 {dimension_numbers = #tpu.dot_dimension_numbers<[1], [0], [0], [1], [0, 0, 1, 1], [], []>} : vector<8x256xbf16>, vector<256x64xbf16>, vector<8x64xf32> -> vector<8x64xf32>
    %381 = arith.addf %375, %380 : vector<8x64xf32>
    %382 = vector.extract_strided_slice %352 {offsets = [40, 0], sizes = [8, 256], strides = [1, 1]} : vector<72x256xf32> to vector<8x256xf32>
    %383 = arith.truncf %382 : vector<8x256xf32> to vector<8x256xbf16>
    %c5_231 = arith.constant 5 : index
    %c0_232 = arith.constant 0 : index
    %c0_233 = arith.constant 0 : index
    %384 = vector.load %arg22[%c5_231, %c0_232, %c0_233] : memref<9x256x64xbf16, #tpu.memory_space<vmem>>, vector<1x256x64xbf16>
    %385 = vector.shape_cast %384 : vector<1x256x64xbf16> to vector<256x64xbf16>
    %cst_234 = arith.constant dense<0.000000e+00> : vector<8x64xf32>
    %386 = tpu.matmul %383, %385, %cst_234 {dimension_numbers = #tpu.dot_dimension_numbers<[1], [0], [0], [1], [0, 0, 1, 1], [], []>} : vector<8x256xbf16>, vector<256x64xbf16>, vector<8x64xf32> -> vector<8x64xf32>
    %387 = arith.addf %381, %386 : vector<8x64xf32>
    %388 = vector.extract_strided_slice %352 {offsets = [48, 0], sizes = [8, 256], strides = [1, 1]} : vector<72x256xf32> to vector<8x256xf32>
    %389 = arith.truncf %388 : vector<8x256xf32> to vector<8x256xbf16>
    %c6_235 = arith.constant 6 : index
    %c0_236 = arith.constant 0 : index
    %c0_237 = arith.constant 0 : index
    %390 = vector.load %arg22[%c6_235, %c0_236, %c0_237] : memref<9x256x64xbf16, #tpu.memory_space<vmem>>, vector<1x256x64xbf16>
    %391 = vector.shape_cast %390 : vector<1x256x64xbf16> to vector<256x64xbf16>
    %cst_238 = arith.constant dense<0.000000e+00> : vector<8x64xf32>
    %392 = tpu.matmul %389, %391, %cst_238 {dimension_numbers = #tpu.dot_dimension_numbers<[1], [0], [0], [1], [0, 0, 1, 1], [], []>} : vector<8x256xbf16>, vector<256x64xbf16>, vector<8x64xf32> -> vector<8x64xf32>
    %393 = arith.addf %387, %392 : vector<8x64xf32>
    %394 = vector.extract_strided_slice %352 {offsets = [56, 0], sizes = [8, 256], strides = [1, 1]} : vector<72x256xf32> to vector<8x256xf32>
    %395 = arith.truncf %394 : vector<8x256xf32> to vector<8x256xbf16>
    %c7_239 = arith.constant 7 : index
    %c0_240 = arith.constant 0 : index
    %c0_241 = arith.constant 0 : index
    %396 = vector.load %arg22[%c7_239, %c0_240, %c0_241] : memref<9x256x64xbf16, #tpu.memory_space<vmem>>, vector<1x256x64xbf16>
    %397 = vector.shape_cast %396 : vector<1x256x64xbf16> to vector<256x64xbf16>
    %cst_242 = arith.constant dense<0.000000e+00> : vector<8x64xf32>
    %398 = tpu.matmul %395, %397, %cst_242 {dimension_numbers = #tpu.dot_dimension_numbers<[1], [0], [0], [1], [0, 0, 1, 1], [], []>} : vector<8x256xbf16>, vector<256x64xbf16>, vector<8x64xf32> -> vector<8x64xf32>
    %399 = arith.addf %393, %398 : vector<8x64xf32>
    %400 = vector.extract_strided_slice %352 {offsets = [64, 0], sizes = [8, 256], strides = [1, 1]} : vector<72x256xf32> to vector<8x256xf32>
    %401 = arith.truncf %400 : vector<8x256xf32> to vector<8x256xbf16>
    %c8_243 = arith.constant 8 : index
    %c0_244 = arith.constant 0 : index
    %c0_245 = arith.constant 0 : index
    %402 = vector.load %arg22[%c8_243, %c0_244, %c0_245] : memref<9x256x64xbf16, #tpu.memory_space<vmem>>, vector<1x256x64xbf16>
    %403 = vector.shape_cast %402 : vector<1x256x64xbf16> to vector<256x64xbf16>
    %cst_246 = arith.constant dense<0.000000e+00> : vector<8x64xf32>
    %404 = tpu.matmul %401, %403, %cst_246 {dimension_numbers = #tpu.dot_dimension_numbers<[1], [0], [0], [1], [0, 0, 1, 1], [], []>} : vector<8x256xbf16>, vector<256x64xbf16>, vector<8x64xf32> -> vector<8x64xf32>
    %405 = arith.addf %399, %404 : vector<8x64xf32>
    %c0_247 = arith.constant 0 : index
    %c0_248 = arith.constant 0 : index
    %406 = vector.load %arg23[%c0_247, %c0_248] : memref<8x1xf32, #tpu.memory_space<vmem>>, vector<8x1xf32>
    %407 = vector.broadcast %406 : vector<8x1xf32> to vector<8x64xf32>
    %408 = arith.addf %405, %407 : vector<8x64xf32>
    %c0_249 = arith.constant 0 : index
    %c0_250 = arith.constant 0 : index
    %409 = vector.load %arg24[%c0_249, %c0_250] : memref<8x64xf32, #tpu.memory_space<vmem>>, vector<8x64xf32>
    tpu.vector_store %arg24[%c0_249, %c0_250], %408 {strides = array<i32>} : memref<8x64xf32, #tpu.memory_space<vmem>>, vector<8x64xf32>,
    return
  }
  func.func @transform_0(%arg0: i32) -> (i32, i32) {
    %c0_i32 = arith.constant 0 : i32
    %c0_i32_0 = arith.constant 0 : i32
    return %arg0, %c0_i32 : i32, i32
  }
  func.func @transform_1(%arg0: i32) -> (i32, i32) {
    %c0_i32 = arith.constant 0 : i32
    %c0_i32_0 = arith.constant 0 : i32
    return %arg0, %c0_i32 : i32, i32
  }
  func.func @transform_2(%arg0: i32) -> (i32, i32) {
    %c0_i32 = arith.constant 0 : i32
    %c0_i32_0 = arith.constant 0 : i32
    return %arg0, %c0_i32 : i32, i32
  }
  func.func @transform_3(%arg0: i32) -> (i32, i32) {
    %c0_i32 = arith.constant 0 : i32
    %c0_i32_0 = arith.constant 0 : i32
    %c0_i32_1 = arith.constant 0 : i32
    return %c0_i32, %c0_i32_0 : i32, i32
  }
  func.func @transform_4(%arg0: i32) -> (i32, i32) {
    %c0_i32 = arith.constant 0 : i32
    %c0_i32_0 = arith.constant 0 : i32
    %c0_i32_1 = arith.constant 0 : i32
    return %c0_i32, %c0_i32_0 : i32, i32
  }
  func.func @transform_5(%arg0: i32) -> (i32, i32) {
    %c0_i32 = arith.constant 0 : i32
    %c0_i32_0 = arith.constant 0 : i32
    %c0_i32_1 = arith.constant 0 : i32
    return %c0_i32, %c0_i32_0 : i32, i32
  }
  func.func @transform_6(%arg0: i32) -> (i32, i32) {
    %c0_i32 = arith.constant 0 : i32
    %c0_i32_0 = arith.constant 0 : i32
    %c0_i32_1 = arith.constant 0 : i32
    return %c0_i32, %c0_i32_0 : i32, i32
  }
  func.func @transform_7(%arg0: i32) -> (i32, i32) {
    %c0_i32 = arith.constant 0 : i32
    %c0_i32_0 = arith.constant 0 : i32
    %c0_i32_1 = arith.constant 0 : i32
    return %c0_i32, %c0_i32_0 : i32, i32
  }
  func.func @transform_8(%arg0: i32) -> (i32, i32) {
    %c0_i32 = arith.constant 0 : i32
    %c0_i32_0 = arith.constant 0 : i32
    %c0_i32_1 = arith.constant 0 : i32
    return %c0_i32, %c0_i32_0 : i32, i32
  }
  func.func @transform_9(%arg0: i32) -> (i32, i32) {
    %c0_i32 = arith.constant 0 : i32
    %c0_i32_0 = arith.constant 0 : i32
    %c0_i32_1 = arith.constant 0 : i32
    return %c0_i32, %c0_i32_0 : i32, i32
  }
  func.func @transform_10(%arg0: i32) -> (i32, i32, i32) {
    %c0_i32 = arith.constant 0 : i32
    %c0_i32_0 = arith.constant 0 : i32
    %c0_i32_1 = arith.constant 0 : i32
    %c0_i32_2 = arith.constant 0 : i32
    return %c0_i32, %c0_i32_0, %c0_i32_1 : i32, i32, i32
  }
  func.func @transform_11(%arg0: i32) -> (i32, i32) {
    %c0_i32 = arith.constant 0 : i32
    %c0_i32_0 = arith.constant 0 : i32
    %c0_i32_1 = arith.constant 0 : i32
    return %c0_i32, %c0_i32_0 : i32, i32
  }
  func.func @transform_12(%arg0: i32) -> (i32, i32) {
    %c0_i32 = arith.constant 0 : i32
    %c0_i32_0 = arith.constant 0 : i32
    %c0_i32_1 = arith.constant 0 : i32
    return %c0_i32, %c0_i32_0 : i32, i32
  }
  func.func @transform_13(%arg0: i32) -> (i32, i32) {
    %c0_i32 = arith.constant 0 : i32
    %c0_i32_0 = arith.constant 0 : i32
    %c0_i32_1 = arith.constant 0 : i32
    return %c0_i32, %c0_i32_0 : i32, i32
  }
  func.func @transform_14(%arg0: i32) -> (i32, i32, i32) {
    %c0_i32 = arith.constant 0 : i32
    %c0_i32_0 = arith.constant 0 : i32
    %c0_i32_1 = arith.constant 0 : i32
    %c0_i32_2 = arith.constant 0 : i32
    return %c0_i32, %c0_i32_0, %c0_i32_1 : i32, i32, i32
  }
  func.func @transform_15(%arg0: i32) -> (i32, i32) {
    %c0_i32 = arith.constant 0 : i32
    %c0_i32_0 = arith.constant 0 : i32
    %c0_i32_1 = arith.constant 0 : i32
    return %c0_i32, %c0_i32_0 : i32, i32
  }
  func.func @transform_16(%arg0: i32) -> (i32, i32) {
    %c0_i32 = arith.constant 0 : i32
    %c0_i32_0 = arith.constant 0 : i32
    %c0_i32_1 = arith.constant 0 : i32
    return %c0_i32, %c0_i32_0 : i32, i32
  }
  func.func @transform_17(%arg0: i32) -> (i32, i32, i32) {
    %c0_i32 = arith.constant 0 : i32
    %c0_i32_0 = arith.constant 0 : i32
    %c0_i32_1 = arith.constant 0 : i32
    %c0_i32_2 = arith.constant 0 : i32
    return %c0_i32, %c0_i32_0, %c0_i32_1 : i32, i32, i32
  }
  func.func @transform_18(%arg0: i32) -> (i32, i32) {
    %c0_i32 = arith.constant 0 : i32
    %c0_i32_0 = arith.constant 0 : i32
    %c0_i32_1 = arith.constant 0 : i32
    return %c0_i32, %c0_i32_0 : i32, i32
  }
  func.func @transform_19(%arg0: i32) -> (i32, i32) {
    %c0_i32 = arith.constant 0 : i32
    %c0_i32_0 = arith.constant 0 : i32
    %c0_i32_1 = arith.constant 0 : i32
    return %c0_i32, %c0_i32_0 : i32, i32
  }
  func.func @transform_20(%arg0: i32) -> (i32, i32) {
    %c0_i32 = arith.constant 0 : i32
    %c0_i32_0 = arith.constant 0 : i32
    %c0_i32_1 = arith.constant 0 : i32
    return %c0_i32, %c0_i32_0 : i32, i32
  }
  func.func @transform_21(%arg0: i32) -> (i32, i32, i32) {
    %c0_i32 = arith.constant 0 : i32
    %c0_i32_0 = arith.constant 0 : i32
    %c0_i32_1 = arith.constant 0 : i32
    %c0_i32_2 = arith.constant 0 : i32
    return %c0_i32, %c0_i32_0, %c0_i32_1 : i32, i32, i32
  }
  func.func @transform_22(%arg0: i32) -> (i32, i32) {
    %c0_i32 = arith.constant 0 : i32
    %c0_i32_0 = arith.constant 0 : i32
    %c0_i32_1 = arith.constant 0 : i32
    return %c0_i32, %c0_i32_0 : i32, i32
  }
  func.func @transform_23(%arg0: i32) -> (i32, i32) {
    %c0_i32 = arith.constant 0 : i32
    %c0_i32_0 = arith.constant 0 : i32
    return %arg0, %c0_i32 : i32, i32
  }
}

</mosaic_0001>

<bundles_post_ra>
// kernel: decoder_forward.1
= control target key start
LH: loop header
LB: loop body
LE: loop exit
PB: predicated region body
PF: predicated region fallthrough
CT: control target
= control target key end

     0   :  { %s13001_s0 = inlined_call_operand.vmem [shape: f32[768,16], index: 0, kind: input, shape index: {}]   ;;  %s13002_s1 = inlined_call_operand.vmem [shape: f32[384,64], index: 1, kind: input, shape index: {}]   ;;  %s13003_s2 = inlined_call_operand.vmem [shape: f32[192,256], index: 2, kind: input, shape index: {}]   ;;  %s13004_s3 = inlined_call_operand.vmem [shape: bf16[48,384], index: 3, kind: input, shape index: {}]   ;;  %s13005_s4 = inlined_call_operand.vmem [shape: f32[48,1], index: 4, kind: input, shape index: {}]   ;;  %s13006_s5 = inlined_call_operand.vmem [shape: bf16[48,192], index: 5, kind: input, shape index: {}]   ;;  %s13007_s6 = inlined_call_operand.vmem [shape: f32[48,1], index: 6, kind: input, shape index: {}]   ;;  %s13008_s7 = inlined_call_operand.vmem [shape: bf16[48,96], index: 7, kind: input, shape index: {}]   ;;  %s13009_s8 = inlined_call_operand.vmem [shape: f32[48,1], index: 8, kind: input, shape index: {}]   ;;  %s13010_s9 = inlined_call_operand.vmem [shape: bf16[144,48], index: 9, kind: input, shape index: {}]   ;;  %s13011_s10 = inlined_call_operand.vmem [shape: bf16[9,16,64], index: 10, kind: input, shape index: {}]   ;;  %s13012_s11 = inlined_call_operand.vmem [shape: f32[16,1], index: 11, kind: input, shape index: {}]   ;;  %s13013_s12 = inlined_call_operand.vmem [shape: bf16[144,16], index: 12, kind: input, shape index: {}]   ;;  %s13014_s13 = inlined_call_operand.vmem [shape: bf16[144,48], index: 13, kind: input, shape index: {}]   ;;  %s13015_s14 = inlined_call_operand.vmem [shape: bf16[9,64,36], index: 14, kind: input, shape index: {}]   ;;  %s13016_s15 = inlined_call_operand.vmem [shape: f32[16,1], index: 15, kind: input, shape index: {}]   ;;  %s13017_s16 = inlined_call_operand.vmem [shape: bf16[400,16], index: 16, kind: input, shape index: {}]   ;;  %s13018_s17 = inlined_call_operand.vmem [shape: bf16[25,36,256], index: 17, kind: input, shape index: {}]   ;;  %s13019_s18 = inlined_call_operand.vmem [shape: f32[16,1], index: 18, kind: input, shape index: {}]   ;;  %s13020_s19 = inlined_call_operand.vmem [shape: bf16[72,16], index: 19, kind: input, shape index: {}]   ;;  %s13021_s20 = inlined_call_operand.vmem [shape: bf16[72,48], index: 20, kind: input, shape index: {}]   ;;  %s13022_s21 = inlined_call_operand.vmem [shape: bf16[9,256,64], index: 21, kind: input, shape index: {}]   ;;  %s13023_s22 = inlined_call_operand.vmem [shape: f32[8,1], index: 22, kind: input, shape index: {}]   ;;  %s13024_s23 = inlined_call_operand.vmem [shape: f32[16,64], index: 23, kind: output, shape index: {}]  }
   0x1   :  { %13032 = sst [smem:[#allocation2_spill]] %s13001_s0 }
   0x2   :  { %13033 = sst [smem:[#allocation3_spill]] %s13002_s1 }
   0x3   :  { %13034 = sst [smem:[#allocation4_spill]] %s13003_s2 }
   0x4   :  { %13035 = sst [smem:[#allocation5_spill]] %s13004_s3 }
   0x5   :  { %13036 = sst [smem:[#allocation6_spill]] %s13005_s4  ;;  %s10663_s4 = smov 0  }
   0x6   :  { %13037 = sst [smem:[#allocation7_spill]] %s13006_s5 }
   0x7   :  { %13038 = sst [smem:[#allocation8_spill]] %s13007_s6 }
   0x8   :  { %13039 = sst [smem:[#allocation9_spill]] %s13008_s7 }
   0x9 LB: > { %s10669_s30 = sadd.s32 4294967295, %s10538_s4   ;;  %p8014_p0 = scmp.ge.s32.totalorder %s10538_s4, 1  ;;  %s10538_s4 = sphi %s10663_s4, %s33_s4  }
   0xa   : > { %p661_p1 = scmp.lt.s32.totalorder %s10538_s4, 3 }
   0xc   : > { %p662_p2 = pnand %p8014_p0, %p661_p1 }
   0xd   : > { %s735_s24 = smul.u32 (!%p662_p2), 48, %s10669_s30  ;;  %v10540_v0 = vmov (!%p662_p2), 0.0   ;;  %vm10541_vm0 = vmmov (!%p662_p2), 0   ;;  %s13040_s1 = sld [smem:[#allocation5_spill]] (!%p662_p2)  ;;  %v10542_v2 = vmov (!%p662_p2), 0   ;;  %vm1197_vm1 = vcmask (!%p662_p2), 523264  }
   0xe   : > { %665 = sbr.rel (%p662_p2) target bundleno = 2727 (0xaa7), region = 112  ;;  %9426 = vmatprep.subr.bf16.mxu1 (!%p662_p2), %v10540_v0  ;;  %9442 = vmatprep.mubr.msk.bf16.mxu1 (!%p662_p2), %vm10541_vm0, %v10540_v0  ;;  %s13041_s27 = sld [smem:[#allocation2_spill]] (!%p662_p2)  ;;  %vm1408_vm2 = vcmask (!%p662_p2), 785408   ;;  %vm1646_vm10 = vcmask (!%p662_p2), 392192  }
   0xf   : > { %p736_p3 = scmp.lt.s32.totalorder (!%p662_p2), %s735_s24, 95  ;;  %10003 = vset.pattern.permute.xlu0 (!%p662_p2), %v10542_v2  ;;  %10004 = vset.pattern.permute.xlu1 (!%p662_p2), %v10542_v2  ;;  %s747_s28 = smul.u32 (!%p662_p2), 12, %s10669_s30 }
  0x10   : > { %s741_s29 = smul.u32 (!%p662_p2), 24, %s10669_s30  ;;  %p754_p6 = scmp.lt.s32.totalorder (!%p662_p2), %s10669_s30, 1 }
  0x11   : > { %p10720_p4 = scmp.lt.s32.totalorder (!%p662_p2), %s747_s28, 23 }
  0x12   : > { %p10732_p5 = scmp.lt.s32.totalorder (!%p662_p2), %s741_s29, 47 }
  0x13   : > { %v10007_v1 = vld [vmem:[%s13040_s1 + $0x4] ss:$12 sps:$4 sm:$0xff] (!%p662_p2)  }
  0x14   : > { %959 = vmatprep.mubr.bf16.mxu0 (!%p662_p2), %v10007_v1 }
  0x15   : > { %s13051_s24 = smov (!%p736_p3, %s735_s24), 95  ;;  %s13053_s28 = smov (!%p10720_p4, %s747_s28), 23 }
  0x16   : > { %s8015_s26 = sshll.u32 %s13051_s24, 3  ;;  %s13055_s29 = smov (!%p10732_p5, %s741_s29), 47 }
  0x17   : > { %s10685_s7 = scalar_lea.vmem %s13041_s27, %s8015_s26  ;;  %s9059_s24 = sshll.u32 %s13053_s28, 4 }
  0x18   : > { %v787_v3 = vld [vmem:[%s10685_s7 + $0x80] sm:$0xff]  ;;  %v788_v4 = vld [vmem:[%s10685_s7 + $0x88] sm:$0xff]  ;;  %v789_v12 = vld [vmem:[%s10685_s7 + $0x90] sm:$0xff]  ;;  %s13044_s26 = sld [smem:[#allocation4_spill]]  ;;  %s8016_s6 = sshll.u32 %s13055_s29, 3 }
  0x19   : > { %v803_v5 = vld [vmem:[%s10685_s7 + $0x100] sm:$0xff]  ;;  %v827_v6 = vpack.c.bf16 %v788_v4, %v787_v3  ;;  %v804_v7 = vld [vmem:[%s10685_s7 + $0x108] sm:$0xff]  ;;  %v790_v13 = vld [vmem:[%s10685_s7 + $0x98] sm:$0xff]  ;;  %s13045_s29 = sld [smem:[#allocation3_spill]]  ;;  %s13046_s28 = sld [smem:[#allocation6_spill]] }
  0x1a   : > { %v771_v8 = vld [vmem:[%s10685_s7] sm:$0xff]  ;;  %v772_v9 = vld [vmem:[%s10685_s7 + $0x8] sm:$0xff]  ;;  %v835_v10 = vpack.c.bf16 %v804_v7, %v803_v5  ;;  %v805_v14 = vld [vmem:[%s10685_s7 + $0x110] sm:$0xff]  ;;  %v828_v15 = vpack.c.bf16 %v790_v13, %v789_v12  ;;  %s13057_s30 = smov (!%p754_p6, %s10669_s30), 1 }
  0x1b   : > { %v819_v11 = vpack.c.bf16 %v772_v9, %v771_v8  ;;  %9060 = vmatprep.subr.bf16.mxu0 %v827_v6  ;;  %v806_v16 = vld [vmem:[%s10685_s7 + $0x118] sm:$0xff]  ;;  %v773_v17 = vld [vmem:[%s10685_s7 + $0x10] sm:$0xff]  ;;  %v791_v21 = vld [vmem:[%s10685_s7 + $0xa0] sm:$0xff]  ;;  %s8019_s0 = sshll.u32 %s13057_s30, 3 }
  0x1c   : > { %v774_v18 = vld [vmem:[%s10685_s7 + $0x18] sm:$0xff]  ;;  %9427 = vmatpush3.bf16.msra.mxu1 %v835_v10  ;;  %v836_v19 = vpack.c.bf16 %v806_v16, %v805_v14  ;;  %v792_v22 = vld [vmem:[%s10685_s7 + $0xa8] sm:$0xff]  ;;  %v807_v23 = vld [vmem:[%s10685_s7 + $0x120] sm:$0xff] }
  0x1d   : > { %9061 = vmatpush3.bf16.msra.mxu0 %v819_v11  ;;  %v820_v20 = vpack.c.bf16 %v774_v18, %v773_v17  ;;  %9428 = vmatprep.subr.bf16.mxu1 %v10540_v0  ;;  %v829_v24 = vpack.c.bf16 %v792_v22, %v791_v21  ;;  %v808_v25 = vld [vmem:[%s10685_s7 + $0x128] sm:$0xff]  ;;  %v775_v26 = vld [vmem:[%s10685_s7 + $0x20] sm:$0xff]  ;;  %v793_v28 = vld [vmem:[%s10685_s7 + $0xb0] sm:$0xff] }
  0x1e   : > { %9062 = vmatprep.subr.bf16.mxu0 %v828_v15  ;;  %v776_v27 = vld [vmem:[%s10685_s7 + $0x28] sm:$0xff]  ;;  %v794_v29 = vld [vmem:[%s10685_s7 + $0xb8] sm:$0xff]  ;;  %v837_v30 = vpack.c.bf16 %v808_v25, %v807_v23  ;;  %v809_v32 = vld [vmem:[%s10685_s7 + $0x130] sm:$0xff]  ;;  %s10763_s2 = scalar_lea.vmem %s13044_s26, %s9059_s24  ;;  %s13048_s26 = sld [smem:[#allocation9_spill]] }
  0x1f   : > { %v821_v31 = vpack.c.bf16 %v776_v27, %v775_v26  ;;  %v830_v33 = vpack.c.bf16 %v794_v29, %v793_v28  ;;  %v810_v34 = vld [vmem:[%s10685_s7 + $0x138] sm:$0xff]  ;;  %v777_v35 = vld [vmem:[%s10685_s7 + $0x30] sm:$0xff]  ;;  %v795_v37 = vld [vmem:[%s10685_s7 + $0xc0] sm:$0xff]  ;;  %s10776_s3 = scalar_lea.vmem %s13045_s29, %s8016_s6  ;;  %s13047_s29 = sld [smem:[#allocation7_spill]] }
  0x20   : > { %9429 = vmatpush3.bf16.msra.mxu1 %v836_v19  ;;  %v778_v36 = vld [vmem:[%s10685_s7 + $0x38] sm:$0xff]  ;;  %v796_v38 = vld [vmem:[%s10685_s7 + $0xc8] sm:$0xff]  ;;  %v838_v39 = vpack.c.bf16 %v810_v34, %v809_v32  ;;  %v811_v41 = vld [vmem:[%s10685_s7 + $0x140] sm:$0xff] }
  0x21   : > { %9063 = vmatpush3.bf16.msra.mxu0 %v820_v20  ;;  %9430 = vmatprep.subr.bf16.mxu1 %v10540_v0  ;;  %v822_v40 = vpack.c.bf16 %v778_v36, %v777_v35  ;;  %v831_v42 = vpack.c.bf16 %v796_v38, %v795_v37  ;;  %v812_v43 = vld [vmem:[%s10685_s7 + $0x148] sm:$0xff]  ;;  %v779_v44 = vld [vmem:[%s10685_s7 + $0x40] sm:$0xff]  ;;  %v797_v46 = vld [vmem:[%s10685_s7 + $0xd0] sm:$0xff] }
  0x22   : > { %9064 = vmatprep.subr.bf16.mxu0 %v829_v24  ;;  %v780_v45 = vld [vmem:[%s10685_s7 + $0x48] sm:$0xff]  ;;  %v798_v47 = vld [vmem:[%s10685_s7 + $0xd8] sm:$0xff]  ;;  %v839_v48 = vpack.c.bf16 %v812_v43, %v811_v41  ;;  %v813_v50 = vld [vmem:[%s10685_s7 + $0x150] sm:$0xff] }
  0x23   : > { %v823_v49 = vpack.c.bf16 %v780_v45, %v779_v44  ;;  %v832_v51 = vpack.c.bf16 %v798_v47, %v797_v46  ;;  %v814_v52 = vld [vmem:[%s10685_s7 + $0x158] sm:$0xff]  ;;  %v781_v53 = vld [vmem:[%s10685_s7 + $0x50] sm:$0xff]  ;;  %v799_v55 = vld [vmem:[%s10685_s7 + $0xe0] sm:$0xff] }
  0x24   : > { %9431 = vmatpush3.bf16.msra.mxu1 %v837_v30  ;;  %v782_v54 = vld [vmem:[%s10685_s7 + $0x58] sm:$0xff]  ;;  %v800_v56 = vld [vmem:[%s10685_s7 + $0xe8] sm:$0xff]  ;;  %v840_v57 = vpack.c.bf16 %v814_v52, %v813_v50  ;;  %v815_v59 = vld [vmem:[%s10685_s7 + $0x160] sm:$0xff] }
  0x25   : > { %9065 = vmatpush3.bf16.msra.mxu0 %v821_v31  ;;  %9432 = vmatprep.subr.bf16.mxu1 %v10540_v0  ;;  %v824_v58 = vpack.c.bf16 %v782_v54, %v781_v53  ;;  %v833_v60 = vpack.c.bf16 %v800_v56, %v799_v55  ;;  %v816_v61 = vld [vmem:[%s10685_s7 + $0x168] sm:$0xff]  ;;  %v783_v62 = vld [vmem:[%s10685_s7 + $0x60] sm:$0xff]  ;;  %v801_v1 = vld [vmem:[%s10685_s7 + $0xf0] sm:$0xff] }
  0x26   : > { %9066 = vmatprep.subr.bf16.mxu0 %v830_v33  ;;  %v784_v63 = vld [vmem:[%s10685_s7 + $0x68] sm:$0xff]  ;;  %v802_v3 = vld [vmem:[%s10685_s7 + $0xf8] sm:$0xff]  ;;  %v841_v4 = vpack.c.bf16 %v816_v61, %v815_v59  ;;  %v817_v6 = vld [vmem:[%s10685_s7 + $0x170] sm:$0xff] }
  0x27   : > { %v825_v5 = vpack.c.bf16 %v784_v63, %v783_v62  ;;  %v834_v7 = vpack.c.bf16 %v802_v3, %v801_v1  ;;  %v818_v8 = vld [vmem:[%s10685_s7 + $0x178] sm:$0xff]  ;;  %v785_v9 = vld [vmem:[%s10685_s7 + $0x70] sm:$0xff]  ;;  %v1322_v11 = vld [vmem:[%s10763_s2 + $0x8] sm:$0xff] }
  0x28   : > { %9433 = vmatpush3.bf16.msra.mxu1 %v838_v39  ;;  %v786_v10 = vld [vmem:[%s10685_s7 + $0x78] sm:$0xff]  ;;  %v1321_v13 = vld [vmem:[%s10763_s2] sm:$0xff]  ;;  %v842_v14 = vpack.c.bf16 %v818_v8, %v817_v6  ;;  %v1323_v16 = vld [vmem:[%s10763_s2 + $0x10] sm:$0xff] }
  0x29   : > { %9067 = vmatpush3.bf16.msra.mxu0 %v822_v40  ;;  %9434 = vmatprep.subr.bf16.mxu1 %v10540_v0  ;;  %v1324_v12 = vld [vmem:[%s10763_s2 + $0x18] sm:$0xff]  ;;  %v826_v15 = vpack.c.bf16 %v786_v10, %v785_v9  ;;  %v1098_v18 = vld [vmem:[%s10776_s3] sm:$0xff]  ;;  %v1099_v19 = vld [vmem:[%s10776_s3 + $0x8] sm:$0xff]  ;;  %v1345_v24 = vpack.c.bf16 %v1323_v16, %v1321_v13 }
  0x2a   : > { %9068 = vmatprep.subr.bf16.mxu0 %v831_v42  ;;  %v1346_v17 = vpack.c.bf16 %v1324_v12, %v1322_v11  ;;  %v1326_v20 = vld [vmem:[%s10763_s2 + $0x28] sm:$0xff]  ;;  %v1328_v21 = vld [vmem:[%s10763_s2 + $0x38] sm:$0xff]  ;;  %v1122_v25 = vpack.c.bf16 %v1099_v19, %v1098_v18  ;;  %v1325_v26 = vld [vmem:[%s10763_s2 + $0x20] sm:$0xff] }
  0x2b   : > { %v10005_v22 = vld [vmem:[%s13040_s1] ss:$12 sps:$4 sm:$0xff]   ;;  %v10008_v23 = vld [vmem:[%s13040_s1 + $0x8] ss:$12 sps:$4 sm:$0xff]   ;;  %v1348_v28 = vpack.c.bf16 %v1328_v21, %v1326_v20  ;;  %v1101_v30 = vld [vmem:[%s10776_s3 + $0x18] sm:$0xff] }
  0x2c   : > { %9435 = vmatpush3.bf16.msra.mxu1 %v839_v48  ;;  %v1327_v27 = vld [vmem:[%s10763_s2 + $0x30] sm:$0xff]  ;;  %v10009_v31 = vld [vmem:[%s13040_s1 + $0x1c] ss:$12 sps:$4 sm:$0xff]   ;;  %v1329_v34 = vld [vmem:[%s10763_s2 + $0x40] sm:$0xff] }
  0x2d   : > { %9069 = vmatpush3.bf16.msra.mxu0 %v823_v49  ;;  %9436 = vmatprep.subr.bf16.mxu1 %v10540_v0  ;;  %v1100_v29 = vld [vmem:[%s10776_s3 + $0x10] sm:$0xff]  ;;  %v1330_v32 = vld [vmem:[%s10763_s2 + $0x48] sm:$0xff]  ;;  %v1332_v33 = vld [vmem:[%s10763_s2 + $0x58] sm:$0xff]  ;;  %v1347_v35 = vpack.c.bf16 %v1327_v27, %v1325_v26 }
  0x2e   : > { %9070 = vmatprep.subr.bf16.mxu0 %v832_v51  ;;  %v1123_v36 = vpack.c.bf16 %v1101_v30, %v1100_v29  ;;  %v1331_v37 = vld [vmem:[%s10763_s2 + $0x50] sm:$0xff]  ;;  %v1102_v38 = vld [vmem:[%s10776_s3 + $0x20] sm:$0xff]  ;;  %v1350_v40 = vpack.c.bf16 %v1332_v33, %v1330_v32  ;;  %v1103_v41 = vld [vmem:[%s10776_s3 + $0x28] sm:$0xff] }
  0x2f   : > { %v843_v39 = vld [vmem:[%s13046_s28] sm:$0xff]  ;;  %v845_v42 = vld [vmem:[%s13046_s28 + $0x10] sm:$0xff]  ;;  %v1334_v43 = vld [vmem:[%s10763_s2 + $0x68] sm:$0xff]  ;;  %v1349_v47 = vpack.c.bf16 %v1331_v37, %v1329_v34  ;;  %v1124_v48 = vpack.c.bf16 %v1103_v41, %v1102_v38 }
  0x30   : > { %9437 = vmatpush3.bf16.msra.mxu1 %v840_v57  ;;  %v1336_v44 = vld [vmem:[%s10763_s2 + $0x78] sm:$0xff]  ;;  %v10011_v45 = vld [vmem:[%s13040_s1 + $0x20] ss:$12 sps:$4 sm:$0xff]   ;;  %851 = vperm.xlu0 %10003, %v843_v39   ;;  %v1335_v51 = vld [vmem:[%s10763_s2 + $0x70] sm:$0xff] }
  0x31   : > { %9071 = vmatpush3.bf16.msra.mxu0 %v824_v58  ;;  %9438 = vmatprep.subr.bf16.mxu1 %v10540_v0  ;;  %v10012_v46 = vld [vmem:[%s13040_s1 + $0x18] ss:$12 sps:$4 sm:$0xff]   ;;  %v1352_v50 = vpack.c.bf16 %v1336_v44, %v1334_v43  ;;  %v1104_v52 = vld [vmem:[%s10776_s3 + $0x30] sm:$0xff]  ;;  %v1338_v55 = vld [vmem:[%s10763_s2 + $0x88] sm:$0xff] }
  0x32   : > { %9072 = vmatprep.subr.bf16.mxu0 %v833_v60  ;;  %861 = vperm.xlu1 %10004, %v845_v42   ;;  %v1333_v49 = vld [vmem:[%s10763_s2 + $0x60] sm:$0xff]  ;;  %v1105_v53 = vld [vmem:[%s10776_s3 + $0x38] sm:$0xff]  ;;  %v844_v60 = vld [vmem:[%s13046_s28 + $0x8] sm:$0xff] }
  0x33   : > { %v10013_v54 = vld [vmem:[%s13040_s1 + $0x34] ss:$12 sps:$4 sm:$0xff]   ;;  %v1340_v56 = vld [vmem:[%s10763_s2 + $0x98] sm:$0xff]  ;;  %v1351_v57 = vpack.c.bf16 %v1335_v51, %v1333_v49  ;;  %v1125_v58 = vpack.c.bf16 %v1105_v53, %v1104_v52  ;;  %v1342_v6 = vld [vmem:[%s10763_s2 + $0xa8] sm:$0xff] }
  0x34   : > { %9439 = vmatpush3.bf16.msra.mxu1 %v841_v4  ;;  %v1337_v59 = vld [vmem:[%s10763_s2 + $0x80] sm:$0xff]  ;;  %v846_v61 = vld [vmem:[%s13046_s28 + $0x18] sm:$0xff]  ;;  %v1354_v63 = vpack.c.bf16 %v1340_v56, %v1338_v55  ;;  %v1339_v1 = vld [vmem:[%s10763_s2 + $0x90] sm:$0xff]  ;;  %856 = vperm.xlu0 %10003, %v844_v60  }
  0x35   : > { %9073 = vmatpush3.bf16.msra.mxu0 %v825_v5  ;;  %9440 = vmatprep.subr.bf16.mxu1 %v10540_v0  ;;  %v10015_v62 = vld [vmem:[%s13040_s1 + $0x38] ss:$12 sps:$4 sm:$0xff]   ;;  %v1107_v4 = vld [vmem:[%s10776_s3 + $0x48] sm:$0xff]  ;;  %v10016_v5 = vld [vmem:[%s13040_s1 + $0x30] ss:$12 sps:$4 sm:$0xff]   ;;  %v1353_v12 = vpack.c.bf16 %v1339_v1, %v1337_v59  ;;  %s757_s1 = scalar_lea.vmem %s13024_s23, %s8019_s0 }
  0x36   : > { %9074 = vmatprep.subr.bf16.mxu0 %v834_v7  ;;  %v1106_v3 = vld [vmem:[%s10776_s3 + $0x40] sm:$0xff]  ;;  %v1344_v7 = vld [vmem:[%s10763_s2 + $0xb8] sm:$0xff]  ;;  %v1343_v9 = vld [vmem:[%s10763_s2 + $0xb0] sm:$0xff]  ;;  %866 = vperm.xlu1 %10004, %v846_v61  }
  0x37   : > { %v1341_v8 = vld [vmem:[%s10763_s2 + $0xa0] sm:$0xff]  ;;  %v1108_v10 = vld [vmem:[%s10776_s3 + $0x50] sm:$0xff]  ;;  %v1109_v11 = vld [vmem:[%s10776_s3 + $0x58] sm:$0xff]  ;;  %v1126_v13 = vpack.c.bf16 %v1107_v4, %v1106_v3  ;;  %s13049_s2 = sld [smem:[#allocation8_spill]] }
  0x38   : > { %9441 = vmatpush3.bf16.msra.mxu1 %v842_v14  ;;  %v10022_v14 = vld [vmem:[%s13047_s29 + $0x4] ss:$8 sps:$4 sm:$0xff]   ;;  %v1355_v20 = vpack.c.bf16 %v1343_v9, %v1341_v8  ;;  %v1127_v21 = vpack.c.bf16 %v1109_v11, %v1108_v10  ;;  %v10019_v44 = vld [vmem:[%s13048_s26 + $0x10] sm:$0xff]   ;;  %v10020_v53 = vld [vmem:[%s13047_s29] ss:$8 sps:$4 sm:$0xff]  }
  0x39   : > { %9075 = vmatpush3.bf16.msra.mxu0 %v826_v15  ;;  %1418 = vmatprep.subr.bf16.mxu1 %v1346_v17  ;;  %v1356_v15 = vpack.c.bf16 %v1344_v7, %v1342_v6  ;;  %v847_v16 = vld [vmem:[%s13046_s28 + $0x20] sm:$0xff]  ;;  %v848_v17 = vld [vmem:[%s13046_s28 + $0x28] sm:$0xff]  ;;  %v1359_v55 = vld [vmem:[%s13009_s8 + $0x10] sm:$0xff] }
  0x3a   : > { %1207 = vmatprep.subr.bf16.mxu0 %v10542_v2  ;;  %v1110_v18 = vld [vmem:[%s10776_s3 + $0x60] sm:$0xff]  ;;  %v1111_v19 = vld [vmem:[%s10776_s3 + $0x68] sm:$0xff]  ;;  %871 = vperm.xlu0 %10003, %v847_v16   ;;  %v1360_v56 = vld [vmem:[%s13009_s8 + $0x18] sm:$0xff] }
  0x3b   : > { %9443 = vmatmul.mubr.bf16.vlgmr.msra.gmra.mrb[0].mxu1 %v10008_v23  ;;  %876 = vperm.xlu1 %10004, %v848_v17   ;;  %v1128_v26 = vpack.c.bf16 %v1111_v19, %v1110_v18  ;;  %v1114_v29 = vld [vmem:[%s10776_s3 + $0x80] sm:$0xff]  ;;  %v1115_v30 = vld [vmem:[%s10776_s3 + $0x88] sm:$0xff]  ;;  %v10025_v59 = vld [vmem:[%s13047_s29 + $0x10] ss:$8 sps:$4 sm:$0xff]  }
  0x3c   : > { %960 = vmatmul.mubr.bf16.vlgmr.msra.gmra.mrb[0].mxu0 %v10005_v22  ;;  %1419 = vmatpush1.bf16.msra.mxu1 %v1345_v24  ;;  %v10017_v22 = vld [vmem:[%s13048_s26] sm:$0xff]   ;;  %v1112_v24 = vld [vmem:[%s10776_s3 + $0x70] sm:$0xff]  ;;  %v10018_v33 = vld [vmem:[%s13048_s26 + $0x8] sm:$0xff]   ;;  %v1130_v37 = vpack.c.bf16 %v1115_v30, %v1114_v29 }
  0x3d   : > { %1208 = vmatpush1.bf16.msra.mxu0 %v1122_v25  ;;  %1420 = vmatprep.subr.bf16.mxu1 %v1348_v28  ;;  %v1134_v23 = vld [vmem:[%s13049_s2] sm:$0xff]  ;;  %v1113_v25 = vld [vmem:[%s10776_s3 + $0x78] sm:$0xff]  ;;  %v1135_v27 = vld [vmem:[%s13049_s2 + $0x8] sm:$0xff] }
  0x3e   : > { %1209 = vmatprep.subr.bf16.mxu0 %v10542_v2  ;;  %9446 = vmatprep.mubr.msk.bf16.mxu1 %vm10541_vm0, %v10540_v0  ;;  %v1136_v28 = vld [vmem:[%s13049_s2 + $0x10] sm:$0xff]  ;;  %v1137_v32 = vld [vmem:[%s13049_s2 + $0x18] sm:$0xff]  ;;  %v1138_v34 = vld [vmem:[%s13049_s2 + $0x20] sm:$0xff] }
  0x3f   : > { %967 = vmatprep.mubr.bf16.mxu0 %v10009_v31  ;;  %1142 = vperm.xlu0 %10003, %v1134_v23   ;;  %v1129_v31 = vpack.c.bf16 %v1113_v25, %v1112_v24  ;;  %v1139_v38 = vld [vmem:[%s13049_s2 + $0x28] sm:$0xff]  ;;  %v2279_v39 = vld [vmem:[%s13012_s11] sm:$0xff] }
  0x40   : > { %1421 = vmatpush1.bf16.msra.mxu1 %v1347_v35  ;;  %1147 = vperm.xlu1 %10004, %v1135_v27   ;;  %v1116_v35 = vld [vmem:[%s10776_s3 + $0x90] sm:$0xff]  ;;  %v1119_v41 = vld [vmem:[%s10776_s3 + $0xa8] sm:$0xff]  ;;  %v6106_v61 = vld [vmem:[%s13019_s18] sm:$0xff] }
  0x41   : > { %1210 = vmatpush1.bf16.msra.mxu0 %v1123_v36  ;;  %1422 = vmatprep.subr.bf16.mxu1 %v1350_v40  ;;  %v1117_v36 = vld [vmem:[%s10776_s3 + $0x98] sm:$0xff]  ;;  %v1118_v40 = vld [vmem:[%s10776_s3 + $0xa0] sm:$0xff]  ;;  %v2280_v43 = vld [vmem:[%s13012_s11 + $0x8] sm:$0xff] }
  0x42   : > { %1211 = vmatprep.subr.bf16.mxu0 %v10542_v2  ;;  %v1131_v42 = vpack.c.bf16 %v1117_v36, %v1116_v35  ;;  %v3400_v49 = vld [vmem:[%s13016_s15 + $0x8] sm:$0xff] }
  0x43   : > { %9447 = vmatmul.mubr.bf16.gmra.mrb[4].mxu1 %v10011_v45  ;;  %1152 = vperm.xlu0 %10003, %v1136_v28   ;;  %v3399_v45 = vld [vmem:[%s13016_s15] sm:$0xff]  ;;  %v1358_v52 = vld [vmem:[%s13009_s8 + $0x8] sm:$0xff] }
  0x44   : > { %968 = vmatmul.mubr.bf16.gmra.mrb[4].mxu0 %v10012_v46  ;;  %1423 = vmatpush1.bf16.msra.mxu1 %v1349_v47  ;;  %v1120_v46 = vld [vmem:[%s10776_s3 + $0xb0] sm:$0xff]  ;;  %v1121_v47 = vld [vmem:[%s10776_s3 + $0xb8] sm:$0xff]  ;;  %v10026_v60 = vld [vmem:[%s13047_s29 + $0x24] ss:$8 sps:$4 sm:$0xff]  }
  0x45   : > { %1212 = vmatpush1.bf16.msra.mxu0 %v1124_v48  ;;  %1424 = vmatprep.subr.bf16.mxu1 %v1352_v50  ;;  %v1132_v48 = vpack.c.bf16 %v1119_v41, %v1118_v40  ;;  %v1357_v50 = vld [vmem:[%s13009_s8] sm:$0xff]  ;;  %v1133_v51 = vpack.c.bf16 %v1121_v47, %v1120_v46 }
  0x46   : > { %1213 = vmatprep.subr.bf16.mxu0 %v10542_v2  ;;  %9450 = vmatprep.mubr.msk.bf16.mxu1 %vm10541_vm0, %v10540_v0  ;;  %v10028_v1 = vld [vmem:[%s13047_s29 + $0x20] ss:$8 sps:$4 sm:$0xff]  }
  0x47   : > { %975 = vmatprep.mubr.bf16.mxu0 %v10013_v54  ;;  %1157 = vperm.xlu1 %10004, %v1137_v32   ;;  %v10023_v54 = vld [vmem:[%s13047_s29 + $0x14] ss:$8 sps:$4 sm:$0xff]  }
  0x48   : > { %1425 = vmatpush1.bf16.msra.mxu1 %v1351_v57  ;;  %1162 = vperm.xlu0 %10003, %v1138_v34   ;;  %v1361_v57 = vld [vmem:[%s13009_s8 + $0x20] sm:$0xff] }
  0x49   : > { %1214 = vmatpush1.bf16.msra.mxu0 %v1125_v58  ;;  %1426 = vmatprep.subr.bf16.mxu1 %v1354_v63  ;;  %v1362_v58 = vld [vmem:[%s13009_s8 + $0x28] sm:$0xff]  ;;  %v7925_v63 = vld [vmem:[%s13023_s22] sm:$0xff] }
  0x4a   : > { %1215 = vmatprep.subr.bf16.mxu0 %v10542_v2 }
  0x4b   : > { %9451 = vmatmul.mubr.bf16.gmra.mrb[8].mxu1 %v10015_v62  ;;  %1167 = vperm.xlu1 %10004, %v1139_v38   ;;  %v6107_v62 = vld [vmem:[%s13019_s18 + $0x8] sm:$0xff] }
  0x4c   : > { %976 = vmatmul.mubr.bf16.gmra.mrb[8].mxu0 %v10016_v5  ;;  %1427 = vmatpush1.bf16.msra.mxu1 %v1353_v12 }
  0x4d   : > { %1216 = vmatpush1.bf16.msra.mxu0 %v1126_v13  ;;  %1428 = vmatprep.subr.bf16.mxu1 %v1356_v15 }
  0x4e   : > { %1217 = vmatprep.subr.bf16.mxu0 %v10542_v2  ;;  %1450 = vmatprep.mubr.bf16.mxu1 %v10542_v2 }
  0x4f   : > { %8041 = vmatprep.mubr.msk.bf16.mxu0 %vm1197_vm1, %v10022_v14  ;;  %2283 = vperm.xlu0 %10003, %v2279_v39  }
  0x50   : > { %1429 = vmatpush1.bf16.msra.mxu1 %v1355_v20  ;;  %2288 = vperm.xlu1 %10004, %v2280_v43  }
  0x51   : > { %1218 = vmatpush1.bf16.msra.mxu0 %v1127_v21  ;;  %9454 = vmatprep.subr.bf16.mxu1 %v10540_v0 }
  0x52   : > { %1219 = vmatprep.subr.bf16.mxu0 %v10542_v2 }
  0x53   : > { %8053 = vmatmul.mubr.msk.bf16.vlgmr.msra.gmra.mrb[12].mxu1 %vm1408_vm2, %v10017_v22  ;;  %3403 = vperm.xlu0 %10003, %v3399_v45  }
  0x54   : > { %1460 = vmatprep.mubr.bf16.mxu1 %v10542_v2  ;;  %3408 = vperm.xlu1 %10004, %v3400_v49  }
  0x55   : > { %1220 = vmatpush1.bf16.msra.mxu0 %v1128_v26 }
  0x56   : > { %1221 = vmatprep.subr.bf16.mxu0 %v10542_v2 }
  0x57   : > { %1365 = vperm.xlu0 %10003, %v1357_v50  }
  0x58   : > { %1370 = vperm.xlu1 %10004, %v1358_v52  }
  0x59   : > { %1222 = vmatpush1.bf16.msra.mxu0 %v1129_v31 }
  0x5a   : > { %1223 = vmatprep.subr.bf16.mxu0 %v10542_v2 }
  0x5b   : > { %8054 = vmatmul.mubr.msk.bf16.gmra.mrb[16].mxu1 %vm1408_vm2, %v10018_v33  ;;  %1375 = vperm.xlu0 %10003, %v1359_v55  }
  0x5c   : > { %1470 = vmatprep.mubr.bf16.mxu1 %v10542_v2  ;;  %1380 = vperm.xlu1 %10004, %v1360_v56  }
  0x5d   : > { %1224 = vmatpush1.bf16.msra.mxu0 %v1130_v37 }
  0x5e   : > { %1225 = vmatprep.subr.bf16.mxu0 %v10542_v2 }
  0x5f   : > { %1385 = vperm.xlu0 %10003, %v1361_v57  }
  0x60   : > { %1390 = vperm.xlu1 %10004, %v1362_v58  }
  0x61   : > { %1226 = vmatpush1.bf16.msra.mxu0 %v1131_v42 }
  0x62   : > { %1227 = vmatprep.subr.bf16.mxu0 %v10542_v2 }
  0x63   : > { %8055 = vmatmul.mubr.msk.bf16.gmra.mrb[20].mxu1 %vm1408_vm2, %v10019_v44  ;;  %6110 = vperm.xlu0 %10003, %v6106_v61  }
  0x64   : > { %9460 = vmatprep.mubr.msk.bf16.mxu1 %vm10541_vm0, %v10540_v0  ;;  %6115 = vperm.xlu1 %10004, %v6107_v62  }
  0x65   : > { %1228 = vmatpush1.bf16.msra.mxu0 %v1132_v48 }
  0x66   : > { %1229 = vmatprep.subr.bf16.mxu0 %v10542_v2 }
  0x67   : > { %7928 = vperm.xlu0 %10003, %v7925_v63  }
  0x69   : > { %1230 = vmatpush1.bf16.msra.mxu0 %v1133_v51 }
  0x6a   : > { %9502 = vmatprep.subr.bf16.mxu0 %v10540_v0 }
  0x6c   : > { %1240 = vmatmul.mubr.bf16.vlgmr.msra.gmra.mrb[12].mxu0 %v10020_v53 }
  0x6d   : > { %8042 = vmatprep.mubr.msk.bf16.mxu0 %vm1197_vm1, %v10023_v54 }
  0x74   : > { %1248 = vmatmul.mubr.bf16.gmra.mrb[16].mxu0 %v10025_v59 }
  0x75   : > { %8043 = vmatprep.mubr.msk.bf16.mxu0 %vm1197_vm1, %v10026_v60 }
  0x7c   : > { %1256 = vmatmul.mubr.bf16.gmra.mrb[20].mxu0 %v10028_v1 }
  0x7d   : > { %9504 = vmatprep.mubr.msk.bf16.mxu0 %vm10541_vm0, %v10540_v0 }
  0xaf   : > { %v852_v3 = vpop.permute.xlu0 %851 }
  0xb1   : > { %v862_v5 = vpop.permute.xlu1 %861 }
  0xb3   : > { %v857_v4 = vpop.permute.xlu0 %856 }
  0xb5   : > { %v867_v7 = vpop.permute.xlu1 %866 }
  0xb9   : > { %v872_v6 = vpop.permute.xlu0 %871 }
  0xba   : > { %v10984_v9 = vpop.permute.xlu1 %876 }
  0xbe   : > { %v10982_v8 = vpop.permute.xlu0 %1142 }
  0xbf   : > { %v10988_v11 = vpop.permute.xlu1 %1147 }
  0xc2   : > { %v10986_v10 = vpop.permute.xlu0 %1152 }
  0xc6   : > { %v10992_v13 = vpop.permute.xlu1 %1157 }
  0xc7   : > { %v10990_v12 = vpop.permute.xlu0 %1162 }
  0xca   : > { %v10998_v28 = vpop.permute.xlu1 %1167 }
  0xce   : > { %v10996_v27 = vpop.permute.xlu0 %2283 }
  0xcf   : > { %v11008_v48 = vpop.permute.xlu1 %2288 }
  0xd2   : > { %v11006_v47 = vpop.permute.xlu0 %3403 }
 0x10e   : > { %v1018_v15 = vpop.f32.mrb[0].mxu1 }
 0x10f   : > { %v9076_v14 = vpop.f32.mrb[0].mxu0  ;;  %v9444_v17 = vpop.f32.mrb[1].mxu1 }
 0x110   : > { %v9077_v16 = vpop.f32.mrb[1].mxu0  ;;  %v1021_v20 = vpop.f32.mrb[2].mxu1 }
 0x111   : > { %v9078_v18 = vadd.f32 %v9077_v16, %v9076_v14  ;;  %v9079_v19 = vpop.f32.mrb[2].mxu0  ;;  %v9445_v22 = vpop.f32.mrb[3].mxu1 }
 0x112   : > { %v9080_v21 = vpop.f32.mrb[3].mxu0  ;;  %v1366_v16 = vpop.permute.xlu0 %1365 }
 0x113   : > { %v962_v23 = vadd.f32 %v9078_v18, %v852_v3  ;;  %v9081_v24 = vadd.f32 %v9080_v21, %v9079_v19 }
 0x115   : > { %v10994_v25 = vadd.f32 %v1018_v15, %v962_v23  ;;  %v965_v26 = vadd.f32 %v9081_v24, %v857_v4  ;;  %v11014_v4 = vpop.permute.xlu1 %3408 }
 0x116   : > { %v1026_v32 = vpop.f32.mrb[4].mxu1 }
 0x117   : > { %v1041_v29 = vmin.f32 %v10994_v25, 0.0  ;;  %v11001_v30 = vadd.f32 %v1021_v20, %v965_v26  ;;  %v9082_v31 = vpop.f32.mrb[4].mxu0  ;;  %v9448_v34 = vpop.f32.mrb[5].mxu1  ;;  %vm1071_vm3 = vcmp.gt.f32.partialorder %v10994_v25, 0.0 }
 0x118   : > { %v9083_v33 = vpop.f32.mrb[5].mxu0  ;;  %v1029_v39 = vpop.f32.mrb[6].mxu1 }
 0x119   : > { %v1047_v35 = vmul.f32 1.442695, %v1041_v29  ;;  %v1042_v36 = vmin.f32 %v11001_v30, 0.0  ;;  %v9084_v37 = vadd.f32 %v9083_v33, %v9082_v31  ;;  %v9085_v38 = vpop.f32.mrb[6].mxu0  ;;  %v9449_v41 = vpop.f32.mrb[7].mxu1  ;;  %vm1072_vm4 = vcmp.gt.f32.partialorder %v11001_v30, 0.0 }
 0x11a   : > { %v9086_v40 = vpop.f32.mrb[7].mxu0  ;;  %v1371_v34 = vpop.permute.xlu1 %1370 }
 0x11b   : > { %10480 = vpow2.f32 %v1047_v35  ;;  %v1049_v42 = vmul.f32 1.442695, %v1042_v36  ;;  %v970_v43 = vadd.f32 %v9084_v37, %v862_v5  ;;  %v9087_v44 = vadd.f32 %v9086_v40, %v9085_v38 }
 0x11d   : > { %10482 = vpow2.f32 %v1049_v42  ;;  %v11004_v45 = vadd.f32 %v1026_v32, %v970_v43  ;;  %v973_v46 = vadd.f32 %v9087_v44, %v867_v7 }
 0x11e   : > { %v1034_v52 = vpop.f32.mrb[8].mxu1 }
 0x11f   : > { %v1043_v49 = vmin.f32 %v11004_v45, 0.0  ;;  %v11011_v50 = vadd.f32 %v1029_v39, %v973_v46  ;;  %v9088_v51 = vpop.f32.mrb[8].mxu0  ;;  %v9452_v54 = vpop.f32.mrb[9].mxu1  ;;  %vm1073_vm5 = vcmp.gt.f32.partialorder %v11004_v45, 0.0 }
 0x120   : > { %v9089_v53 = vpop.f32.mrb[9].mxu0  ;;  %v1037_v59 = vpop.f32.mrb[10].mxu1 }
 0x121   : > { %v1051_v55 = vmul.f32 1.442695, %v1043_v49  ;;  %v1044_v56 = vmin.f32 %v11011_v50, 0.0  ;;  %v9090_v57 = vadd.f32 %v9089_v53, %v9088_v51  ;;  %v9091_v58 = vpop.f32.mrb[10].mxu0  ;;  %v9453_v61 = vpop.f32.mrb[11].mxu1  ;;  %vm1074_vm6 = vcmp.gt.f32.partialorder %v11011_v50, 0.0 }
 0x122   : > { %v9092_v60 = vpop.f32.mrb[11].mxu0  ;;  %v1376_v51 = vpop.permute.xlu0 %1375 }
 0x123   : > { %10484 = vpow2.f32 %v1051_v55  ;;  %v1053_v62 = vmul.f32 1.442695, %v1044_v56  ;;  %v978_v63 = vadd.f32 %v9090_v57, %v872_v6  ;;  %v9093_v1 = vadd.f32 %v9092_v60, %v9091_v58 }
 0x125   : > { %v10481_v3 = vpop.eup %10480  ;;  %10486 = vpow2.f32 %v1053_v62  ;;  %v11016_v5 = vadd.f32 %v1034_v52, %v978_v63  ;;  %v981_v7 = vadd.f32 %v9093_v1, %v10984_v9 }
 0x126   : > { %v8029_v14 = vadd.f32 -1.0, %v10481_v3  ;;  %v1452_v19 = vpop.f32.mrb[12].mxu1 }
 0x127   : > { %v10483_v15 = vpop.eup %10482  ;;  %v1045_v17 = vmin.f32 %v11016_v5, 0.0  ;;  %v11020_v18 = vadd.f32 %v1037_v59, %v981_v7  ;;  %v11022_v6 = vadd.f32 %v1452_v19, %v1366_v16  ;;  %v1454_v22 = vpop.f32.mrb[13].mxu1  ;;  %vm1075_vm7 = vcmp.gt.f32.partialorder %v11016_v5, 0.0 }
 0x128   : > { %v1065_v20 = vmul.f32 1.6732632, %v8029_v14  ;;  %v8030_v21 = vadd.f32 -1.0, %v10483_v15  ;;  %v11026_v26 = vadd.f32 %v1454_v22, %v1366_v16  ;;  %v1456_v9 = vpop.f32.mrb[14].mxu1  ;;  %v1381_v7 = vpop.permute.xlu1 %1380 }
 0x129   : > { %v1055_v23 = vmul.f32 1.442695, %v1045_v17  ;;  %v1046_v24 = vmin.f32 %v11020_v18, 0.0  ;;  %v1481_v32 = vmin.f32 %v11022_v6, 0.0  ;;  %v1458_v33 = vpop.f32.mrb[15].mxu1  ;;  %v11033_v40 = vadd.f32 %v1456_v9, %v1371_v34 }
 0x12a   : > { %v1077_v29 = vsel %vm1071_vm3, %v10994_v25, %v1065_v20  ;;  %v1066_v31 = vmul.f32 1.6732632, %v8030_v21  ;;  %v1482_v36 = vmin.f32 %v11026_v26, 0.0  ;;  %v11035_v43 = vadd.f32 %v1458_v33, %v1371_v34 }
 0x12b   : > { %10488 = vpow2.f32 %v1055_v23  ;;  %v1057_v35 = vmul.f32 1.442695, %v1046_v24  ;;  %v1083_v37 = vmul.f32 1.050701, %v1077_v29  ;;  %v1493_v39 = vmul.f32 1.442695, %v1481_v32  ;;  %v1386_v29 = vpop.permute.xlu0 %1385 }
 0x12c   : > { %v1078_v38 = vsel %vm1072_vm4, %v11001_v30, %v1066_v31  ;;  %v1495_v25 = vmul.f32 1.442695, %v1482_v36  ;;  %v1483_v46 = vmin.f32 %v11033_v40, 0.0  ;;  %v1484_v53 = vmin.f32 %v11035_v43, 0.0 }
 0x12d   : > { %v10485_v41 = vpop.eup %10484  ;;  %v1084_v42 = vmul.f32 1.050701, %v1078_v38  ;;  %10490 = vpow2.f32 %v1057_v35  ;;  %vm1076_vm8 = vcmp.gt.f32.partialorder %v11020_v18, 0.0  ;;  %vm1541_vm9 = vcmp.gt.f32.partialorder %v11022_v6, 0.0 }
 0x12e   : > { %v8031_v44 = vadd.f32 -1.0, %v10485_v41  ;;  %10492 = vpow2.f32 %v1493_v39  ;;  %v1462_v30 = vpop.f32.mrb[16].mxu1  ;;  %v1497_v56 = vmul.f32 1.442695, %v1483_v46  ;;  %v1499_v59 = vmul.f32 1.442695, %v1484_v53 }
 0x12f   : > { %v10487_v49 = vpop.eup %10486  ;;  %v1089_v52 = vpack.c.bf16 %v1084_v42, %v1083_v37  ;;  %10494 = vpow2.f32 %v1495_v25  ;;  %v11039_v57 = vadd.f32 %v1462_v30, %v1376_v51  ;;  %v1464_v58 = vpop.f32.mrb[17].mxu1  ;;  %vm1542_vm11 = vcmp.gt.f32.partialorder %v11026_v26, 0.0 }
 0x130   : > { %v1067_v54 = vmul.f32 1.6732632, %v8031_v44  ;;  %v8032_v55 = vadd.f32 -1.0, %v10487_v49  ;;  %v11042_v60 = vadd.f32 %v1464_v58, %v1376_v51  ;;  %v1466_v61 = vpop.f32.mrb[18].mxu1  ;;  %10496 = vpow2.f32 %v1497_v56 }
 0x131   : > { %9455 = vmatpush3.bf16.msra.mxu1 %v1089_v52  ;;  %v1485_v1 = vmin.f32 %v11039_v57, 0.0  ;;  %v1468_v3 = vpop.f32.mrb[19].mxu1  ;;  %10498 = vpow2.f32 %v1499_v59  ;;  %v11050_v17 = vadd.f32 %v1466_v61, %v1381_v7  ;;  %vm1543_vm12 = vcmp.gt.f32.partialorder %v11033_v40, 0.0 }
 0x132   : > { %v1079_v62 = vsel %vm1073_vm5, %v11004_v45, %v1067_v54  ;;  %v1068_v63 = vmul.f32 1.6732632, %v8032_v55  ;;  %9456 = vmatprep.subr.bf16.mxu1 %v10540_v0  ;;  %v1486_v14 = vmin.f32 %v11042_v60, 0.0  ;;  %v11052_v22 = vadd.f32 %v1468_v3, %v1381_v7  ;;  %v1391_v7 = vpop.permute.xlu1 %1390 }
 0x133   : > { %v1501_v16 = vmul.f32 1.442695, %v1485_v1  ;;  %v1085_v45 = vmul.f32 1.050701, %v1079_v62  ;;  %v1487_v24 = vmin.f32 %v11050_v17, 0.0  ;;  %vm1544_vm13 = vcmp.gt.f32.partialorder %v11035_v43, 0.0 }
 0x134   : > { %v1080_v15 = vsel %vm1074_vm6, %v11011_v50, %v1068_v63  ;;  %v1503_v21 = vmul.f32 1.442695, %v1486_v14  ;;  %v1488_v50 = vmin.f32 %v11052_v22, 0.0  ;;  %vm1545_vm14 = vcmp.gt.f32.partialorder %v11039_v57, 0.0 }
 0x135   : > { %v10489_v19 = vpop.eup %10488  ;;  %v1086_v20 = vmul.f32 1.050701, %v1080_v15  ;;  %10500 = vpow2.f32 %v1501_v16  ;;  %v1505_v36 = vmul.f32 1.442695, %v1487_v24  ;;  %vm1546_vm15 = vcmp.gt.f32.partialorder %v11042_v60, 0.0 }
 0x136   : > { %v8033_v23 = vadd.f32 -1.0, %v10489_v19  ;;  %10502 = vpow2.f32 %v1503_v21  ;;  %v1472_v32 = vpop.f32.mrb[20].mxu1  ;;  %v1507_v42 = vmul.f32 1.442695, %v1488_v50  ;;  %vm1547_vm2 = vcmp.gt.f32.partialorder %v11050_v17, 0.0 }
 0x137   : > { %v10491_v9 = vpop.eup %10490  ;;  %v1090_v31 = vpack.c.bf16 %v1086_v20, %v1085_v45  ;;  %v11058_v37 = vadd.f32 %v1472_v32, %v1386_v29  ;;  %v1474_v38 = vpop.f32.mrb[21].mxu1  ;;  %10504 = vpow2.f32 %v1505_v36  ;;  %vm1548_vm3 = vcmp.gt.f32.partialorder %v11052_v22, 0.0 }
 0x138   : > { %v10493_v33 = vpop.eup %10492  ;;  %v1069_v34 = vmul.f32 1.6732632, %v8033_v23  ;;  %v8034_v35 = vadd.f32 -1.0, %v10491_v9  ;;  %v11061_v25 = vadd.f32 %v1474_v38, %v1386_v29  ;;  %v1476_v44 = vpop.f32.mrb[22].mxu1  ;;  %10506 = vpow2.f32 %v1507_v42  ;;  %v10029_v23 = vld [vmem:[%s13010_s9] sm:$0xff]  }
 0x139   : > { %v10495_v39 = vpop.eup %10494  ;;  %v8056_v41 = vadd.f32 -1.0, %v10493_v33  ;;  %9457 = vmatpush3.bf16.msra.mxu1 %v1090_v31  ;;  %v1478_v51 = vpop.f32.mrb[23].mxu1  ;;  %v1489_v30 = vmin.f32 %v11058_v37, 0.0  ;;  %vm1549_vm4 = vcmp.gt.f32.partialorder %v11058_v37, 0.0 }
 0x13a   : > { %v1081_v46 = vsel %vm1075_vm7, %v11016_v5, %v1069_v34  ;;  %v1070_v49 = vmul.f32 1.6732632, %v8034_v35  ;;  %9458 = vmatprep.subr.bf16.mxu1 %v10540_v0  ;;  %v8057_v53 = vadd.f32 -1.0, %v10495_v39  ;;  %v10497_v54 = vpop.eup %10496  ;;  %v1490_v56 = vmin.f32 %v11061_v25, 0.0 }
 0x13b   : > { %v1529_v52 = vmul.f32 1.6732632, %v8056_v41  ;;  %v1087_v55 = vmul.f32 1.050701, %v1081_v46  ;;  %v10499_v58 = vpop.eup %10498  ;;  %v8058_v62 = vadd.f32 -1.0, %v10497_v54  ;;  %v11090_v31 = vadd.f32 %v1478_v51, %v1391_v7 }
 0x13c   : > { %v1082_v5 = vsel %vm1076_vm8, %v11020_v18, %v1070_v49  ;;  %v1509_v63 = vmul.f32 1.442695, %v1489_v30  ;;  %v8059_v1 = vadd.f32 -1.0, %v10499_v58  ;;  %v1511_v3 = vmul.f32 1.442695, %v1490_v56 }
 0x13d   : > { %v1088_v59 = vmul.f32 1.050701, %v1082_v5  ;;  %v1553_v61 = vsel %vm1541_vm9, %v11022_v6, %v1529_v52  ;;  %v1530_v14 = vmul.f32 1.6732632, %v8057_v53  ;;  %v1531_v15 = vmul.f32 1.6732632, %v8058_v62 }
 0x13e   : > { %10508 = vpow2.f32 %v1509_v63  ;;  %v11080_v45 = vmul.f32 1.050701, %v1553_v61  ;;  %v1532_v20 = vmul.f32 1.6732632, %v8059_v1  ;;  %v11082_v6 = vadd.f32 %v1476_v44, %v1391_v7  ;;  %v10030_v62 = vld [vmem:[%s13010_s9 + $0x8] sm:$0xff]  }
 0x13f   : > { %v1091_v18 = vpack.c.bf16 %v1088_v59, %v1087_v55  ;;  %v1241_v16 = vpop.f32.mrb[12].mxu0  ;;  %v10501_v19 = vpop.eup %10500  ;;  %10510 = vpow2.f32 %v1511_v3  ;;  %v1555_v9 = vsel %vm1543_vm12, %v11033_v40, %v1531_v15  ;;  %v1554_v40 = vsel %vm1542_vm11, %v11026_v26, %v1530_v14 }
 0x140   : > { %v1243_v21 = vpop.f32.mrb[13].mxu0  ;;  %v10503_v24 = vpop.eup %10502  ;;  %v8060_v29 = vadd.f32 -1.0, %v10501_v19  ;;  %v11093_v50 = vadd.f32 %v1241_v16, %v10982_v8  ;;  %v11095_v33 = vmul.f32 1.050701, %v1555_v9  ;;  %v1556_v34 = vsel %vm1544_vm13, %v11035_v43, %v1532_v20 }
 0x141   : > { %v1244_v32 = vpop.f32.mrb[14].mxu0  ;;  %9459 = vmatpush3.bf16.msra.mxu1 %v1091_v18  ;;  %v8061_v35 = vadd.f32 -1.0, %v10503_v24  ;;  %v1491_v36 = vmin.f32 %v11082_v6, 0.0  ;;  %v1492_v39 = vmin.f32 %v11090_v31, 0.0  ;;  %v10505_v41 = vpop.eup %10504  ;;  %v11109_v43 = vmul.f32 1.050701, %v1556_v34 }
 0x142   : > { %v1246_v38 = vpop.f32.mrb[15].mxu0  ;;  %9496 = vmatprep.subr.bf16.mxu1 %v10540_v0  ;;  %v1533_v8 = vmul.f32 1.6732632, %v8060_v29  ;;  %v1577_v42 = vpack.c.bf16 %v11095_v33, %v11080_v45  ;;  %v10507_v49 = vpop.eup %10506  ;;  %v8062_v51 = vadd.f32 -1.0, %v10505_v41  ;;  %v1264_v53 = vmin.f32 %v11093_v50, 0.0 }
 0x143   : > { %v1534_v44 = vmul.f32 1.6732632, %v8061_v35  ;;  %v1513_v46 = vmul.f32 1.442695, %v1491_v36  ;;  %v1515_v52 = vmul.f32 1.442695, %v1492_v39  ;;  %v11127_v59 = vadd.f32 %v1244_v32, %v10988_v11 }
 0x144   : > { %9461 = vmatmul.mubr.msk.bf16.vlgmr.msra.gmra.mrb[24].mxu1 %vm1646_vm10, %v10029_v23  ;;  %v1557_v26 = vsel %vm1545_vm14, %v11039_v57, %v1533_v8  ;;  %v11118_v30 = vmul.f32 1.050701, %v1554_v40  ;;  %v8063_v55 = vadd.f32 -1.0, %v10507_v49  ;;  %v1535_v5 = vmul.f32 1.6732632, %v8062_v51 }
 0x145   : > { %9464 = vmatprep.mubr.msk.bf16.mxu1 %vm10541_vm0, %v10540_v0  ;;  %v1558_v54 = vsel %vm1546_vm15, %v11042_v60, %v1534_v44  ;;  %10512 = vpow2.f32 %v1513_v46  ;;  %v1270_v57 = vmul.f32 1.442695, %v1264_v53  ;;  %v11124_v56 = vmul.f32 1.050701, %v1557_v26  ;;  %v10119_v45 = vld [vmem:[%s13018_s17 + $0x28] ss:$8 sps:$4 sm:$0xff]  }
 0x146   : > { %10514 = vpow2.f32 %v1515_v52  ;;  %v1536_v58 = vmul.f32 1.6732632, %v8063_v55  ;;  %v1578_v60 = vpack.c.bf16 %v11109_v43, %v11118_v30  ;;  %v11134_v1 = vmul.f32 1.050701, %v1558_v54  ;;  %v10121_v33 = vld [vmem:[%s13018_s17 + $0x2c] ss:$8 sps:$4 sm:$0xff]  }
 0x147   : > { %v1249_v61 = vpop.f32.mrb[16].mxu0  ;;  %v1559_v3 = vsel %vm1547_vm2, %v11050_v17, %v1535_v5  ;;  %10516 = vpow2.f32 %v1270_v57  ;;  %v1265_v19 = vmin.f32 %v11127_v59, 0.0  ;;  %vm1550_vm5 = vcmp.gt.f32.partialorder %v11061_v25, 0.0  ;;  %v10104_v43 = vld [vmem:[%s13017_s16 + $0x18] sm:$0xff]   ;;  %v10105_v30 = vld [vmem:[%s13017_s16 + $0x20] sm:$0xff]  }
 0x148   : > { %v10509_v63 = vpop.eup %10508  ;;  %v11140_v7 = vadd.f32 %v1249_v61, %v10986_v10  ;;  %v1251_v11 = vpop.f32.mrb[17].mxu0  ;;  %v11142_v14 = vmul.f32 1.050701, %v1559_v3  ;;  %v1560_v15 = vsel %vm1548_vm3, %v11052_v22, %v1536_v58  ;;  %vm1551_vm6 = vcmp.gt.f32.partialorder %v11082_v6, 0.0 }
 0x149   : > { %v10511_v18 = vpop.eup %10510  ;;  %v8064_v16 = vadd.f32 -1.0, %v10509_v63  ;;  %v1252_v20 = vpop.f32.mrb[18].mxu0  ;;  %v11148_v21 = vmul.f32 1.050701, %v1560_v15  ;;  %v1272_v9 = vmul.f32 1.442695, %v1265_v19 }
 0x14a   : > { %v8065_v23 = vadd.f32 -1.0, %v10511_v18  ;;  %v1266_v17 = vmin.f32 %v11140_v7, 0.0  ;;  %v1254_v24 = vpop.f32.mrb[19].mxu0  ;;  %v1579_v10 = vpack.c.bf16 %v11142_v14, %v11124_v56  ;;  %v11155_v32 = vadd.f32 %v1252_v20, %v10992_v13  ;;  %v10031_v13 = vld [vmem:[%s13010_s9 + $0x10] sm:$0xff]   ;;  %v10032_v19 = vld [vmem:[%s13010_s9 + $0x18] sm:$0xff]   ;;  %v10106_v56 = vld [vmem:[%s13017_s16 + $0x28] sm:$0xff]  }
 0x14b   : > { %v1580_v22 = vpack.c.bf16 %v11148_v21, %v11134_v1  ;;  %v1537_v34 = vmul.f32 1.6732632, %v8064_v16  ;;  %10518 = vpow2.f32 %v1272_v9  ;;  %vm1552_vm7 = vcmp.gt.f32.partialorder %v11090_v31, 0.0  ;;  %v10108_v1 = vld [vmem:[%s13017_s16 + $0x38] sm:$0xff]   ;;  %v10109_v14 = vld [vmem:[%s13017_s16 + $0x40] sm:$0xff]   ;;  %v10110_v21 = vld [vmem:[%s13017_s16 + $0x48] sm:$0xff]  }
 0x14c   : > { %9465 = vmatmul.mubr.msk.bf16.gmra.mrb[28].mxu1 %vm1646_vm10, %v10030_v62  ;;  %v1274_v29 = vmul.f32 1.442695, %v1266_v17  ;;  %v1538_v35 = vmul.f32 1.6732632, %v8065_v23  ;;  %v1267_v36 = vmin.f32 %v11155_v32, 0.0  ;;  %vm1294_vm8 = vcmp.gt.f32.partialorder %v11093_v50, 0.0 }
 0x14d   : > { %9468 = vmatprep.mubr.msk.bf16.mxu1 %vm10541_vm0, %v10540_v0  ;;  %v1561_v26 = vsel %vm1549_vm4, %v11058_v37, %v1537_v34  ;;  %vm1295_vm9 = vcmp.gt.f32.partialorder %v11127_v59, 0.0  ;;  %vm1296_vm11 = vcmp.gt.f32.partialorder %v11140_v7, 0.0  ;;  %vm1297_vm12 = vcmp.gt.f32.partialorder %v11155_v32, 0.0 }
 0x14e   : > { %10520 = vpow2.f32 %v1274_v29  ;;  %v1276_v46 = vmul.f32 1.442695, %v1267_v36  ;;  %v1562_v55 = vsel %vm1550_vm5, %v11061_v25, %v1538_v35  ;;  %v11179_v37 = vmul.f32 1.050701, %v1561_v26 }
 0x14f   : > { %v1257_v38 = vpop.f32.mrb[20].mxu0  ;;  %v10513_v40 = vpop.eup %10512  ;;  %v11185_v25 = vmul.f32 1.050701, %v1562_v55  ;;  %vm1792_vm15 = vcmask 130048   ;;  %vm3955_vm4 = vcmask 1041408   ;;  %vm3951_vm5 = vcmask 293888  }
 0x150   : > { %v11163_v8 = vadd.f32 %v1257_v38, %v10990_v12  ;;  %v1259_v39 = vpop.f32.mrb[21].mxu0  ;;  %v10515_v41 = vpop.eup %10514  ;;  %v8066_v44 = vadd.f32 -1.0, %v10513_v40  ;;  %10522 = vpow2.f32 %v1276_v46 }
 0x151   : > { %v1260_v49 = vpop.f32.mrb[22].mxu0  ;;  %v8067_v51 = vadd.f32 -1.0, %v10515_v41  ;;  %v10517_v54 = vpop.eup %10516 }
 0x152   : > { %v1268_v52 = vmin.f32 %v11163_v8, 0.0  ;;  %v11173_v12 = vadd.f32 %v1260_v49, %v10998_v28  ;;  %v1262_v53 = vpop.f32.mrb[23].mxu0  ;;  %v1539_v5 = vmul.f32 1.6732632, %v8066_v44  ;;  %v8044_v58 = vadd.f32 -1.0, %v10517_v54 }
 0x153   : > { %v1540_v57 = vmul.f32 1.6732632, %v8067_v51  ;;  %vm1298_vm13 = vcmp.gt.f32.partialorder %v11163_v8, 0.0 }
 0x154   : > { %v1278_v61 = vmul.f32 1.442695, %v1268_v52  ;;  %v1269_v62 = vmin.f32 %v11173_v12, 0.0  ;;  %9469 = vmatmul.mubr.msk.bf16.gmra.mrb[32].mxu1 %vm1646_vm10, %v10031_v13  ;;  %v1563_v28 = vsel %vm1551_vm6, %v11082_v6, %v1539_v5  ;;  %v1288_v18 = vmul.f32 1.6732632, %v8044_v58  ;;  %v10034_v5 = vld [vmem:[%s13010_s9 + $0x28] sm:$0xff]  }
 0x155   : > { %9472 = vmatprep.mubr.msk.bf16.mxu1 %vm10541_vm0, %v10540_v0  ;;  %v11187_v63 = vmul.f32 1.050701, %v1563_v28  ;;  %v1564_v3 = vsel %vm1552_vm7, %v11090_v31, %v1540_v57  ;;  %v10519_v16 = vpop.eup %10518  ;;  %vm1299_vm14 = vcmp.gt.f32.partialorder %v11173_v12, 0.0  ;;  %v10038_v28 = vld [vmem:[%s13011_s10] sm:$0xff]  }
 0x156   : > { %10524 = vpow2.f32 %v1278_v61  ;;  %v11190_v11 = vmul.f32 1.050701, %v1564_v3  ;;  %v1280_v15 = vmul.f32 1.442695, %v1269_v62  ;;  %v8045_v23 = vadd.f32 -1.0, %v10519_v16  ;;  %v10037_v62 = vld [vmem:[%s13010_s9 + $0x40] sm:$0xff]   ;;  %9503 = vmatpush3.bf16.msra.mxu0 %v10038_v28 }
 0x157   : > { %v1581_v6 = vpack.c.bf16 %v11187_v63, %v11179_v37  ;;  %v1300_v24 = vsel %vm1294_vm8, %v11093_v50, %v1288_v18  ;;  %9508 = vmatprep.subr.bf16.mxu0 %v10540_v0  ;;  %v10039_v3 = vld [vmem:[%s13011_s10 + $0x8] sm:$0xff]   ;;  %v10122_v37 = vld [vmem:[%s13018_s17 + $0x38] ss:$8 sps:$4 sm:$0xff]  }
 0x158   : > { %v10521_v20 = vpop.eup %10520  ;;  %10526 = vpow2.f32 %v1280_v15  ;;  %v1582_v17 = vpack.c.bf16 %v11190_v11, %v11185_v25  ;;  %v1289_v9 = vmul.f32 1.6732632, %v8045_v23  ;;  %v11206_v36 = vmul.f32 1.050701, %v1300_v24  ;;  %9497 = vmatpush3.bf16.msra.mxu1 %v10039_v3  ;;  %v10124_v25 = vld [vmem:[%s13018_s17 + $0x3c] ss:$8 sps:$4 sm:$0xff]  }
 0x159   : > { %v8046_v31 = vadd.f32 -1.0, %v10521_v20  ;;  %9538 = vmatprep.subr.bf16.mxu1 %v10540_v0  ;;  %v10113_v63 = vld [vmem:[%s13017_s16 + $0x60] sm:$0xff]   ;;  %v8321_v11 = vld [vmem:[%s13018_s17 + $0x48] sm:$0x33] }
 0x15a   : > { %v10523_v34 = vpop.eup %10522  ;;  %v1301_v35 = vsel %vm1295_vm9, %v11127_v59, %v1289_v9  ;;  %v10033_v59 = vld [vmem:[%s13010_s9 + $0x20] sm:$0xff]  }
 0x15b   : > { %v1290_v29 = vmul.f32 1.6732632, %v8046_v31  ;;  %v11208_v38 = vmul.f32 1.050701, %v1301_v35  ;;  %v8047_v40 = vadd.f32 -1.0, %v10523_v34 }
 0x15c   : > { %9473 = vmatmul.mubr.msk.bf16.gmra.mrb[36].mxu1 %vm1646_vm10, %v10032_v19  ;;  %v10040_v19 = vld [vmem:[%s13011_s10 + $0x10] sm:$0xff]  }
 0x15d   : > { %9476 = vmatprep.mubr.msk.bf16.mxu1 %vm10541_vm0, %v10540_v0  ;;  %v1312_v39 = vpack.c.bf16 %v11208_v38, %v11206_v36  ;;  %v1302_v13 = vsel %vm1296_vm11, %v11140_v7, %v1290_v29  ;;  %v1291_v41 = vmul.f32 1.6732632, %v8047_v40  ;;  %v10045_v29 = vld [vmem:[%s13011_s10 + $0x38] sm:$0xff]   ;;  %v10047_v36 = vld [vmem:[%s13014_s13] sm:$0xff]   ;;  %v10048_v38 = vld [vmem:[%s13014_s13 + $0x8] sm:$0xff]  }
 0x15e   : > { %v11219_v26 = vmul.f32 1.050701, %v1302_v13 }
 0x15f   : > { %v1303_v46 = vsel %vm1297_vm12, %v11155_v32, %v1291_v41  ;;  %v10041_v41 = vld [vmem:[%s13011_s10 + $0x18] sm:$0xff]  }
 0x160   : > { %v10525_v50 = vpop.eup %10524  ;;  %v11221_v51 = vmul.f32 1.050701, %v1303_v46 }
 0x161   : > { %v8048_v44 = vadd.f32 -1.0, %v10525_v50 }
 0x162   : > { %v10527_v49 = vpop.eup %10526  ;;  %v1313_v7 = vpack.c.bf16 %v11221_v51, %v11219_v26  ;;  %v10050_v26 = vld [vmem:[%s13014_s13 + $0x18] sm:$0xff]   ;;  %v10051_v51 = vld [vmem:[%s13014_s13 + $0x20] sm:$0xff]  }
 0x163   : > { %v1292_v52 = vmul.f32 1.6732632, %v8048_v44  ;;  %v8049_v53 = vadd.f32 -1.0, %v10527_v49 }
 0x164   : > { %9477 = vmatmul.mubr.msk.bf16.gmra.mrb[40].mxu1 %vm1646_vm10, %v10033_v59 }
 0x165   : > { %9480 = vmatprep.mubr.msk.bf16.mxu1 %vm10541_vm0, %v10540_v0  ;;  %v1304_v54 = vsel %vm1298_vm13, %v11163_v8, %v1292_v52  ;;  %v1293_v32 = vmul.f32 1.6732632, %v8049_v53  ;;  %v10035_v8 = vld [vmem:[%s13010_s9 + $0x30] sm:$0xff]   ;;  %v10042_v53 = vld [vmem:[%s13011_s10 + $0x20] sm:$0xff]  }
 0x166   : > { %v11235_v57 = vmul.f32 1.050701, %v1304_v54 }
 0x167   : > { %v1305_v55 = vsel %vm1299_vm14, %v11173_v12, %v1293_v32  ;;  %v10036_v12 = vld [vmem:[%s13010_s9 + $0x38] sm:$0xff]  }
 0x168   : > { %v11237_v58 = vmul.f32 1.050701, %v1305_v55 }
 0x16a   : > { %v1314_v61 = vpack.c.bf16 %v11237_v58, %v11235_v57  ;;  %v10053_v57 = vld [vmem:[%s13014_s13 + $0x30] sm:$0xff]   ;;  %v10054_v58 = vld [vmem:[%s13014_s13 + $0x38] sm:$0xff]  }
 0x16c   : > { %9481 = vmatmul.mubr.msk.bf16.gmra.mrb[44].mxu1 %vm1646_vm10, %v10034_v5 }
 0x16d   : > { %9484 = vmatprep.mubr.msk.bf16.mxu1 %vm10541_vm0, %v10540_v0 }
 0x174   : > { %9485 = vmatmul.mubr.msk.bf16.gmra.mrb[48].mxu1 %vm1646_vm10, %v10035_v8 }
 0x175   : > { %9488 = vmatprep.mubr.msk.bf16.mxu1 %vm10541_vm0, %v10540_v0 }
 0x17c   : > { %9489 = vmatmul.mubr.msk.bf16.gmra.mrb[52].mxu1 %vm1646_vm10, %v10036_v12  ;;  %v10043_v12 = vld [vmem:[%s13011_s10 + $0x28] sm:$0xff]  }
 0x17d   : > { %9492 = vmatprep.mubr.msk.bf16.mxu1 %vm10541_vm0, %v10540_v0 }
 0x184   : > { %9493 = vmatmul.mubr.msk.bf16.gmra.mrb[56].mxu1 %vm1646_vm10, %v10037_v62 }
 0x185   : > { %9498 = vmatprep.mubr.msk.bf16.mxu1 %vm10541_vm0, %v10540_v0 }
 0x217   : > { %v1708_v18 = vpop.f32.mrb[24].mxu1 }
 0x218   : > { %v9462_v15 = vpop.f32.mrb[25].mxu1 }
 0x219   : > { %v1711_v16 = vpop.f32.mrb[26].mxu1 }
 0x21a   : > { %v1779_v20 = vpack.c.bf16 %v1711_v16, %v1708_v18  ;;  %v9463_v23 = vpop.f32.mrb[27].mxu1  ;;  %v10044_v16 = vld [vmem:[%s13011_s10 + $0x30] sm:$0xff]  }
 0x21c   : > { %9505 = vmatmul.mubr.msk.bf16.vlgmr.msra.gmra.mrb[24].mxu0 %vm1792_vm15, %v1779_v20 }
 0x21d   : > { %9509 = vmatpush3.bf16.msra.mxu0 %v10040_v19  ;;  %9510 = vmatprep.mubr.msk.bf16.mxu0 %vm10541_vm0, %v10540_v0 }
 0x21e   : > { %9514 = vmatprep.subr.bf16.mxu0 %v10540_v0 }
 0x21f   : > { %v1716_v31 = vpop.f32.mrb[28].mxu1 }
 0x220   : > { %v9466_v24 = vpop.f32.mrb[29].mxu1 }
 0x221   : > { %v1719_v9 = vpop.f32.mrb[30].mxu1 }
 0x222   : > { %v1782_v34 = vpack.c.bf16 %v1719_v9, %v1716_v31  ;;  %v9467_v35 = vpop.f32.mrb[31].mxu1  ;;  %v10046_v9 = vld [vmem:[%s13011_s10 + $0x40] sm:$0xff]  }
 0x224   : > { %9499 = vmatmul.mubr.msk.bf16.vlgmr.msra.gmra.mrb[60].mxu1 %vm1792_vm15, %v1782_v34 }
 0x225   : > { %9539 = vmatpush3.bf16.msra.mxu1 %v10045_v29  ;;  %9540 = vmatprep.mubr.msk.bf16.mxu1 %vm10541_vm0, %v10540_v0 }
 0x226   : > { %9550 = vmatprep.subr.bf16.mxu1 %v10540_v0 }
 0x227   : > { %v1724_v40 = vpop.f32.mrb[32].mxu1 }
 0x228   : > { %v9470_v50 = vpop.f32.mrb[33].mxu1 }
 0x229   : > { %v1727_v13 = vpop.f32.mrb[34].mxu1 }
 0x22a   : > { %v1887_v59 = vpack.c.bf16 %v1727_v13, %v1724_v40  ;;  %v9471_v44 = vpop.f32.mrb[35].mxu1 }
 0x22c   : > { %9511 = vmatmul.mubr.msk.bf16.vlgmr.msra.gmra.mrb[28].mxu0 %vm1792_vm15, %v1887_v59 }
 0x22d   : > { %9515 = vmatpush3.bf16.msra.mxu0 %v10041_v41  ;;  %9516 = vmatprep.mubr.msk.bf16.mxu0 %vm10541_vm0, %v10540_v0 }
 0x22e   : > { %9520 = vmatprep.subr.bf16.mxu0 %v10540_v0 }
 0x22f   : > { %v1732_v46 = vpop.f32.mrb[36].mxu1 }
 0x230   : > { %v9474_v49 = vpop.f32.mrb[37].mxu1 }
 0x231   : > { %v1735_v52 = vpop.f32.mrb[38].mxu1 }
 0x232   : > { %v1943_v54 = vpack.c.bf16 %v1735_v52, %v1732_v46  ;;  %v9475_v32 = vpop.f32.mrb[39].mxu1 }
 0x234   : > { %9517 = vmatmul.mubr.msk.bf16.vlgmr.msra.gmra.mrb[32].mxu0 %vm1792_vm15, %v1943_v54 }
 0x235   : > { %9521 = vmatpush3.bf16.msra.mxu0 %v10042_v53  ;;  %9522 = vmatprep.mubr.msk.bf16.mxu0 %vm10541_vm0, %v10540_v0 }
 0x236   : > { %9526 = vmatprep.subr.bf16.mxu0 %v10540_v0 }
 0x237   : > { %v1740_v55 = vpop.f32.mrb[40].mxu1 }
 0x238   : > { %v9478_v5 = vpop.f32.mrb[41].mxu1 }
 0x239   : > { %v1743_v8 = vpop.f32.mrb[42].mxu1 }
 0x23a   : > { %v1999_v62 = vpack.c.bf16 %v1743_v8, %v1740_v55  ;;  %v9479_v28 = vpop.f32.mrb[43].mxu1 }
 0x23c   : > { %9523 = vmatmul.mubr.msk.bf16.vlgmr.msra.gmra.mrb[36].mxu0 %vm1792_vm15, %v1999_v62 }
 0x23d   : > { %9527 = vmatpush3.bf16.msra.mxu0 %v10043_v12  ;;  %9528 = vmatprep.mubr.msk.bf16.mxu0 %vm10541_vm0, %v10540_v0 }
 0x23e   : > { %9532 = vmatprep.subr.bf16.mxu0 %v10540_v0 }
 0x23f   : > { %v1748_v3 = vpop.f32.mrb[44].mxu1 }
 0x240   : > { %v9482_v18 = vpop.f32.mrb[45].mxu1 }
 0x241   : > { %v1751_v15 = vpop.f32.mrb[46].mxu1  ;;  %v10065_v18 = vld [vmem:[%s13015_s14 + $0x20] sm:$0xff]  }
 0x242   : > { %v2055_v19 = vpack.c.bf16 %v1751_v15, %v1748_v3  ;;  %v9483_v20 = vpop.f32.mrb[47].mxu1 }
 0x244   : > { %9529 = vmatmul.mubr.msk.bf16.vlgmr.msra.gmra.mrb[40].mxu0 %vm1792_vm15, %v2055_v19 }
 0x245   : > { %9533 = vmatpush3.bf16.msra.mxu0 %v10044_v16  ;;  %9534 = vmatprep.mubr.msk.bf16.mxu0 %vm10541_vm0, %v10540_v0 }
 0x246   : > { %9544 = vmatprep.subr.bf16.mxu0 %v10540_v0 }
 0x247   : > { %v1756_v23 = vpop.f32.mrb[48].mxu1 }
 0x248   : > { %v9486_v31 = vpop.f32.mrb[49].mxu1 }
 0x249   : > { %v1759_v24 = vpop.f32.mrb[50].mxu1 }
 0x24a   : > { %v2111_v29 = vpack.c.bf16 %v1759_v24, %v1756_v23  ;;  %v9487_v34 = vpop.f32.mrb[51].mxu1 }
 0x24c   : > { %9535 = vmatmul.mubr.msk.bf16.vlgmr.msra.gmra.mrb[44].mxu0 %vm1792_vm15, %v2111_v29 }
 0x24d   : > { %9545 = vmatpush3.bf16.msra.mxu0 %v10046_v9  ;;  %9546 = vmatprep.mubr.msk.bf16.mxu0 %vm10541_vm0, %v10540_v0 }
 0x24e   : > { %9630 = vmatprep.subr.bf16.mxu0 %v10540_v0 }
 0x24f   : > { %v1764_v35 = vpop.f32.mrb[52].mxu1 }
 0x250   : > { %v9490_v40 = vpop.f32.mrb[53].mxu1 }
 0x251   : > { %v1767_v50 = vpop.f32.mrb[54].mxu1 }
 0x252   : > { %v2167_v13 = vpack.c.bf16 %v1767_v50, %v1764_v35  ;;  %v9491_v41 = vpop.f32.mrb[55].mxu1 }
 0x254   : > { %9541 = vmatmul.mubr.msk.bf16.vlgmr.msra.gmra.mrb[64].mxu1 %vm1792_vm15, %v2167_v13 }
 0x255   : > { %9551 = vmatpush3.bf16.msra.mxu1 %v1312_v39  ;;  %9556 = vmatprep.mubr.msk.bf16.mxu1 %vm10541_vm0, %v10540_v0  ;;  %v10049_v39 = vld [vmem:[%s13014_s13 + $0x10] sm:$0xff]  }
 0x256   : > { %9552 = vmatprep.subr.bf16.mxu1 %v10540_v0 }
 0x257   : > { %v1772_v59 = vpop.f32.mrb[56].mxu1 }
 0x258   : > { %v9494_v44 = vpop.f32.mrb[57].mxu1 }
 0x259   : > { %9553 = vmatpush3.bf16.msra.mxu1 %v1313_v7  ;;  %v1775_v46 = vpop.f32.mrb[58].mxu1  ;;  %v10052_v7 = vld [vmem:[%s13014_s13 + $0x28] sm:$0xff]  }
 0x25a   : > { %v2223_v49 = vpack.c.bf16 %v1775_v46, %v1772_v59  ;;  %v9495_v52 = vpop.f32.mrb[59].mxu1  ;;  %9554 = vmatprep.subr.bf16.mxu1 %v10540_v0 }
 0x25c   : > { %9547 = vmatmul.mubr.msk.bf16.vlgmr.msra.gmra.mrb[48].mxu0 %vm1792_vm15, %v2223_v49 }
 0x25d   : > { %9555 = vmatpush3.bf16.msra.mxu1 %v1314_v61  ;;  %9638 = vmatprep.mubr.msk.bf16.mxu0 %vm10541_vm0, %v10540_v0  ;;  %v10055_v61 = vld [vmem:[%s13014_s13 + $0x40] sm:$0xff]  }
 0x25e   : > { %9592 = vmatprep.subr.bf16.mxu1 %v10540_v0  ;;  %9631 = vmatpush3.bf16.msra.mxu0 %v10065_v18 }
 0x25f   : > { %9632 = vmatprep.subr.bf16.mxu0 %v10540_v0 }
 0x260   : > { %9557 = vmatmul.mubr.msk.bf16.vlgmr.msra.gmra.mrb[68].mxu1 %vm1646_vm10, %v10047_v36 }
 0x261   : > { %9560 = vmatprep.mubr.msk.bf16.mxu1 %vm10541_vm0, %v10540_v0 }
 0x268   : > { %9561 = vmatmul.mubr.msk.bf16.gmra.mrb[72].mxu1 %vm1646_vm10, %v10048_v38 }
 0x269   : > { %9564 = vmatprep.mubr.msk.bf16.mxu1 %vm10541_vm0, %v10540_v0 }
 0x270   : > { %9565 = vmatmul.mubr.msk.bf16.gmra.mrb[76].mxu1 %vm1646_vm10, %v10049_v39 }
 0x271   : > { %9568 = vmatprep.mubr.msk.bf16.mxu1 %vm10541_vm0, %v10540_v0 }
 0x278   : > { %9569 = vmatmul.mubr.msk.bf16.gmra.mrb[80].mxu1 %vm1646_vm10, %v10050_v26 }
 0x279   : > { %9572 = vmatprep.mubr.msk.bf16.mxu1 %vm10541_vm0, %v10540_v0 }
 0x280   : > { %9573 = vmatmul.mubr.msk.bf16.gmra.mrb[84].mxu1 %vm1646_vm10, %v10051_v51 }
 0x281   : > { %9576 = vmatprep.mubr.msk.bf16.mxu1 %vm10541_vm0, %v10540_v0 }
 0x288   : > { %9577 = vmatmul.mubr.msk.bf16.gmra.mrb[88].mxu1 %vm1646_vm10, %v10052_v7 }
 0x289   : > { %9580 = vmatprep.mubr.msk.bf16.mxu1 %vm10541_vm0, %v10540_v0 }
 0x290   : > { %9581 = vmatmul.mubr.msk.bf16.gmra.mrb[92].mxu1 %vm1646_vm10, %v10053_v57 }
 0x291   : > { %9584 = vmatprep.mubr.msk.bf16.mxu1 %vm10541_vm0, %v10540_v0 }
 0x298   : > { %9585 = vmatmul.mubr.msk.bf16.gmra.mrb[96].mxu1 %vm1646_vm10, %v10054_v58 }
 0x299   : > { %9588 = vmatprep.mubr.msk.bf16.mxu1 %vm10541_vm0, %v10540_v0 }
 0x2a0   : > { %9589 = vmatmul.mubr.msk.bf16.gmra.mrb[100].mxu1 %vm1646_vm10, %v10055_v61 }
 0x2a1   : > { %9594 = vmatprep.mubr.msk.bf16.mxu1 %vm10541_vm0, %v10540_v0 }
 0x2ef   : > { %v1880_v53 = vpop.f32.mrb[24].mxu0 }
 0x2f0   : > { %v9506_v54 = vpop.f32.mrb[25].mxu0 }
 0x2f1   : > { %v1883_v32 = vpop.f32.mrb[26].mxu0 }
 0x2f2   : > { %v9507_v55 = vpop.f32.mrb[27].mxu0 }
 0x2f7   : > { %v1830_v5 = vpop.f32.mrb[60].mxu1 }
 0x2f8   : > { %v1881_v8 = vadd.f32 %v1880_v53, %v1830_v5  ;;  %v9500_v12 = vpop.f32.mrb[61].mxu1 }
 0x2f9   : > { %v1833_v62 = vpop.f32.mrb[62].mxu1 }
 0x2fa   : > { %v1884_v28 = vadd.f32 %v1883_v32, %v1833_v62  ;;  %v9501_v3 = vpop.f32.mrb[63].mxu1 }
 0x2ff   : > { %v1934_v15 = vpop.f32.mrb[28].mxu0 }
 0x300   : > { %v1941_v16 = vadd.f32 %v1934_v15, %v1881_v8  ;;  %v9512_v19 = vpop.f32.mrb[29].mxu0 }
 0x301   : > { %v1937_v20 = vpop.f32.mrb[30].mxu0 }
 0x302   : > { %v1942_v23 = vadd.f32 %v1937_v20, %v1884_v28  ;;  %v9513_v31 = vpop.f32.mrb[31].mxu0 }
 0x303   : > { %v10056_v31 = vld [vmem:[%s13013_s12] sm:$0xff]  }
 0x307   : > { %v1990_v24 = vpop.f32.mrb[32].mxu0 }
 0x308   : > { %v1997_v9 = vadd.f32 %v1990_v24, %v1941_v16  ;;  %v9518_v29 = vpop.f32.mrb[33].mxu0  ;;  %v10057_v24 = vld [vmem:[%s13013_s12 + $0x8] sm:$0xff]  }
 0x309   : > { %v1993_v34 = vpop.f32.mrb[34].mxu0  ;;  %v10061_v29 = vld [vmem:[%s13013_s12 + $0x28] sm:$0xff]  }
 0x30a   : > { %v1998_v35 = vadd.f32 %v1993_v34, %v1942_v23  ;;  %v9519_v40 = vpop.f32.mrb[35].mxu0  ;;  %v10062_v34 = vld [vmem:[%s13013_s12 + $0x30] sm:$0xff]  }
 0x30b   : > { %v10064_v40 = vld [vmem:[%s13013_s12 + $0x40] sm:$0xff]  }
 0x30f   : > { %v2046_v50 = vpop.f32.mrb[36].mxu0 }
 0x310   : > { %v2053_v13 = vadd.f32 %v2046_v50, %v1997_v9  ;;  %v9524_v41 = vpop.f32.mrb[37].mxu0  ;;  %v10060_v9 = vld [vmem:[%s13013_s12 + $0x20] sm:$0xff]   ;;  %v10066_v50 = vld [vmem:[%s13015_s14 + $0x28] sm:$0xff]  }
 0x311   : > { %v2049_v59 = vpop.f32.mrb[38].mxu0  ;;  %9633 = vmatpush3.bf16.msra.mxu0 %v10066_v50  ;;  %v10068_v41 = vld [vmem:[%s13015_s14 + $0x38] sm:$0xff]   ;;  %v10078_v50 = vld [vmem:[%s13015_s14 + $0x68] sm:$0xff]  }
 0x312   : > { %v2054_v44 = vadd.f32 %v2049_v59, %v1998_v35  ;;  %v9525_v46 = vpop.f32.mrb[39].mxu0  ;;  %v10063_v35 = vld [vmem:[%s13013_s12 + $0x38] sm:$0xff]   ;;  %9634 = vmatprep.subr.bf16.mxu0 %v10540_v0 }
 0x317   : > { %v2102_v49 = vpop.f32.mrb[40].mxu0 }
 0x318   : > { %v2109_v52 = vadd.f32 %v2102_v49, %v2053_v13  ;;  %v9530_v36 = vpop.f32.mrb[41].mxu0  ;;  %v10067_v13 = vld [vmem:[%s13015_s14 + $0x30] sm:$0xff]  }
 0x319   : > { %v2105_v38 = vpop.f32.mrb[42].mxu0  ;;  %9635 = vmatpush3.bf16.msra.mxu0 %v10067_v13 }
 0x31a   : > { %v2110_v39 = vadd.f32 %v2105_v38, %v2054_v44  ;;  %v9531_v26 = vpop.f32.mrb[43].mxu0  ;;  %9636 = vmatprep.subr.bf16.mxu0 %v10540_v0 }
 0x31b   : > { %v10069_v26 = vld [vmem:[%s13015_s14] sm:$0xff]  }
 0x31d   : > { %9637 = vmatpush3.bf16.msra.mxu0 %v10068_v41 }
 0x31e   : > { %9642 = vmatprep.subr.bf16.mxu0 %v10540_v0 }
 0x31f   : > { %v2158_v51 = vpop.f32.mrb[44].mxu0 }
 0x320   : > { %v2165_v7 = vadd.f32 %v2158_v51, %v2109_v52  ;;  %v9536_v57 = vpop.f32.mrb[45].mxu0 }
 0x321   : > { %v2161_v58 = vpop.f32.mrb[46].mxu0  ;;  %v10070_v57 = vld [vmem:[%s13015_s14 + $0x8] sm:$0xff]  }
 0x322   : > { %v2166_v61 = vadd.f32 %v2161_v58, %v2110_v39  ;;  %v9537_v53 = vpop.f32.mrb[47].mxu0 }
 0x327   : > { %v2214_v54 = vpop.f32.mrb[64].mxu1 }
 0x328   : > { %v2221_v32 = vadd.f32 %v2214_v54, %v2165_v7  ;;  %v9542_v55 = vpop.f32.mrb[65].mxu1  ;;  %v10071_v54 = vld [vmem:[%s13015_s14 + $0x10] sm:$0xff]  }
 0x329   : > { %v2217_v5 = vpop.f32.mrb[66].mxu1 }
 0x32a   : > { %v2222_v8 = vadd.f32 %v2217_v5, %v2166_v61  ;;  %v9543_v12 = vpop.f32.mrb[67].mxu1  ;;  %v10072_v5 = vld [vmem:[%s13015_s14 + $0x18] sm:$0xff]  }
 0x32f   : > { %v2270_v62 = vpop.f32.mrb[48].mxu0 }
 0x330   : > { %v2277_v28 = vadd.f32 %v2270_v62, %v2221_v32  ;;  %v9548_v3 = vpop.f32.mrb[49].mxu0 }
 0x331   : > { %v2273_v18 = vpop.f32.mrb[50].mxu0 }
 0x332   : > { %v2278_v15 = vadd.f32 %v2273_v18, %v2222_v8  ;;  %v9549_v16 = vpop.f32.mrb[51].mxu0  ;;  %v2291_v19 = vadd.f32 %v10996_v27, %v2277_v28  ;;  %v10058_v27 = vld [vmem:[%s13013_s12 + $0x10] sm:$0xff]   ;;  %v10073_v28 = vld [vmem:[%s13015_s14 + $0x40] sm:$0xff]  }
 0x334   : > { %v2292_v20 = vadd.f32 %v11008_v48, %v2278_v15  ;;  %v10059_v48 = vld [vmem:[%s13013_s12 + $0x18] sm:$0xff]   ;;  %v10074_v15 = vld [vmem:[%s13015_s14 + $0x48] sm:$0xff]  }
 0x336   : > { %v2293_v23 = vpack.c.bf16 %v2292_v20, %v2291_v19 }
 0x338   : > { %9593 = vmatpush3.bf16.msra.mxu1 %v2293_v23  ;;  %v10075_v23 = vld [vmem:[%s13015_s14 + $0x50] sm:$0xff]  }
 0x339   : > { %9738 = vmatprep.subr.bf16.mxu1 %v10540_v0 }
 0x33b   : > { %9595 = vmatmul.mubr.msk.bf16.vlgmr.msra.gmra.mrb[68].mxu1 %vm1792_vm15, %v10056_v31 }
 0x33c   : > { %9598 = vmatprep.mubr.msk.bf16.mxu1 %vm10541_vm0, %v10540_v0 }
 0x343   : > { %9599 = vmatmul.mubr.msk.bf16.gmra.mrb[72].mxu1 %vm1792_vm15, %v10057_v24 }
 0x344   : > { %9602 = vmatprep.mubr.msk.bf16.mxu1 %vm10541_vm0, %v10540_v0 }
 0x34b   : > { %9603 = vmatmul.mubr.msk.bf16.gmra.mrb[76].mxu1 %vm1792_vm15, %v10058_v27  ;;  %v10076_v27 = vld [vmem:[%s13015_s14 + $0x58] sm:$0xff]  }
 0x34c   : > { %9606 = vmatprep.mubr.msk.bf16.mxu1 %vm10541_vm0, %v10540_v0 }
 0x353   : > { %9607 = vmatmul.mubr.msk.bf16.gmra.mrb[80].mxu1 %vm1792_vm15, %v10059_v48 }
 0x354   : > { %9610 = vmatprep.mubr.msk.bf16.mxu1 %vm10541_vm0, %v10540_v0 }
 0x35b   : > { %9611 = vmatmul.mubr.msk.bf16.gmra.mrb[84].mxu1 %vm1792_vm15, %v10060_v9 }
 0x35c   : > { %9614 = vmatprep.mubr.msk.bf16.mxu1 %vm10541_vm0, %v10540_v0 }
 0x363   : > { %9615 = vmatmul.mubr.msk.bf16.gmra.mrb[88].mxu1 %vm1792_vm15, %v10061_v29 }
 0x364   : > { %9618 = vmatprep.mubr.msk.bf16.mxu1 %vm10541_vm0, %v10540_v0 }
 0x36b   : > { %9619 = vmatmul.mubr.msk.bf16.gmra.mrb[92].mxu1 %vm1792_vm15, %v10062_v34  ;;  %v10077_v34 = vld [vmem:[%s13015_s14 + $0x60] sm:$0xff]  }
 0x36c   : > { %9622 = vmatprep.mubr.msk.bf16.mxu1 %vm10541_vm0, %v10540_v0 }
 0x373   : > { %9623 = vmatmul.mubr.msk.bf16.gmra.mrb[96].mxu1 %vm1792_vm15, %v10063_v35 }
 0x374   : > { %9626 = vmatprep.mubr.msk.bf16.mxu1 %vm10541_vm0, %v10540_v0 }
 0x37b   : > { %9627 = vmatmul.mubr.msk.bf16.gmra.mrb[100].mxu1 %vm1792_vm15, %v10064_v40 }
 0x37c   : > { %9740 = vmatprep.mubr.msk.bf16.mxu1 %vm10541_vm0, %v10540_v0 }
 0x40e   : > { %v2613_v59 = vpop.f32.mrb[68].mxu1 }
 0x40f   : > { %v9596_v44 = vpop.f32.mrb[69].mxu1 }
 0x410   : > { %v2616_v46 = vpop.f32.mrb[70].mxu1  ;;  %v10079_v44 = vld [vmem:[%s13015_s14 + $0x70] sm:$0xff]  }
 0x411   : > { %v2684_v49 = vpack.c.bf16 %v2616_v46, %v2613_v59  ;;  %v9597_v52 = vpop.f32.mrb[71].mxu1 }
 0x412   : > { %v10080_v52 = vld [vmem:[%s13015_s14 + $0x78] sm:$0xff]  }
 0x416   : > { %v2621_v36 = vpop.f32.mrb[72].mxu1 }
 0x417   : > { %v9600_v38 = vpop.f32.mrb[73].mxu1 }
 0x418   : > { %v2624_v39 = vpop.f32.mrb[74].mxu1 }
 0x419   : > { %v2693_v51 = vpack.c.bf16 %v2624_v39, %v2621_v36  ;;  %v9601_v7 = vpop.f32.mrb[75].mxu1 }
 0x41b   : > { %9639 = vmatmul.mubr.msk.bf16.vlgmr.msra.gmra.mrb[52].mxu0 %vm1197_vm1, %v2693_v51 }
 0x41c   : > { %9643 = vmatpush3.bf16.msra.mxu0 %v10069_v26  ;;  %9650 = vmatprep.mubr.msk.bf16.mxu0 %vm10541_vm0, %v10540_v0  ;;  %v10081_v26 = vld [vmem:[%s13015_s14 + $0x80] sm:$0xff]  }
 0x41d   : > { %9644 = vmatprep.subr.bf16.mxu0 %v10540_v0 }
 0x41e   : > { %v2629_v58 = vpop.f32.mrb[76].mxu1 }
 0x41f   : > { %v9604_v61 = vpop.f32.mrb[77].mxu1 }
 0x420   : > { %9645 = vmatpush3.bf16.msra.mxu0 %v10070_v57  ;;  %v2632_v53 = vpop.f32.mrb[78].mxu1  ;;  %v10082_v57 = vld [vmem:[%s13015_s14 + $0x88] sm:$0xff]  }
 0x421   : > { %v2839_v32 = vpack.c.bf16 %v2632_v53, %v2629_v58  ;;  %v9605_v55 = vpop.f32.mrb[79].mxu1  ;;  %9646 = vmatprep.subr.bf16.mxu0 %v10540_v0 }
 0x424   : > { %9647 = vmatpush3.bf16.msra.mxu0 %v10071_v54  ;;  %v10083_v54 = vld [vmem:[%s13015_s14 + $0x90] sm:$0xff]  }
 0x425   : > { %9648 = vmatprep.subr.bf16.mxu0 %v10540_v0 }
 0x426   : > { %v2637_v8 = vpop.f32.mrb[80].mxu1 }
 0x427   : > { %v9608_v12 = vpop.f32.mrb[81].mxu1 }
 0x428   : > { %9649 = vmatpush3.bf16.msra.mxu0 %v10072_v5  ;;  %v2640_v62 = vpop.f32.mrb[82].mxu1  ;;  %v10084_v5 = vld [vmem:[%s13015_s14 + $0x98] sm:$0xff]   ;;  %v10086_v12 = vld [vmem:[%s13015_s14 + $0xa8] sm:$0xff]  }
 0x429   : > { %v2919_v3 = vpack.c.bf16 %v2640_v62, %v2637_v8  ;;  %v9609_v18 = vpop.f32.mrb[83].mxu1  ;;  %9654 = vmatprep.subr.bf16.mxu0 %v10540_v0  ;;  %v10085_v8 = vld [vmem:[%s13015_s14 + $0xa0] sm:$0xff]   ;;  %v10087_v62 = vld [vmem:[%s13015_s14 + $0xb0] sm:$0xff]  }
 0x42a   : > { %v10090_v18 = vld [vmem:[%s13015_s14 + $0xc8] sm:$0xff]  }
 0x42b   : > { %9651 = vmatmul.mubr.msk.bf16.vlgmr.msra.gmra.mrb[56].mxu0 %vm1197_vm1, %v2684_v49 }
 0x42c   : > { %9655 = vmatpush3.bf16.msra.mxu0 %v10073_v28  ;;  %9662 = vmatprep.mubr.msk.bf16.mxu0 %vm10541_vm0, %v10540_v0  ;;  %v10088_v28 = vld [vmem:[%s13015_s14 + $0xb8] sm:$0xff]  }
 0x42d   : > { %9656 = vmatprep.subr.bf16.mxu0 %v10540_v0 }
 0x42e   : > { %v11493_v16 = vpop.f32.mrb[84].mxu1 }
 0x42f   : > { %v9612_v19 = vpop.f32.mrb[85].mxu1 }
 0x430   : > { %9657 = vmatpush3.bf16.msra.mxu0 %v10074_v15  ;;  %v2648_v20 = vpop.f32.mrb[86].mxu1  ;;  %v10091_v15 = vld [vmem:[%s13015_s14 + $0xd0] sm:$0xff]   ;;  %v10093_v19 = vld [vmem:[%s13015_s14 + $0xe0] sm:$0xff]  }
 0x431   : > { %v2999_v31 = vpack.c.bf16 %v2648_v20, %v11493_v16  ;;  %v9613_v24 = vpop.f32.mrb[87].mxu1  ;;  %9658 = vmatprep.subr.bf16.mxu0 %v10540_v0  ;;  %v10092_v16 = vld [vmem:[%s13015_s14 + $0xd8] sm:$0xff]   ;;  %v10094_v20 = vld [vmem:[%s13015_s14 + $0xe8] sm:$0xff]  }
 0x432   : > { %v10097_v24 = vld [vmem:[%s13015_s14 + $0x100] sm:$0xff]  }
 0x434   : > { %9659 = vmatpush3.bf16.msra.mxu0 %v10075_v23  ;;  %v10095_v23 = vld [vmem:[%s13015_s14 + $0xf0] sm:$0xff]  }
 0x435   : > { %9660 = vmatprep.subr.bf16.mxu0 %v10540_v0 }
 0x436   : > { %v11504_v48 = vpop.f32.mrb[88].mxu1 }
 0x437   : > { %v9616_v9 = vpop.f32.mrb[89].mxu1 }
 0x438   : > { %9661 = vmatpush3.bf16.msra.mxu0 %v10076_v27  ;;  %v11506_v29 = vpop.f32.mrb[90].mxu1  ;;  %v10098_v27 = vld [vmem:[%s13015_s14 + $0x108] sm:$0xff]   ;;  %v10100_v9 = vld [vmem:[%s13015_s14 + $0x118] sm:$0xff]  }
 0x439   : > { %v3079_v35 = vpack.c.bf16 %v11506_v29, %v11504_v48  ;;  %v9617_v40 = vpop.f32.mrb[91].mxu1  ;;  %9666 = vmatprep.subr.bf16.mxu0 %v10540_v0  ;;  %v10099_v48 = vld [vmem:[%s13015_s14 + $0x110] sm:$0xff]  }
 0x43b   : > { %9663 = vmatmul.mubr.msk.bf16.vlgmr.msra.gmra.mrb[60].mxu0 %vm1197_vm1, %v2839_v32 }
 0x43c   : > { %9667 = vmatpush3.bf16.msra.mxu0 %v10077_v34  ;;  %9674 = vmatprep.mubr.msk.bf16.mxu0 %vm10541_vm0, %v10540_v0 }
 0x43d   : > { %9668 = vmatprep.subr.bf16.mxu0 %v10540_v0 }
 0x43e   : > { %v11521_v13 = vpop.f32.mrb[92].mxu1 }
 0x43f   : > { %v9620_v41 = vpop.f32.mrb[93].mxu1 }
 0x440   : > { %9669 = vmatpush3.bf16.msra.mxu0 %v10078_v50  ;;  %v11523_v59 = vpop.f32.mrb[94].mxu1 }
 0x441   : > { %v3159_v46 = vpack.c.bf16 %v11523_v59, %v11521_v13  ;;  %v9621_v49 = vpop.f32.mrb[95].mxu1  ;;  %9670 = vmatprep.subr.bf16.mxu0 %v10540_v0 }
 0x444   : > { %9671 = vmatpush3.bf16.msra.mxu0 %v10079_v44 }
 0x445   : > { %9672 = vmatprep.subr.bf16.mxu0 %v10540_v0 }
 0x446   : > { %v11535_v36 = vpop.f32.mrb[96].mxu1 }
 0x447   : > { %v9624_v38 = vpop.f32.mrb[97].mxu1 }
 0x448   : > { %9673 = vmatpush3.bf16.msra.mxu0 %v10080_v52  ;;  %v11537_v39 = vpop.f32.mrb[98].mxu1 }
 0x449   : > { %v3239_v51 = vpack.c.bf16 %v11537_v39, %v11535_v36  ;;  %v9625_v7 = vpop.f32.mrb[99].mxu1  ;;  %9678 = vmatprep.subr.bf16.mxu0 %v10540_v0 }
 0x44b   : > { %9675 = vmatmul.mubr.msk.bf16.vlgmr.msra.gmra.mrb[64].mxu0 %vm1197_vm1, %v2919_v3  ;;  %v10089_v3 = vld [vmem:[%s13015_s14 + $0xc0] sm:$0xff]  }
 0x44c   : > { %9679 = vmatpush3.bf16.msra.mxu0 %v10081_v26  ;;  %9686 = vmatprep.mubr.msk.bf16.mxu0 %vm10541_vm0, %v10540_v0 }
 0x44d   : > { %9680 = vmatprep.subr.bf16.mxu0 %v10540_v0 }
 0x44e   : > { %v11552_v58 = vpop.f32.mrb[100].mxu1 }
 0x44f   : > { %v9628_v61 = vpop.f32.mrb[101].mxu1 }
 0x450   : > { %9681 = vmatpush3.bf16.msra.mxu0 %v10082_v57  ;;  %v11554_v53 = vpop.f32.mrb[102].mxu1 }
 0x451   : > { %v3319_v32 = vpack.c.bf16 %v11554_v53, %v11552_v58  ;;  %v9629_v55 = vpop.f32.mrb[103].mxu1  ;;  %9682 = vmatprep.subr.bf16.mxu0 %v10540_v0 }
 0x454   : > { %9683 = vmatpush3.bf16.msra.mxu0 %v10083_v54 }
 0x455   : > { %9684 = vmatprep.subr.bf16.mxu0 %v10540_v0 }
 0x458   : > { %9685 = vmatpush3.bf16.msra.mxu0 %v10084_v5 }
 0x459   : > { %9690 = vmatprep.subr.bf16.mxu0 %v10540_v0 }
 0x45b   : > { %9687 = vmatmul.mubr.msk.bf16.vlgmr.msra.gmra.mrb[68].mxu0 %vm1197_vm1, %v2999_v31  ;;  %v10096_v31 = vld [vmem:[%s13015_s14 + $0xf8] sm:$0xff]  }
 0x45c   : > { %9691 = vmatpush3.bf16.msra.mxu0 %v10085_v8  ;;  %9698 = vmatprep.mubr.msk.bf16.mxu0 %vm10541_vm0, %v10540_v0 }
 0x45d   : > { %9692 = vmatprep.subr.bf16.mxu0 %v10540_v0 }
 0x460   : > { %9693 = vmatpush3.bf16.msra.mxu0 %v10086_v12 }
 0x461   : > { %9694 = vmatprep.subr.bf16.mxu0 %v10540_v0 }
 0x464   : > { %9695 = vmatpush3.bf16.msra.mxu0 %v10087_v62 }
 0x465   : > { %9696 = vmatprep.subr.bf16.mxu0 %v10540_v0 }
 0x468   : > { %9697 = vmatpush3.bf16.msra.mxu0 %v10088_v28 }
 0x469   : > { %9702 = vmatprep.subr.bf16.mxu0 %v10540_v0 }
 0x46b   : > { %9699 = vmatmul.mubr.msk.bf16.vlgmr.msra.gmra.mrb[72].mxu0 %vm1197_vm1, %v3079_v35 }
 0x46c   : > { %9703 = vmatpush3.bf16.msra.mxu0 %v10089_v3  ;;  %9710 = vmatprep.mubr.msk.bf16.mxu0 %vm10541_vm0, %v10540_v0 }
 0x46d   : > { %9704 = vmatprep.subr.bf16.mxu0 %v10540_v0 }
 0x470   : > { %9705 = vmatpush3.bf16.msra.mxu0 %v10090_v18 }
 0x471   : > { %9706 = vmatprep.subr.bf16.mxu0 %v10540_v0 }
 0x474   : > { %9707 = vmatpush3.bf16.msra.mxu0 %v10091_v15 }
 0x475   : > { %9708 = vmatprep.subr.bf16.mxu0 %v10540_v0 }
 0x478   : > { %9709 = vmatpush3.bf16.msra.mxu0 %v10092_v16 }
 0x479   : > { %9714 = vmatprep.subr.bf16.mxu0 %v10540_v0 }
 0x47b   : > { %9711 = vmatmul.mubr.msk.bf16.vlgmr.msra.gmra.mrb[76].mxu0 %vm1197_vm1, %v3159_v46 }
 0x47c   : > { %9715 = vmatpush3.bf16.msra.mxu0 %v10093_v19  ;;  %9722 = vmatprep.mubr.msk.bf16.mxu0 %vm10541_vm0, %v10540_v0 }
 0x47d   : > { %9716 = vmatprep.subr.bf16.mxu0 %v10540_v0 }
 0x480   : > { %9717 = vmatpush3.bf16.msra.mxu0 %v10094_v20 }
 0x481   : > { %9718 = vmatprep.subr.bf16.mxu0 %v10540_v0 }
 0x484   : > { %9719 = vmatpush3.bf16.msra.mxu0 %v10095_v23 }
 0x485   : > { %9720 = vmatprep.subr.bf16.mxu0 %v10540_v0 }
 0x488   : > { %9721 = vmatpush3.bf16.msra.mxu0 %v10096_v31 }
 0x489   : > { %9726 = vmatprep.subr.bf16.mxu0 %v10540_v0 }
 0x48b   : > { %9723 = vmatmul.mubr.msk.bf16.vlgmr.msra.gmra.mrb[80].mxu0 %vm1197_vm1, %v3239_v51 }
 0x48c   : > { %9727 = vmatpush3.bf16.msra.mxu0 %v10097_v24  ;;  %9734 = vmatprep.mubr.msk.bf16.mxu0 %vm10541_vm0, %v10540_v0 }
 0x48d   : > { %9728 = vmatprep.subr.bf16.mxu0 %v10540_v0 }
 0x490   : > { %9729 = vmatpush3.bf16.msra.mxu0 %v10098_v27 }
 0x491   : > { %9730 = vmatprep.subr.bf16.mxu0 %v10540_v0 }
 0x494   : > { %9731 = vmatpush3.bf16.msra.mxu0 %v10099_v48 }
 0x495   : > { %9732 = vmatprep.subr.bf16.mxu0 %v10540_v0 }
 0x498   : > { %9733 = vmatpush3.bf16.msra.mxu0 %v10100_v9 }
 0x499   : > { %3962 = vmatprep.subr.bf16.mxu0 %v10121_v33 }
 0x49b   : > { %9735 = vmatmul.mubr.msk.bf16.vlgmr.msra.gmra.mrb[84].mxu0 %vm1197_vm1, %v3319_v32 }
 0x49c   : > { %3994 = vmatprep.mubr.bf16.mxu0 %v10542_v2  ;;  %3963 = vmatpush1.bf16.msra.mxu0 %v10119_v45 }
 0x49d   : > { %3964 = vmatprep.subr.bf16.mxu0 %v10124_v25  ;;  %v10149_v25 = vld [vmem:[%s13018_s17 + $0x88] ss:$8 sps:$4 sm:$0xff]  }
 0x4a0   : > { %3965 = vmatpush1.bf16.msra.mxu0 %v10122_v37  ;;  %v8355_v37 = vld [vmem:[%s13018_s17 + $0x98] sm:$0x33] }
 0x4ee   : > { %v2764_v29 = vpop.f32.mrb[52].mxu0 }
 0x4ef   : > { %v9640_v34 = vpop.f32.mrb[53].mxu0 }
 0x4f0   : > { %v2767_v35 = vpop.f32.mrb[54].mxu0 }
 0x4f1   : > { %v9641_v40 = vpop.f32.mrb[55].mxu0 }
 0x4fe   : > { %v2832_v50 = vpop.f32.mrb[56].mxu0 }
 0x4ff   : > { %v2833_v13 = vadd.f32 %v2832_v50, %v2764_v29  ;;  %v9652_v41 = vpop.f32.mrb[57].mxu0 }
 0x500   : > { %v2835_v59 = vpop.f32.mrb[58].mxu0 }
 0x501   : > { %v2836_v44 = vadd.f32 %v2835_v59, %v2767_v35  ;;  %v9653_v46 = vpop.f32.mrb[59].mxu0 }
 0x50e   : > { %v2910_v49 = vpop.f32.mrb[60].mxu0 }
 0x50f   : > { %v2917_v52 = vadd.f32 %v2910_v49, %v2833_v13  ;;  %v9664_v36 = vpop.f32.mrb[61].mxu0 }
 0x510   : > { %v2913_v38 = vpop.f32.mrb[62].mxu0 }
 0x511   : > { %v2918_v39 = vadd.f32 %v2913_v38, %v2836_v44  ;;  %v9665_v26 = vpop.f32.mrb[63].mxu0 }
 0x51e   : > { %v2990_v51 = vpop.f32.mrb[64].mxu0 }
 0x51f   : > { %v2997_v7 = vadd.f32 %v2990_v51, %v2917_v52  ;;  %v9676_v57 = vpop.f32.mrb[65].mxu0 }
 0x520   : > { %v2993_v58 = vpop.f32.mrb[66].mxu0 }
 0x521   : > { %v2998_v61 = vadd.f32 %v2993_v58, %v2918_v39  ;;  %v9677_v53 = vpop.f32.mrb[67].mxu0 }
 0x52e   : > { %v3070_v54 = vpop.f32.mrb[68].mxu0 }
 0x52f   : > { %v3077_v32 = vadd.f32 %v3070_v54, %v2997_v7  ;;  %v9688_v55 = vpop.f32.mrb[69].mxu0 }
 0x530   : > { %v3073_v5 = vpop.f32.mrb[70].mxu0 }
 0x531   : > { %v3078_v8 = vadd.f32 %v3073_v5, %v2998_v61  ;;  %v9689_v12 = vpop.f32.mrb[71].mxu0 }
 0x53e   : > { %v3150_v62 = vpop.f32.mrb[72].mxu0 }
 0x53f   : > { %v3157_v28 = vadd.f32 %v3150_v62, %v3077_v32  ;;  %v9700_v3 = vpop.f32.mrb[73].mxu0  ;;  %v10130_v62 = vld [vmem:[%s13018_s17 + $0x4] ss:$8 sps:$4 sm:$0xff]  }
 0x540   : > { %v3153_v18 = vpop.f32.mrb[74].mxu0  ;;  %v10115_v3 = vld [vmem:[%s13017_s16 + $0x70] sm:$0xff]  }
 0x541   : > { %v3158_v15 = vadd.f32 %v3153_v18, %v3078_v8  ;;  %v9701_v16 = vpop.f32.mrb[75].mxu0  ;;  %v10102_v8 = vld [vmem:[%s13017_s16 + $0x8] sm:$0xff]   ;;  %v10116_v18 = vld [vmem:[%s13017_s16 + $0x78] sm:$0xff]  }
 0x542   : > { %v10118_v16 = vld [vmem:[%s13017_s16 + $0x88] sm:$0xff]  }
 0x54e   : > { %v3230_v19 = vpop.f32.mrb[76].mxu0 }
 0x54f   : > { %v3237_v20 = vadd.f32 %v3230_v19, %v3157_v28  ;;  %v9712_v23 = vpop.f32.mrb[77].mxu0  ;;  %v10114_v28 = vld [vmem:[%s13017_s16 + $0x68] sm:$0xff]   ;;  %v10127_v19 = vld [vmem:[%s13017_s16 + $0x90] sm:$0xff]  }
 0x550   : > { %v3233_v31 = vpop.f32.mrb[78].mxu0  ;;  %v10145_v23 = vld [vmem:[%s13017_s16 + $0xa0] sm:$0xff]  }
 0x551   : > { %v3238_v24 = vadd.f32 %v3233_v31, %v3158_v15  ;;  %v9713_v27 = vpop.f32.mrb[79].mxu0  ;;  %v10117_v15 = vld [vmem:[%s13017_s16 + $0x80] sm:$0xff]   ;;  %v10154_v31 = vld [vmem:[%s13017_s16 + $0xa8] sm:$0xff]  }
 0x552   : > { %v10172_v27 = vld [vmem:[%s13017_s16 + $0xb8] sm:$0xff]  }
 0x55e   : > { %v3310_v48 = vpop.f32.mrb[80].mxu0 }
 0x55f   : > { %v3317_v9 = vadd.f32 %v3310_v48, %v3237_v20  ;;  %v9724_v29 = vpop.f32.mrb[81].mxu0  ;;  %v10136_v20 = vld [vmem:[%s13017_s16 + $0x98] sm:$0xff]   ;;  %v10181_v48 = vld [vmem:[%s13017_s16 + $0xc0] sm:$0xff]  }
 0x560   : > { %v3313_v34 = vpop.f32.mrb[82].mxu0 }
 0x561   : > { %v3318_v35 = vadd.f32 %v3313_v34, %v3238_v24  ;;  %v9725_v40 = vpop.f32.mrb[83].mxu0  ;;  %v10163_v24 = vld [vmem:[%s13017_s16 + $0xb0] sm:$0xff]  }
 0x56e   : > { %v3390_v50 = vpop.f32.mrb[84].mxu0 }
 0x56f   : > { %v3397_v13 = vadd.f32 %v3390_v50, %v3317_v9  ;;  %v9736_v41 = vpop.f32.mrb[85].mxu0 }
 0x570   : > { %v3393_v59 = vpop.f32.mrb[86].mxu0 }
 0x571   : > { %v3411_v44 = vadd.f32 %v11006_v47, %v3397_v13  ;;  %v3398_v46 = vadd.f32 %v3393_v59, %v3318_v35  ;;  %v9737_v49 = vpop.f32.mrb[87].mxu0 }
 0x572   : > { %v3918_v49 = vld [vmem:[%s13018_s17 + $0x20] sm:$0x33] }
 0x573   : > { %v3413_v52 = vmin.f32 %v3411_v44, 0.0  ;;  %v3412_v36 = vadd.f32 %v11014_v4, %v3398_v46  ;;  %vm3423_vm2 = vcmp.gt.f32.partialorder %v3411_v44, 0.0  ;;  %v10101_v4 = vld [vmem:[%s13017_s16] sm:$0xff]  }
 0x575   : > { %v3415_v38 = vmul.f32 1.442695, %v3413_v52  ;;  %v3414_v39 = vmin.f32 %v3412_v36, 0.0  ;;  %vm3424_vm3 = vcmp.gt.f32.partialorder %v3412_v36, 0.0  ;;  %v10131_v52 = vld [vmem:[%s13018_s17 + $0x10] ss:$8 sps:$4 sm:$0xff]  }
 0x577   : > { %10528 = vpow2.f32 %v3415_v38  ;;  %v3417_v26 = vmul.f32 1.442695, %v3414_v39  ;;  %v8334_v38 = vcombine.low %v3918_v49, %v3918_v49 }
 0x579   : > { %10530 = vpow2.f32 %v3417_v26 }
 0x581   : > { %v10529_v51 = vpop.eup %10528 }
 0x582   : > { %v8265_v7 = vadd.f32 -1.0, %v10529_v51 }
 0x583   : > { %v10531_v57 = vpop.eup %10530 }
 0x584   : > { %v3421_v58 = vmul.f32 1.6732632, %v8265_v7  ;;  %v8266_v61 = vadd.f32 -1.0, %v10531_v57  ;;  %v4034_v7 = vsel %vm3955_vm4, %v8334_v38, 0  ;;  %v10139_v57 = vld [vmem:[%s13018_s17 + $0x54] ss:$8 sps:$4 sm:$0xff]  }
 0x586   : > { %v3425_v53 = vsel %vm3423_vm2, %v3411_v44, %v3421_v58  ;;  %v3422_v54 = vmul.f32 1.6732632, %v8266_v61  ;;  %v10133_v44 = vld [vmem:[%s13018_s17 + $0x14] ss:$8 sps:$4 sm:$0xff]  }
 0x587   : > { %v3427_v32 = vmul.f32 1.050701, %v3425_v53  ;;  %v10137_v53 = vld [vmem:[%s13018_s17 + $0x50] ss:$8 sps:$4 sm:$0xff]  }
 0x588   : > { %v3426_v47 = vsel %vm3424_vm3, %v3412_v36, %v3422_v54  ;;  %v8335_v36 = vcombine.high %v3918_v49, %v3918_v49  ;;  %v10142_v54 = vld [vmem:[%s13018_s17 + $0x64] ss:$8 sps:$4 sm:$0xff]   ;;  %v10167_v49 = vld [vmem:[%s13018_s17 + $0xd8] ss:$8 sps:$4 sm:$0xff]  }
 0x589   : > { %v3428_v55 = vmul.f32 1.050701, %v3426_v47  ;;  %v8342_v47 = vld [vmem:[%s13018_s17 + $0x70] sm:$0x33] }
 0x58a   : > { %v8347_v45 = vcombine.low %v8342_v47, %v8342_v47 }
 0x58b   : > { %v3429_v5 = vpack.c.bf16 %v3428_v55, %v3427_v32 }
 0x58d   : > { %9739 = vmatpush3.bf16.msra.mxu1 %v3429_v5  ;;  %v10140_v5 = vld [vmem:[%s13018_s17 + $0x60] ss:$8 sps:$4 sm:$0xff]  }
 0x58e   : > { %6180 = vmatprep.subr.bf16.mxu1 %v1578_v60  ;;  %v10107_v60 = vld [vmem:[%s13017_s16 + $0x30] sm:$0xff]  }
 0x590   : > { %9741 = vmatmul.mubr.msk.bf16.vlgmr.msra.gmra.mrb[104].mxu1 %vm1792_vm15, %v10101_v4 }
 0x591   : > { %6181 = vmatpush1.bf16.msra.mxu1 %v1577_v42  ;;  %9744 = vmatprep.mubr.msk.bf16.mxu1 %vm10541_vm0, %v10540_v0  ;;  %v10103_v42 = vld [vmem:[%s13017_s16 + $0x10] sm:$0xff]  }
 0x592   : > { %6182 = vmatprep.subr.bf16.mxu1 %v1580_v22  ;;  %v10112_v22 = vld [vmem:[%s13017_s16 + $0x58] sm:$0xff]  }
 0x595   : > { %6183 = vmatpush1.bf16.msra.mxu1 %v1579_v10  ;;  %v10111_v10 = vld [vmem:[%s13017_s16 + $0x50] sm:$0xff]  }
 0x596   : > { %6184 = vmatprep.subr.bf16.mxu1 %v1582_v17  ;;  %v8326_v17 = vcombine.low %v8321_v11, %v8321_v11 }
 0x598   : > { %9745 = vmatmul.mubr.msk.bf16.gmra.mrb[108].mxu1 %vm1792_vm15, %v10102_v8  ;;  %v3957_v12 = vsel %vm3955_vm4, %v8326_v17, 0  ;;  %v8348_v8 = vcombine.high %v8342_v47, %v8342_v47 }
 0x599   : > { %6185 = vmatpush1.bf16.msra.mxu1 %v1581_v6  ;;  %9748 = vmatprep.mubr.msk.bf16.mxu1 %vm10541_vm0, %v10540_v0  ;;  %v8327_v6 = vcombine.high %v8321_v11, %v8321_v11  ;;  %v8360_v11 = vcombine.low %v8355_v37, %v8355_v37 }
 0x59b   : > { %8328 = vmatprep.subr.msk.bf16.mxu0 %vm3955_vm4, %v8327_v6 }
 0x59c   : > { %3967 = vmatpush1.bf16.msra.mxu0 %v3957_v12 }
 0x59d   : > { %4039 = vmatprep.subr.bf16.mxu0 %v10130_v62  ;;  %v4206_v62 = vsel %vm3955_vm4, %v8360_v11, 0 }
 0x5a0   : > { %9749 = vmatmul.mubr.msk.bf16.gmra.mrb[112].mxu1 %vm1792_vm15, %v10103_v42 }
 0x5a1   : > { %9752 = vmatprep.mubr.msk.bf16.mxu1 %vm10541_vm0, %v10540_v0 }
 0x5a8   : > { %9753 = vmatmul.mubr.msk.bf16.gmra.mrb[116].mxu1 %vm1792_vm15, %v10104_v43  ;;  %v4118_v43 = vsel %vm3955_vm4, %v8347_v45, 0 }
 0x5a9   : > { %9756 = vmatprep.mubr.msk.bf16.mxu1 %vm10541_vm0, %v10540_v0 }
 0x5b0   : > { %9757 = vmatmul.mubr.msk.bf16.gmra.mrb[120].mxu1 %vm1792_vm15, %v10105_v30  ;;  %v10148_v30 = vld [vmem:[%s13018_s17 + $0x7c] ss:$8 sps:$4 sm:$0xff]  }
 0x5b1   : > { %9760 = vmatprep.mubr.msk.bf16.mxu1 %vm10541_vm0, %v10540_v0 }
 0x5b8   : > { %9761 = vmatmul.mubr.msk.bf16.gmra.mrb[124].mxu1 %vm1792_vm15, %v10106_v56 }
 0x5b9   : > { %9764 = vmatprep.mubr.msk.bf16.mxu1 %vm10541_vm0, %v10540_v0 }
 0x5c0   : > { %9765 = vmatmul.mubr.msk.bf16.gmra.mrb[128].mxu1 %vm1792_vm15, %v10107_v60 }
 0x5c1   : > { %9768 = vmatprep.mubr.msk.bf16.mxu1 %vm10541_vm0, %v10540_v0 }
 0x5c8   : > { %9769 = vmatmul.mubr.msk.bf16.gmra.mrb[132].mxu1 %vm1792_vm15, %v10108_v1  ;;  %v10146_v1 = vld [vmem:[%s13018_s17 + $0x78] ss:$8 sps:$4 sm:$0xff]  }
 0x5c9   : > { %9772 = vmatprep.mubr.msk.bf16.mxu1 %vm10541_vm0, %v10540_v0 }
 0x5d0   : > { %9773 = vmatmul.mubr.msk.bf16.gmra.mrb[136].mxu1 %vm1792_vm15, %v10109_v14 }
 0x5d1   : > { %9776 = vmatprep.mubr.msk.bf16.mxu1 %vm10541_vm0, %v10540_v0 }
 0x5d8   : > { %9777 = vmatmul.mubr.msk.bf16.gmra.mrb[140].mxu1 %vm1792_vm15, %v10110_v21  ;;  %v10151_v21 = vld [vmem:[%s13018_s17 + $0x8c] ss:$8 sps:$4 sm:$0xff]  }
 0x5d9   : > { %9780 = vmatprep.mubr.msk.bf16.mxu1 %vm10541_vm0, %v10540_v0 }
 0x5e0   : > { %9781 = vmatmul.mubr.msk.bf16.gmra.mrb[144].mxu1 %vm1792_vm15, %v10111_v10 }
 0x5e1   : > { %9784 = vmatprep.mubr.msk.bf16.mxu1 %vm10541_vm0, %v10540_v0 }
 0x5e8   : > { %9785 = vmatmul.mubr.msk.bf16.gmra.mrb[148].mxu1 %vm1792_vm15, %v10112_v22 }
 0x5e9   : > { %9788 = vmatprep.mubr.msk.bf16.mxu1 %vm10541_vm0, %v10540_v0 }
 0x5f0   : > { %9789 = vmatmul.mubr.msk.bf16.gmra.mrb[152].mxu1 %vm1792_vm15, %v10113_v63  ;;  %v8361_v63 = vcombine.high %v8355_v37, %v8355_v37  ;;  %v10185_v37 = vld [vmem:[%s13018_s17 + $0x128] ss:$8 sps:$4 sm:$0xff]  }
 0x5f1   : > { %9792 = vmatprep.mubr.msk.bf16.mxu1 %vm10541_vm0, %v10540_v0 }
 0x5f8   : > { %9793 = vmatmul.mubr.msk.bf16.gmra.mrb[156].mxu1 %vm1792_vm15, %v10114_v28  ;;  %v10157_v28 = vld [vmem:[%s13018_s17 + $0xa4] ss:$8 sps:$4 sm:$0xff]  }
 0x5f9   : > { %9796 = vmatprep.mubr.msk.bf16.mxu1 %vm10541_vm0, %v10540_v0 }
 0x600   : > { %9797 = vmatmul.mubr.msk.bf16.gmra.mrb[160].mxu1 %vm1792_vm15, %v10115_v3 }
 0x601   : > { %9800 = vmatprep.mubr.msk.bf16.mxu1 %vm10541_vm0, %v10540_v0 }
 0x608   : > { %9801 = vmatmul.mubr.msk.bf16.gmra.mrb[164].mxu1 %vm1792_vm15, %v10116_v18 }
 0x609   : > { %9804 = vmatprep.mubr.msk.bf16.mxu1 %vm10541_vm0, %v10540_v0 }
 0x610   : > { %9805 = vmatmul.mubr.msk.bf16.gmra.mrb[168].mxu1 %vm1792_vm15, %v10117_v15  ;;  %v10155_v15 = vld [vmem:[%s13018_s17 + $0xa0] ss:$8 sps:$4 sm:$0xff]  }
 0x611   : > { %9808 = vmatprep.mubr.msk.bf16.mxu1 %vm10541_vm0, %v10540_v0 }
 0x618   : > { %9809 = vmatmul.mubr.msk.bf16.gmra.mrb[172].mxu1 %vm1792_vm15, %v10118_v16  ;;  %v10160_v16 = vld [vmem:[%s13018_s17 + $0xb4] ss:$8 sps:$4 sm:$0xff]  }
 0x619   : > { %9812 = vmatprep.mubr.msk.bf16.mxu1 %vm10541_vm0, %v10540_v0 }
 0x620   : > { %9813 = vmatmul.mubr.msk.bf16.gmra.mrb[176].mxu1 %vm1792_vm15, %v10127_v19  ;;  %v8368_v19 = vld [vmem:[%s13018_s17 + $0xc0] sm:$0x33] }
 0x621   : > { %9816 = vmatprep.mubr.msk.bf16.mxu1 %vm10541_vm0, %v10540_v0 }
 0x628   : > { %9817 = vmatmul.mubr.msk.bf16.gmra.mrb[180].mxu1 %vm1792_vm15, %v10136_v20 }
 0x629   : > { %9820 = vmatprep.mubr.msk.bf16.mxu1 %vm10541_vm0, %v10540_v0 }
 0x630   : > { %9821 = vmatmul.mubr.msk.bf16.gmra.mrb[184].mxu1 %vm1792_vm15, %v10145_v23 }
 0x631   : > { %9824 = vmatprep.mubr.msk.bf16.mxu1 %vm10541_vm0, %v10540_v0 }
 0x638   : > { %9825 = vmatmul.mubr.msk.bf16.gmra.mrb[188].mxu1 %vm1792_vm15, %v10154_v31  ;;  %v10158_v31 = vld [vmem:[%s13018_s17 + $0xb0] ss:$8 sps:$4 sm:$0xff]  }
 0x639   : > { %9828 = vmatprep.mubr.msk.bf16.mxu1 %vm10541_vm0, %v10540_v0 }
 0x640   : > { %9829 = vmatmul.mubr.msk.bf16.gmra.mrb[192].mxu1 %vm1792_vm15, %v10163_v24 }
 0x641   : > { %9832 = vmatprep.mubr.msk.bf16.mxu1 %vm10541_vm0, %v10540_v0 }
 0x648   : > { %9833 = vmatmul.mubr.msk.bf16.gmra.mrb[196].mxu1 %vm1792_vm15, %v10172_v27  ;;  %v8374_v27 = vcombine.high %v8368_v19, %v8368_v19 }
 0x649   : > { %9836 = vmatprep.mubr.msk.bf16.mxu1 %vm10541_vm0, %v10540_v0  ;;  %v10128_v0 = vld [vmem:[%s13018_s17] ss:$8 sps:$4 sm:$0xff]  }
 0x650   : > { %9837 = vmatmul.mubr.msk.bf16.gmra.mrb[200].mxu1 %vm1792_vm15, %v10181_v48  ;;  %v8373_v48 = vcombine.low %v8368_v19, %v8368_v19 }
 0x651   : > { %6212 = vmatprep.mubr.bf16.mxu1 %v10542_v2 }
 0x663   : > { %v3714_v9 = vpop.f32.mrb[104].mxu1 }
 0x664   : > { %v9742_v29 = vpop.f32.mrb[105].mxu1 }
 0x665   : > { %v3717_v34 = vpop.f32.mrb[106].mxu1 }
 0x666   : > { %v3913_v35 = vpack.c.bf16 %v3717_v34, %v3714_v9  ;;  %v9743_v40 = vpop.f32.mrb[107].mxu1  ;;  %v4294_v34 = vsel %vm3955_vm4, %v8373_v48, 0 }
 0x66b   : > { %v3722_v50 = vpop.f32.mrb[108].mxu1 }
 0x66c   : > { %v9746_v13 = vpop.f32.mrb[109].mxu1 }
 0x66d   : > { %v3725_v41 = vpop.f32.mrb[110].mxu1  ;;  %v10164_v13 = vld [vmem:[%s13018_s17 + $0xc8] ss:$8 sps:$4 sm:$0xff]  }
 0x66e   : > { %v3919_v59 = vpack.c.bf16 %v3725_v41, %v3722_v50  ;;  %v9747_v46 = vpop.f32.mrb[111].mxu1 }
 0x66f   : > { %v8381_v46 = vld [vmem:[%s13018_s17 + $0xe8] sm:$0x33] }
 0x670   : > { %8329 = vmatmul.mubr.msk.bf16.vlgmr.msra.gmra.mrb[88].mxu0 %vm3951_vm5, %v3919_v59 }
 0x671   : > { %4040 = vmatpush1.bf16.msra.mxu0 %v10128_v0  ;;  %4071 = vmatprep.mubr.bf16.mxu0 %v10542_v2  ;;  %v10169_v0 = vld [vmem:[%s13018_s17 + $0xdc] ss:$8 sps:$4 sm:$0xff]  }
 0x672   : > { %4041 = vmatprep.subr.bf16.mxu0 %v10133_v44 }
 0x673   : > { %v3730_v39 = vpop.f32.mrb[112].mxu1 }
 0x674   : > { %v9750_v26 = vpop.f32.mrb[113].mxu1 }
 0x675   : > { %4042 = vmatpush1.bf16.msra.mxu0 %v10131_v52  ;;  %v3733_v51 = vpop.f32.mrb[114].mxu1  ;;  %v8387_v52 = vcombine.high %v8381_v46, %v8381_v46 }
 0x676   : > { %8336 = vmatprep.subr.msk.bf16.mxu0 %vm3955_vm4, %v8335_v36  ;;  %v4082_v58 = vpack.c.bf16 %v3733_v51, %v3730_v39  ;;  %v9751_v61 = vpop.f32.mrb[115].mxu1  ;;  %v8386_v36 = vcombine.low %v8381_v46, %v8381_v46  ;;  %v10201_v46 = vld [vmem:[%s13018_s17 + $0x178] ss:$8 sps:$4 sm:$0xff]  }
 0x677   : > { %v10173_v61 = vld [vmem:[%s13018_s17 + $0xf0] ss:$8 sps:$4 sm:$0xff]  }
 0x678   : > { %v4382_v51 = vsel %vm3955_vm4, %v8386_v36, 0 }
 0x679   : > { %4044 = vmatpush1.bf16.msra.mxu0 %v4034_v7  ;;  %v10175_v7 = vld [vmem:[%s13018_s17 + $0xf4] ss:$8 sps:$4 sm:$0xff]  }
 0x67a   : > { %4123 = vmatprep.subr.bf16.mxu0 %v10139_v57 }
 0x67b   : > { %v3738_v32 = vpop.f32.mrb[116].mxu1 }
 0x67c   : > { %8337 = vmatmul.mubr.msk.bf16.vlgmr.msra.gmra.mrb[88].mxu0 %vm3951_vm5, %v3913_v35  ;;  %v9754_v55 = vpop.f32.mrb[117].mxu1  ;;  %v10166_v35 = vld [vmem:[%s13018_s17 + $0xcc] ss:$8 sps:$4 sm:$0xff]  }
 0x67d   : > { %4124 = vmatpush1.bf16.msra.mxu0 %v10137_v53  ;;  %4155 = vmatprep.mubr.bf16.mxu0 %v10542_v2  ;;  %v3741_v4 = vpop.f32.mrb[118].mxu1  ;;  %v10178_v53 = vld [vmem:[%s13018_s17 + $0x104] ss:$8 sps:$4 sm:$0xff]   ;;  %v10176_v55 = vld [vmem:[%s13018_s17 + $0x100] ss:$8 sps:$4 sm:$0xff]  }
 0x67e   : > { %4125 = vmatprep.subr.bf16.mxu0 %v10142_v54  ;;  %v4170_v33 = vpack.c.bf16 %v3741_v4, %v3738_v32  ;;  %v9755_v42 = vpop.f32.mrb[119].mxu1  ;;  %v8394_v54 = vld [vmem:[%s13018_s17 + $0x110] sm:$0x33] }
 0x67f   : > { %v8400_v4 = vcombine.high %v8394_v54, %v8394_v54 }
 0x681   : > { %4126 = vmatpush1.bf16.msra.mxu0 %v10140_v5 }
 0x682   : > { %8349 = vmatprep.subr.msk.bf16.mxu0 %vm3955_vm4, %v8348_v8  ;;  %v8399_v8 = vcombine.low %v8394_v54, %v8394_v54 }
 0x683   : > { %v3746_v56 = vpop.f32.mrb[120].mxu1 }
 0x684   : > { %v9758_v60 = vpop.f32.mrb[121].mxu1  ;;  %v4470_v42 = vsel %vm3955_vm4, %v8399_v8, 0 }
 0x685   : > { %4128 = vmatpush1.bf16.msra.mxu0 %v4118_v43  ;;  %v3749_v14 = vpop.f32.mrb[122].mxu1  ;;  %v10184_v43 = vld [vmem:[%s13018_s17 + $0x11c] ss:$8 sps:$4 sm:$0xff]   ;;  %v10182_v60 = vld [vmem:[%s13018_s17 + $0x118] ss:$8 sps:$4 sm:$0xff]  }
 0x686   : > { %4211 = vmatprep.subr.bf16.mxu0 %v10148_v30  ;;  %v4258_v10 = vpack.c.bf16 %v3749_v14, %v3746_v56  ;;  %v9759_v22 = vpop.f32.mrb[123].mxu1  ;;  %v10187_v14 = vld [vmem:[%s13018_s17 + $0x12c] ss:$8 sps:$4 sm:$0xff]  }
 0x687   : > { %v8407_v22 = vld [vmem:[%s13018_s17 + $0x138] sm:$0x33] }
 0x688   : > { %8350 = vmatmul.mubr.msk.bf16.vlgmr.msra.gmra.mrb[88].mxu0 %vm3951_vm5, %v4082_v58 }
 0x689   : > { %4212 = vmatpush1.bf16.msra.mxu0 %v10146_v1  ;;  %4243 = vmatprep.mubr.bf16.mxu0 %v10542_v2 }
 0x68a   : > { %4213 = vmatprep.subr.bf16.mxu0 %v10151_v21 }
 0x68b   : > { %v11891_v6 = vpop.f32.mrb[124].mxu1 }
 0x68c   : > { %v9762_v17 = vpop.f32.mrb[125].mxu1 }
 0x68d   : > { %4214 = vmatpush1.bf16.msra.mxu0 %v10149_v25  ;;  %v3757_v12 = vpop.f32.mrb[126].mxu1  ;;  %v8413_v25 = vcombine.high %v8407_v22, %v8407_v22 }
 0x68e   : > { %8362 = vmatprep.subr.msk.bf16.mxu0 %vm3955_vm4, %v8361_v63  ;;  %v4346_v3 = vpack.c.bf16 %v3757_v12, %v11891_v6  ;;  %v9763_v18 = vpop.f32.mrb[127].mxu1  ;;  %v8412_v63 = vcombine.low %v8407_v22, %v8407_v22 }
 0x68f   : > { %v10190_v18 = vld [vmem:[%s13018_s17 + $0x140] ss:$8 sps:$4 sm:$0xff]  }
 0x690   : > { %v4558_v12 = vsel %vm3955_vm4, %v8412_v63, 0  ;;  %v10217_v63 = vld [vmem:[%s13018_s17 + $0x1c8] ss:$8 sps:$4 sm:$0xff]  }
 0x691   : > { %4216 = vmatpush1.bf16.msra.mxu0 %v4206_v62  ;;  %v10192_v62 = vld [vmem:[%s13018_s17 + $0x144] ss:$8 sps:$4 sm:$0xff]  }
 0x692   : > { %4299 = vmatprep.subr.bf16.mxu0 %v10157_v28 }
 0x693   : > { %v11908_v20 = vpop.f32.mrb[128].mxu1 }
 0x694   : > { %8363 = vmatmul.mubr.msk.bf16.vlgmr.msra.gmra.mrb[88].mxu0 %vm3951_vm5, %v4170_v33  ;;  %v9766_v23 = vpop.f32.mrb[129].mxu1 }
 0x695   : > { %4300 = vmatpush1.bf16.msra.mxu0 %v10155_v15  ;;  %4331 = vmatprep.mubr.bf16.mxu0 %v10542_v2  ;;  %v11915_v24 = vpop.f32.mrb[130].mxu1  ;;  %v10195_v15 = vld [vmem:[%s13018_s17 + $0x154] ss:$8 sps:$4 sm:$0xff]   ;;  %v10193_v23 = vld [vmem:[%s13018_s17 + $0x150] ss:$8 sps:$4 sm:$0xff]  }
 0x696   : > { %4301 = vmatprep.subr.bf16.mxu0 %v10160_v16  ;;  %v4434_v9 = vpack.c.bf16 %v11915_v24, %v11908_v20  ;;  %v9767_v29 = vpop.f32.mrb[131].mxu1  ;;  %v8420_v16 = vld [vmem:[%s13018_s17 + $0x160] sm:$0x33] }
 0x697   : > { %v8426_v24 = vcombine.high %v8420_v16, %v8420_v16 }
 0x699   : > { %4302 = vmatpush1.bf16.msra.mxu0 %v10158_v31 }
 0x69a   : > { %8375 = vmatprep.subr.msk.bf16.mxu0 %vm3955_vm4, %v8374_v27  ;;  %v8425_v27 = vcombine.low %v8420_v16, %v8420_v16  ;;  %v10222_v16 = vld [vmem:[%s13018_s17 + $0x1e0] ss:$8 sps:$4 sm:$0xff]  }
 0x69b   : > { %v11924_v40 = vpop.f32.mrb[132].mxu1 }
 0x69c   : > { %v9770_v50 = vpop.f32.mrb[133].mxu1  ;;  %v4646_v29 = vsel %vm3955_vm4, %v8425_v27, 0 }
 0x69d   : > { %4304 = vmatpush1.bf16.msra.mxu0 %v4294_v34  ;;  %v11929_v41 = vpop.f32.mrb[134].mxu1  ;;  %v10200_v34 = vld [vmem:[%s13018_s17 + $0x16c] ss:$8 sps:$4 sm:$0xff]   ;;  %v10198_v50 = vld [vmem:[%s13018_s17 + $0x168] ss:$8 sps:$4 sm:$0xff]  }
 0x69e   : > { %4387 = vmatprep.subr.bf16.mxu0 %v10166_v35  ;;  %v4522_v59 = vpack.c.bf16 %v11929_v41, %v11924_v40  ;;  %v9771_v44 = vpop.f32.mrb[135].mxu1  ;;  %v10203_v41 = vld [vmem:[%s13018_s17 + $0x17c] ss:$8 sps:$4 sm:$0xff]  }
 0x69f   : > { %v8433_v44 = vld [vmem:[%s13018_s17 + $0x188] sm:$0x33] }
 0x6a0   : > { %8376 = vmatmul.mubr.msk.bf16.vlgmr.msra.gmra.mrb[88].mxu0 %vm3951_vm5, %v4258_v10 }
 0x6a1   : > { %4388 = vmatpush1.bf16.msra.mxu0 %v10164_v13  ;;  %4419 = vmatprep.mubr.bf16.mxu0 %v10542_v2 }
 0x6a2   : > { %4389 = vmatprep.subr.bf16.mxu0 %v10169_v0 }
 0x6a3   : > { %v11944_v38 = vpop.f32.mrb[136].mxu1 }
 0x6a4   : > { %v9774_v39 = vpop.f32.mrb[137].mxu1 }
 0x6a5   : > { %4390 = vmatpush1.bf16.msra.mxu0 %v10167_v49  ;;  %v11946_v26 = vpop.f32.mrb[138].mxu1  ;;  %v8439_v49 = vcombine.high %v8433_v44, %v8433_v44 }
 0x6a6   : > { %8388 = vmatprep.subr.msk.bf16.mxu0 %vm3955_vm4, %v8387_v52  ;;  %v4610_v57 = vpack.c.bf16 %v11946_v26, %v11944_v38  ;;  %v9775_v58 = vpop.f32.mrb[139].mxu1  ;;  %v8438_v52 = vcombine.low %v8433_v44, %v8433_v44  ;;  %v10208_v26 = vld [vmem:[%s13018_s17 + $0x194] ss:$8 sps:$4 sm:$0xff]   ;;  %v10230_v44 = vld [vmem:[%s13018_s17 + $0x208] ss:$8 sps:$4 sm:$0xff]  }
 0x6a7   : > { %v10206_v58 = vld [vmem:[%s13018_s17 + $0x190] ss:$8 sps:$4 sm:$0xff]  }
 0x6a8   : > { %v4734_v38 = vsel %vm3955_vm4, %v8438_v52, 0 }
 0x6a9   : > { %4392 = vmatpush1.bf16.msra.mxu0 %v4382_v51 }
 0x6aa   : > { %4475 = vmatprep.subr.bf16.mxu0 %v10175_v7 }
 0x6ab   : > { %v11964_v47 = vpop.f32.mrb[140].mxu1 }
 0x6ac   : > { %8389 = vmatmul.mubr.msk.bf16.vlgmr.msra.gmra.mrb[88].mxu0 %vm3951_vm5, %v4346_v3  ;;  %v9778_v32 = vpop.f32.mrb[141].mxu1 }
 0x6ad   : > { %4476 = vmatpush1.bf16.msra.mxu0 %v10173_v61  ;;  %4507 = vmatprep.mubr.bf16.mxu0 %v10542_v2  ;;  %v11971_v5 = vpop.f32.mrb[142].mxu1  ;;  %v10211_v61 = vld [vmem:[%s13018_s17 + $0x1a4] ss:$8 sps:$4 sm:$0xff]  }
 0x6ae   : > { %4477 = vmatprep.subr.bf16.mxu0 %v10178_v53  ;;  %v4698_v45 = vpack.c.bf16 %v11971_v5, %v11964_v47  ;;  %v9779_v33 = vpop.f32.mrb[143].mxu1  ;;  %v8446_v53 = vld [vmem:[%s13018_s17 + $0x1b0] sm:$0x33]  ;;  %v10216_v5 = vld [vmem:[%s13018_s17 + $0x1bc] ss:$8 sps:$4 sm:$0xff]  }
 0x6af   : > { %v8452_v8 = vcombine.high %v8446_v53, %v8446_v53  ;;  %v8451_v33 = vcombine.low %v8446_v53, %v8446_v53 }
 0x6b1   : > { %4478 = vmatpush1.bf16.msra.mxu0 %v10176_v55  ;;  %v10209_v55 = vld [vmem:[%s13018_s17 + $0x1a0] ss:$8 sps:$4 sm:$0xff]   ;;  %v4822_v47 = vsel %vm3955_vm4, %v8451_v33, 0  ;;  %v10243_v33 = vld [vmem:[%s13018_s17 + $0x244] ss:$8 sps:$4 sm:$0xff]  }
 0x6b2   : > { %8401 = vmatprep.subr.msk.bf16.mxu0 %vm3955_vm4, %v8400_v4 }
 0x6b3   : > { %v11980_v30 = vpop.f32.mrb[144].mxu1 }
 0x6b4   : > { %v9782_v56 = vpop.f32.mrb[145].mxu1 }
 0x6b5   : > { %4480 = vmatpush1.bf16.msra.mxu0 %v4470_v42  ;;  %v11985_v1 = vpop.f32.mrb[146].mxu1 }
 0x6b6   : > { %4563 = vmatprep.subr.bf16.mxu0 %v10184_v43  ;;  %v4786_v21 = vpack.c.bf16 %v11985_v1, %v11980_v30  ;;  %v9783_v10 = vpop.f32.mrb[147].mxu1  ;;  %v10224_v1 = vld [vmem:[%s13018_s17 + $0x1e4] ss:$8 sps:$4 sm:$0xff]  }
 0x6b7   : > { %v10219_v10 = vld [vmem:[%s13018_s17 + $0x1cc] ss:$8 sps:$4 sm:$0xff]  }
 0x6b8   : > { %8402 = vmatmul.mubr.msk.bf16.vlgmr.msra.gmra.mrb[88].mxu0 %vm3951_vm5, %v4434_v9 }
 0x6b9   : > { %4564 = vmatpush1.bf16.msra.mxu0 %v10182_v60  ;;  %4595 = vmatprep.mubr.bf16.mxu0 %v10542_v2  ;;  %v10214_v60 = vld [vmem:[%s13018_s17 + $0x1b8] ss:$8 sps:$4 sm:$0xff]  }
 0x6ba   : > { %4565 = vmatprep.subr.bf16.mxu0 %v10187_v14 }
 0x6bb   : > { %v12003_v11 = vpop.f32.mrb[148].mxu1 }
 0x6bc   : > { %v9786_v6 = vpop.f32.mrb[149].mxu1 }
 0x6bd   : > { %4566 = vmatpush1.bf16.msra.mxu0 %v10185_v37  ;;  %v12005_v17 = vpop.f32.mrb[150].mxu1 }
 0x6be   : > { %8414 = vmatprep.subr.msk.bf16.mxu0 %vm3955_vm4, %v8413_v25  ;;  %v4874_v28 = vpack.c.bf16 %v12005_v17, %v12003_v11  ;;  %v9787_v3 = vpop.f32.mrb[151].mxu1  ;;  %v8459_v25 = vld [vmem:[%s13018_s17 + $0x1d8] sm:$0x33]  ;;  %v10232_v17 = vld [vmem:[%s13018_s17 + $0x20c] ss:$8 sps:$4 sm:$0xff]  }
 0x6bf   : > { %v8465_v6 = vcombine.high %v8459_v25, %v8459_v25 }
 0x6c1   : > { %4568 = vmatpush1.bf16.msra.mxu0 %v4558_v12  ;;  %v8464_v12 = vcombine.low %v8459_v25, %v8459_v25 }
 0x6c2   : > { %4651 = vmatprep.subr.bf16.mxu0 %v10192_v62 }
 0x6c3   : > { %v12023_v19 = vpop.f32.mrb[152].mxu1  ;;  %v4910_v30 = vsel %vm3955_vm4, %v8464_v12, 0 }
 0x6c4   : > { %8415 = vmatmul.mubr.msk.bf16.vlgmr.msra.gmra.mrb[88].mxu0 %vm3951_vm5, %v4522_v59  ;;  %v9790_v20 = vpop.f32.mrb[153].mxu1 }
 0x6c5   : > { %4652 = vmatpush1.bf16.msra.mxu0 %v10190_v18  ;;  %4683 = vmatprep.mubr.bf16.mxu0 %v10542_v2  ;;  %v12033_v31 = vpop.f32.mrb[154].mxu1  ;;  %v10227_v20 = vld [vmem:[%s13018_s17 + $0x1f4] ss:$8 sps:$4 sm:$0xff]  }
 0x6c6   : > { %4653 = vmatprep.subr.bf16.mxu0 %v10195_v15  ;;  %v4962_v48 = vpack.c.bf16 %v12033_v31, %v12023_v19  ;;  %v9791_v9 = vpop.f32.mrb[155].mxu1  ;;  %v10240_v31 = vld [vmem:[%s13018_s17 + $0x234] ss:$8 sps:$4 sm:$0xff]  }
 0x6c7   : > { %v10225_v9 = vld [vmem:[%s13018_s17 + $0x1f0] ss:$8 sps:$4 sm:$0xff]  }
 0x6c9   : > { %4654 = vmatpush1.bf16.msra.mxu0 %v10193_v23  ;;  %v8472_v23 = vld [vmem:[%s13018_s17 + $0x200] sm:$0x33] }
 0x6ca   : > { %8427 = vmatprep.subr.msk.bf16.mxu0 %vm3955_vm4, %v8426_v24 }
 0x6cb   : > { %v12042_v35 = vpop.f32.mrb[156].mxu1 }
 0x6cc   : > { %v9794_v40 = vpop.f32.mrb[157].mxu1 }
 0x6cd   : > { %4656 = vmatpush1.bf16.msra.mxu0 %v4646_v29  ;;  %v12047_v13 = vpop.f32.mrb[158].mxu1  ;;  %v8477_v40 = vcombine.low %v8472_v23, %v8472_v23 }
 0x6ce   : > { %4739 = vmatprep.subr.bf16.mxu0 %v10200_v34  ;;  %v5050_v0 = vpack.c.bf16 %v12047_v13, %v12042_v35  ;;  %v9795_v59 = vpop.f32.mrb[159].mxu1  ;;  %v8478_v34 = vcombine.high %v8472_v23, %v8472_v23  ;;  %v10326_v35 = vld [vmem:[%s13021_s20] sm:$0xff]   ;;  %v8511_v23 = vld [vmem:[%s13018_s17 + $0x278] sm:$0x33] }
 0x6cf   : > { %v4998_v11 = vsel %vm3955_vm4, %v8477_v40, 0  ;;  %8642 = vmatmul.mubr.msk.bf16.vlgmr.msra.gmra.mrb[204].mxu1 %vm1646_vm10, %v10326_v35  ;;  %v10273_v35 = vld [vmem:[%s13018_s17 + $0x2e0] ss:$8 sps:$4 sm:$0xff]  }
 0x6d0   : > { %8428 = vmatmul.mubr.msk.bf16.vlgmr.msra.gmra.mrb[88].mxu0 %vm3951_vm5, %v4610_v57  ;;  %6222 = vmatprep.mubr.bf16.mxu1 %v10542_v2 }
 0x6d1   : > { %4740 = vmatpush1.bf16.msra.mxu0 %v10198_v50  ;;  %4771 = vmatprep.mubr.bf16.mxu0 %v10542_v2 }
 0x6d2   : > { %4741 = vmatprep.subr.bf16.mxu0 %v10203_v41 }
 0x6d3   : > { %v12065_v36 = vpop.f32.mrb[160].mxu1 }
 0x6d4   : > { %v9798_v39 = vpop.f32.mrb[161].mxu1 }
 0x6d5   : > { %4742 = vmatpush1.bf16.msra.mxu0 %v10201_v46  ;;  %v12067_v51 = vpop.f32.mrb[162].mxu1 }
 0x6d6   : > { %8440 = vmatprep.subr.msk.bf16.mxu0 %vm3955_vm4, %v8439_v49  ;;  %v5138_v7 = vpack.c.bf16 %v12067_v51, %v12065_v36  ;;  %v9799_v57 = vpop.f32.mrb[163].mxu1  ;;  %v10235_v49 = vld [vmem:[%s13018_s17 + $0x21c] ss:$8 sps:$4 sm:$0xff]  }
 0x6d9   : > { %4744 = vmatpush1.bf16.msra.mxu0 %v4734_v38  ;;  %v8485_v38 = vld [vmem:[%s13018_s17 + $0x228] sm:$0x33] }
 0x6da   : > { %4827 = vmatprep.subr.bf16.mxu0 %v10208_v26  ;;  %v10233_v26 = vld [vmem:[%s13018_s17 + $0x218] ss:$8 sps:$4 sm:$0xff]   ;;  %v8491_v57 = vcombine.high %v8485_v38, %v8485_v38 }
 0x6db   : > { %v12085_v54 = vpop.f32.mrb[164].mxu1 }
 0x6dc   : > { %8441 = vmatmul.mubr.msk.bf16.vlgmr.msra.gmra.mrb[88].mxu0 %vm3951_vm5, %v4698_v45  ;;  %v9802_v32 = vpop.f32.mrb[165].mxu1 }
 0x6dd   : > { %4828 = vmatpush1.bf16.msra.mxu0 %v10206_v58  ;;  %4859 = vmatprep.mubr.bf16.mxu0 %v10542_v2  ;;  %v12095_v4 = vpop.f32.mrb[166].mxu1  ;;  %v8490_v58 = vcombine.low %v8485_v38, %v8485_v38 }
 0x6de   : > { %4829 = vmatprep.subr.bf16.mxu0 %v10211_v61  ;;  %v5226_v42 = vpack.c.bf16 %v12095_v4, %v12085_v54  ;;  %v9803_v43 = vpop.f32.mrb[167].mxu1  ;;  %v10329_v54 = vld [vmem:[%s13021_s20 + $0x18] sm:$0xff]  }
 0x6df   : > { %v5086_v19 = vsel %vm3955_vm4, %v8490_v58, 0  ;;  %v8498_v43 = vld [vmem:[%s13018_s17 + $0x250] sm:$0x33] }
 0x6e1   : > { %4830 = vmatpush1.bf16.msra.mxu0 %v10209_v55 }
 0x6e2   : > { %8453 = vmatprep.subr.msk.bf16.mxu0 %vm3955_vm4, %v8452_v8  ;;  %v10238_v8 = vld [vmem:[%s13018_s17 + $0x230] ss:$8 sps:$4 sm:$0xff]  }
 0x6e3   : > { %v12104_v45 = vpop.f32.mrb[168].mxu1 }
 0x6e4   : > { %v9806_v56 = vpop.f32.mrb[169].mxu1 }
 0x6e5   : > { %4832 = vmatpush1.bf16.msra.mxu0 %v4822_v47  ;;  %v12109_v14 = vpop.f32.mrb[170].mxu1  ;;  %v10241_v56 = vld [vmem:[%s13018_s17 + $0x240] ss:$8 sps:$4 sm:$0xff]  }
 0x6e6   : > { %4915 = vmatprep.subr.bf16.mxu0 %v10216_v5  ;;  %v5314_v22 = vpack.c.bf16 %v12109_v14, %v12104_v45  ;;  %v9807_v37 = vpop.f32.mrb[171].mxu1  ;;  %v10272_v45 = vld [vmem:[%s13018_s17 + $0x2d4] ss:$8 sps:$4 sm:$0xff]   ;;  %v10270_v14 = vld [vmem:[%s13018_s17 + $0x2d0] ss:$8 sps:$4 sm:$0xff]  }
 0x6e7   : > { %v8503_v37 = vcombine.low %v8498_v43, %v8498_v43 }
 0x6e8   : > { %8454 = vmatmul.mubr.msk.bf16.vlgmr.msra.gmra.mrb[88].mxu0 %vm3951_vm5, %v4786_v21 }
 0x6e9   : > { %4916 = vmatpush1.bf16.msra.mxu0 %v10214_v60  ;;  %4947 = vmatprep.mubr.bf16.mxu0 %v10542_v2  ;;  %v5174_v13 = vsel %vm3955_vm4, %v8503_v37, 0 }
 0x6ea   : > { %4917 = vmatprep.subr.bf16.mxu0 %v10219_v10  ;;  %v8504_v10 = vcombine.high %v8498_v43, %v8498_v43  ;;  %v8537_v43 = vld [vmem:[%s13018_s17 + $0x2c8] sm:$0x33] }
 0x6eb   : > { %v12127_v62 = vpop.f32.mrb[172].mxu1 }
 0x6ec   : > { %v9810_v3 = vpop.f32.mrb[173].mxu1 }
 0x6ed   : > { %4918 = vmatpush1.bf16.msra.mxu0 %v10217_v63  ;;  %v12129_v18 = vpop.f32.mrb[174].mxu1  ;;  %v10246_v3 = vld [vmem:[%s13018_s17 + $0x258] ss:$8 sps:$4 sm:$0xff]  }
 0x6ee   : > { %8466 = vmatprep.subr.msk.bf16.mxu0 %vm3955_vm4, %v8465_v6  ;;  %v5402_v21 = vpack.c.bf16 %v12129_v18, %v12127_v62  ;;  %v9811_v15 = vpop.f32.mrb[175].mxu1  ;;  %v10280_v62 = vld [vmem:[%s13018_s17 + $0x2fc] ss:$8 sps:$4 sm:$0xff]   ;;  %v10278_v18 = vld [vmem:[%s13018_s17 + $0x2f8] ss:$8 sps:$4 sm:$0xff]  }
 0x6f1   : > { %4920 = vmatpush1.bf16.msra.mxu0 %v4910_v30 }
 0x6f2   : > { %5003 = vmatprep.subr.bf16.mxu0 %v10224_v1  ;;  %v10251_v1 = vld [vmem:[%s13018_s17 + $0x26c] ss:$8 sps:$4 sm:$0xff]  }
 0x6f3   : > { %v12147_v24 = vpop.f32.mrb[176].mxu1 }
 0x6f4   : > { %8467 = vmatmul.mubr.msk.bf16.vlgmr.msra.gmra.mrb[88].mxu0 %vm3951_vm5, %v4874_v28  ;;  %v9814_v27 = vpop.f32.mrb[177].mxu1 }
 0x6f5   : > { %5004 = vmatpush1.bf16.msra.mxu0 %v10222_v16  ;;  %5035 = vmatprep.mubr.bf16.mxu0 %v10542_v2  ;;  %v12157_v29 = vpop.f32.mrb[178].mxu1  ;;  %v10249_v27 = vld [vmem:[%s13018_s17 + $0x268] ss:$8 sps:$4 sm:$0xff]  }
 0x6f6   : > { %5005 = vmatprep.subr.bf16.mxu0 %v10227_v20  ;;  %v5490_v50 = vpack.c.bf16 %v12157_v29, %v12147_v24  ;;  %v9815_v41 = vpop.f32.mrb[179].mxu1  ;;  %v10327_v20 = vld [vmem:[%s13021_s20 + $0x8] sm:$0xff]  }
 0x6f7   : > { %8643 = vmatmul.mubr.msk.bf16.gmra.mrb[208].mxu1 %vm1646_vm10, %v10327_v20  ;;  %v10288_v24 = vld [vmem:[%s13018_s17 + $0x324] ss:$8 sps:$4 sm:$0xff]   ;;  %v10286_v29 = vld [vmem:[%s13018_s17 + $0x320] ss:$8 sps:$4 sm:$0xff]  }
 0x6f8   : > { %6232 = vmatprep.mubr.bf16.mxu1 %v10542_v2 }
 0x6f9   : > { %5006 = vmatpush1.bf16.msra.mxu0 %v10225_v9  ;;  %v8517_v9 = vcombine.high %v8511_v23, %v8511_v23 }
 0x6fa   : > { %8479 = vmatprep.subr.msk.bf16.mxu0 %vm3955_vm4, %v8478_v34  ;;  %v8516_v34 = vcombine.low %v8511_v23, %v8511_v23 }
 0x6fb   : > { %v12166_v28 = vpop.f32.mrb[180].mxu1 }
 0x6fc   : > { %v9818_v59 = vpop.f32.mrb[181].mxu1  ;;  %v5262_v51 = vsel %vm3955_vm4, %v8516_v34, 0 }
 0x6fd   : > { %5008 = vmatpush1.bf16.msra.mxu0 %v4998_v11  ;;  %v12171_v46 = vpop.f32.mrb[182].mxu1  ;;  %v10328_v59 = vld [vmem:[%s13021_s20 + $0x10] sm:$0xff]  }
 0x6fe   : > { %5091 = vmatprep.subr.bf16.mxu0 %v10232_v17  ;;  %v5578_v52 = vpack.c.bf16 %v12171_v46, %v12166_v28  ;;  %v9819_v39 = vpop.f32.mrb[183].mxu1  ;;  %v10296_v28 = vld [vmem:[%s13018_s17 + $0x34c] ss:$8 sps:$4 sm:$0xff]   ;;  %v10294_v46 = vld [vmem:[%s13018_s17 + $0x348] ss:$8 sps:$4 sm:$0xff]  }
 0x6ff   : > { %8644 = vmatmul.mubr.msk.bf16.gmra.mrb[212].mxu1 %vm1646_vm10, %v10328_v59  ;;  %v8524_v39 = vld [vmem:[%s13018_s17 + $0x2a0] sm:$0x33] }
 0x700   : > { %8480 = vmatmul.mubr.msk.bf16.vlgmr.msra.gmra.mrb[88].mxu0 %vm3951_vm5, %v4962_v48  ;;  %6242 = vmatprep.mubr.bf16.mxu1 %v10542_v2 }
 0x701   : > { %5092 = vmatpush1.bf16.msra.mxu0 %v10230_v44  ;;  %5123 = vmatprep.mubr.bf16.mxu0 %v10542_v2  ;;  %v10254_v44 = vld [vmem:[%s13018_s17 + $0x280] ss:$8 sps:$4 sm:$0xff]  }
 0x702   : > { %5093 = vmatprep.subr.bf16.mxu0 %v10235_v49  ;;  %v10259_v49 = vld [vmem:[%s13018_s17 + $0x294] ss:$8 sps:$4 sm:$0xff]  }
 0x703   : > { %v12189_v61 = vpop.f32.mrb[184].mxu1 }
 0x704   : > { %v9822_v53 = vpop.f32.mrb[185].mxu1 }
 0x705   : > { %5094 = vmatpush1.bf16.msra.mxu0 %v10233_v26  ;;  %v12191_v32 = vpop.f32.mrb[186].mxu1  ;;  %v8530_v53 = vcombine.high %v8524_v39, %v8524_v39 }
 0x706   : > { %8492 = vmatprep.subr.msk.bf16.mxu0 %vm3955_vm4, %v8491_v57  ;;  %v5666_v48 = vpack.c.bf16 %v12191_v32, %v12189_v61  ;;  %v9823_v55 = vpop.f32.mrb[187].mxu1  ;;  %v10257_v57 = vld [vmem:[%s13018_s17 + $0x290] ss:$8 sps:$4 sm:$0xff]   ;;  %v10304_v61 = vld [vmem:[%s13018_s17 + $0x374] ss:$8 sps:$4 sm:$0xff]  }
 0x707   : > { %8645 = vmatmul.mubr.msk.bf16.gmra.mrb[216].mxu1 %vm1646_vm10, %v10329_v54  ;;  %v10302_v32 = vld [vmem:[%s13018_s17 + $0x370] ss:$8 sps:$4 sm:$0xff]  }
 0x708   : > { %6252 = vmatprep.mubr.bf16.mxu1 %v10542_v2  ;;  %v10313_v54 = vld [vmem:[%s13018_s17 + $0x3a8] ss:$8 sps:$4 sm:$0xff]  }
 0x709   : > { %5096 = vmatpush1.bf16.msra.mxu0 %v5086_v19  ;;  %v8529_v19 = vcombine.low %v8524_v39, %v8524_v39  ;;  %v8602_v39 = vld [vmem:[%s13018_s17 + $0x390] sm:$0x33] }
 0x70a   : > { %5179 = vmatprep.subr.bf16.mxu0 %v10240_v31 }
 0x70b   : > { %v12209_v47 = vpop.f32.mrb[188].mxu1  ;;  %v5350_v4 = vsel %vm3955_vm4, %v8529_v19, 0 }
 0x70c   : > { %8493 = vmatmul.mubr.msk.bf16.vlgmr.msra.gmra.mrb[88].mxu0 %vm3951_vm5, %v5050_v0  ;;  %v9826_v5 = vpop.f32.mrb[189].mxu1  ;;  %v10248_v0 = vld [vmem:[%s13018_s17 + $0x25c] ss:$8 sps:$4 sm:$0xff]  }
 0x70d   : > { %5180 = vmatpush1.bf16.msra.mxu0 %v10238_v8  ;;  %5211 = vmatprep.mubr.bf16.mxu0 %v10542_v2  ;;  %v12219_v60 = vpop.f32.mrb[190].mxu1  ;;  %v10262_v8 = vld [vmem:[%s13018_s17 + $0x2a8] ss:$8 sps:$4 sm:$0xff]   ;;  %v10265_v5 = vld [vmem:[%s13018_s17 + $0x2b8] ss:$8 sps:$4 sm:$0xff]  }
 0x70e   : > { %5181 = vmatprep.subr.bf16.mxu0 %v10243_v33  ;;  %v5754_v25 = vpack.c.bf16 %v12219_v60, %v12209_v47  ;;  %v9827_v63 = vpop.f32.mrb[191].mxu1  ;;  %v10267_v33 = vld [vmem:[%s13018_s17 + $0x2bc] ss:$8 sps:$4 sm:$0xff]   ;;  %v10310_v60 = vld [vmem:[%s13018_s17 + $0x398] ss:$8 sps:$4 sm:$0xff]  }
 0x70f   : > { %v8550_v63 = vld [vmem:[%s13018_s17 + $0x2f0] sm:$0x33]  ;;  %v10312_v47 = vld [vmem:[%s13018_s17 + $0x39c] ss:$8 sps:$4 sm:$0xff]  }
 0x711   : > { %5182 = vmatpush1.bf16.msra.mxu0 %v10241_v56  ;;  %v8543_v56 = vcombine.high %v8537_v43, %v8537_v43 }
 0x712   : > { %8505 = vmatprep.subr.msk.bf16.mxu0 %vm3955_vm4, %v8504_v10  ;;  %v8542_v10 = vcombine.low %v8537_v43, %v8537_v43  ;;  %v10321_v43 = vld [vmem:[%s13018_s17 + $0x3d0] ss:$8 sps:$4 sm:$0xff]  }
 0x713   : > { %v12232_v6 = vpop.f32.mrb[192].mxu1 }
 0x714   : > { %v9830_v12 = vpop.f32.mrb[193].mxu1  ;;  %v5438_v37 = vsel %vm3955_vm4, %v8542_v10, 0 }
 0x715   : > { %5184 = vmatpush1.bf16.msra.mxu0 %v5174_v13  ;;  %v12238_v30 = vpop.f32.mrb[194].mxu1  ;;  %v8556_v13 = vcombine.high %v8550_v63, %v8550_v63 }
 0x716   : > { %5267 = vmatprep.subr.bf16.mxu0 %v10248_v0  ;;  %v5842_v15 = vpack.c.bf16 %v12238_v30, %v12232_v6  ;;  %v9831_v16 = vpop.f32.mrb[195].mxu1  ;;  %v8555_v0 = vcombine.low %v8550_v63, %v8550_v63  ;;  %v10320_v6 = vld [vmem:[%s13018_s17 + $0x3c4] ss:$8 sps:$4 sm:$0xff]   ;;  %v10318_v30 = vld [vmem:[%s13018_s17 + $0x3c0] ss:$8 sps:$4 sm:$0xff]  }
 0x717   : > { %v10357_v63 = vld [vmem:[%s13022_s21 + $0x120] sm:$0xff]  }
 0x718   : > { %8506 = vmatmul.mubr.msk.bf16.vlgmr.msra.gmra.mrb[88].mxu0 %vm3951_vm5, %v5138_v7  ;;  %v10256_v7 = vld [vmem:[%s13018_s17 + $0x284] ss:$8 sps:$4 sm:$0xff]   ;;  %v5526_v12 = vsel %vm3955_vm4, %v8555_v0, 0 }
 0x719   : > { %5268 = vmatpush1.bf16.msra.mxu0 %v10246_v3  ;;  %5299 = vmatprep.mubr.bf16.mxu0 %v10542_v2  ;;  %v8563_v3 = vld [vmem:[%s13018_s17 + $0x318] sm:$0x33] }
 0x71a   : > { %5269 = vmatprep.subr.bf16.mxu0 %v10251_v1  ;;  %v10281_v1 = vld [vmem:[%s13018_s17 + $0x308] ss:$8 sps:$4 sm:$0xff]   ;;  %v8569_v16 = vcombine.high %v8563_v3, %v8563_v3  ;;  %v8568_v20 = vcombine.low %v8563_v3, %v8563_v3 }
 0x71b   : > { %v12260_v40 = vpop.f32.mrb[196].mxu1 }
 0x71c   : > { %v9834_v41 = vpop.f32.mrb[197].mxu1  ;;  %v5614_v23 = vsel %vm3955_vm4, %v8568_v20, 0 }
 0x71d   : > { %5270 = vmatpush1.bf16.msra.mxu0 %v10249_v27  ;;  %v12263_v36 = vpop.f32.mrb[198].mxu1  ;;  %v8576_v27 = vld [vmem:[%s13018_s17 + $0x340] sm:$0x33] }
 0x71e   : > { %8518 = vmatprep.subr.msk.bf16.mxu0 %vm3955_vm4, %v8517_v9  ;;  %v5930_v11 = vpack.c.bf16 %v12263_v36, %v12260_v40  ;;  %v9835_v17 = vpop.f32.mrb[199].mxu1  ;;  %v10289_v9 = vld [vmem:[%s13018_s17 + $0x330] ss:$8 sps:$4 sm:$0xff]   ;;  %v8582_v34 = vcombine.high %v8576_v27, %v8576_v27  ;;  %v8581_v41 = vcombine.low %v8576_v27, %v8576_v27  ;;  %v10330_v40 = vld [vmem:[%s13021_s20 + $0x20] ss:$0 sps:$4 sm:$0xff]   ;;  %v10338_v27 = vld [vmem:[%s13022_s21 + $0xc8] sm:$0xff]  }
 0x71f   : > { %v10297_v17 = vld [vmem:[%s13018_s17 + $0x358] ss:$8 sps:$4 sm:$0xff]   ;;  %8646 = vmatmul.mubr.msk.bf16.gmra.mrb[220].mxu1 %vm1646_vm10, %v10330_v40  ;;  %v10374_v40 = vld [vmem:[%s13022_s21 + $0x50] sm:$0xff]  }
 0x720   : > { %6331 = vmatprep.mubr.bf16.mxu1 %v10542_v2  ;;  %v10340_v36 = vld [vmem:[%s13022_s21 + $0x140] sm:$0xff]  }
 0x721   : > { %5272 = vmatpush1.bf16.msra.mxu0 %v5262_v51  ;;  %v5702_v51 = vsel %vm3955_vm4, %v8581_v41, 0  ;;  %v10332_v41 = vld [vmem:[%s13020_s19 + $0x8] sm:$0xff]  }
 0x722   : > { %5355 = vmatprep.subr.bf16.mxu0 %v10256_v7  ;;  %v8589_v7 = vld [vmem:[%s13018_s17 + $0x368] sm:$0x33] }
 0x723   : > { %v12285_v38 = vpop.f32.mrb[200].mxu1  ;;  %v8595_v59 = vcombine.high %v8589_v7, %v8589_v7 }
 0x724   : > { %8519 = vmatmul.mubr.msk.bf16.vlgmr.msra.gmra.mrb[88].mxu0 %vm3951_vm5, %v5226_v42  ;;  %v9838_v26 = vpop.f32.mrb[201].mxu1  ;;  %v10264_v42 = vld [vmem:[%s13018_s17 + $0x2ac] ss:$8 sps:$4 sm:$0xff]  }
 0x725   : > { %5356 = vmatpush1.bf16.msra.mxu0 %v10254_v44  ;;  %5387 = vmatprep.mubr.bf16.mxu0 %v10542_v2  ;;  %v12296_v58 = vpop.f32.mrb[202].mxu1  ;;  %v8594_v44 = vcombine.low %v8589_v7, %v8589_v7  ;;  %v10305_v26 = vld [vmem:[%s13018_s17 + $0x380] ss:$8 sps:$4 sm:$0xff]   ;;  %v10333_v7 = vld [vmem:[%s13020_s19 + $0x10] sm:$0xff]  }
 0x726   : > { %5357 = vmatprep.subr.bf16.mxu0 %v10259_v49  ;;  %v6018_v31 = vpack.c.bf16 %v12296_v58, %v12285_v38  ;;  %v9839_v55 = vpop.f32.mrb[203].mxu1  ;;  %v10344_v38 = vld [vmem:[%s13022_s21 + $0x148] sm:$0xff]  }
 0x727   : > { %v5790_v49 = vsel %vm3955_vm4, %v8594_v44, 0  ;;  %v8615_v55 = vld [vmem:[%s13018_s17 + $0x3b8] sm:$0x33]  ;;  %v10345_v58 = vld [vmem:[%s13022_s21 + $0x108] sm:$0xff]  }
 0x728   : > { %v10355_v44 = vld [vmem:[%s13022_s21 + $0xa8] sm:$0xff]  }
 0x729   : > { %5358 = vmatpush1.bf16.msra.mxu0 %v10257_v57  ;;  %v8608_v57 = vcombine.high %v8602_v39, %v8602_v39 }
 0x72a   : > { %8531 = vmatprep.subr.msk.bf16.mxu0 %vm3955_vm4, %v8530_v53  ;;  %v8607_v53 = vcombine.low %v8602_v39, %v8602_v39  ;;  %v10360_v39 = vld [vmem:[%s13022_s21 + $0x168] sm:$0xff]  }
 0x72c   : > { %v5878_v19 = vsel %vm3955_vm4, %v8607_v53, 0  ;;  %v10364_v53 = vld [vmem:[%s13022_s21 + $0x170] sm:$0xff]  }
 0x72d   : > { %5360 = vmatpush1.bf16.msra.mxu0 %v5350_v4  ;;  %v8621_v4 = vcombine.high %v8615_v55, %v8615_v55 }
 0x72e   : > { %5443 = vmatprep.subr.bf16.mxu0 %v10264_v42  ;;  %v8620_v42 = vcombine.low %v8615_v55, %v8615_v55  ;;  %v10372_v55 = vld [vmem:[%s13022_s21 + $0x240] sm:$0xff]  }
 0x730   : > { %8532 = vmatmul.mubr.msk.bf16.vlgmr.msra.gmra.mrb[88].mxu0 %vm3951_vm5, %v5314_v22  ;;  %v10275_v22 = vld [vmem:[%s13018_s17 + $0x2e4] ss:$8 sps:$4 sm:$0xff]  }
 0x731   : > { %5444 = vmatpush1.bf16.msra.mxu0 %v10262_v8  ;;  %5475 = vmatprep.mubr.bf16.mxu0 %v10542_v2  ;;  %v5966_v8 = vsel %vm3955_vm4, %v8620_v42, 0 }
 0x732   : > { %5445 = vmatprep.subr.bf16.mxu0 %v10267_v33  ;;  %v8628_v33 = vld [vmem:[%s13018_s17 + $0x3e0] sm:$0x33] }
 0x735   : > { %5446 = vmatpush1.bf16.msra.mxu0 %v10265_v5  ;;  %v8634_v5 = vcombine.high %v8628_v33, %v8628_v33 }
 0x736   : > { %8544 = vmatprep.subr.msk.bf16.mxu0 %vm3955_vm4, %v8543_v56  ;;  %v8633_v56 = vcombine.low %v8628_v33, %v8628_v33  ;;  %v10370_v33 = vld [vmem:[%s13022_s21 + $0x48] sm:$0xff]  }
 0x738   : > { %v6054_v10 = vsel %vm3955_vm4, %v8633_v56, 0  ;;  %v10371_v56 = vld [vmem:[%s13022_s21 + $0x8] sm:$0xff]  }
 0x739   : > { %5448 = vmatpush1.bf16.msra.mxu0 %v5438_v37  ;;  %v10349_v37 = vld [vmem:[%s13022_s21 + $0x110] sm:$0xff]  }
 0x73a   : > { %5531 = vmatprep.subr.bf16.mxu0 %v10272_v45  ;;  %v10352_v45 = vld [vmem:[%s13022_s21 + $0x158] sm:$0xff]  }
 0x73c   : > { %8545 = vmatmul.mubr.msk.bf16.vlgmr.msra.gmra.mrb[88].mxu0 %vm3951_vm5, %v5402_v21  ;;  %v10283_v21 = vld [vmem:[%s13018_s17 + $0x30c] ss:$8 sps:$4 sm:$0xff]  }
 0x73d   : > { %5532 = vmatpush1.bf16.msra.mxu0 %v10270_v14  ;;  %5563 = vmatprep.mubr.bf16.mxu0 %v10542_v2  ;;  %v10353_v14 = vld [vmem:[%s13022_s21 + $0x118] sm:$0xff]  }
 0x73e   : > { %5533 = vmatprep.subr.bf16.mxu0 %v10275_v22  ;;  %v10356_v22 = vld [vmem:[%s13022_s21 + $0x160] sm:$0xff]  }
 0x741   : > { %5534 = vmatpush1.bf16.msra.mxu0 %v10273_v35 }
 0x742   : > { %8557 = vmatprep.subr.msk.bf16.mxu0 %vm3955_vm4, %v8556_v13  ;;  %v6111_v13 = vpop.permute.xlu0 %6110 }
 0x745   : > { %5536 = vmatpush1.bf16.msra.mxu0 %v5526_v12  ;;  %v6116_v12 = vpop.permute.xlu1 %6115 }
 0x746   : > { %5619 = vmatprep.subr.bf16.mxu0 %v10280_v62 }
 0x748   : > { %8558 = vmatmul.mubr.msk.bf16.vlgmr.msra.gmra.mrb[88].mxu0 %vm3951_vm5, %v5490_v50  ;;  %v10291_v50 = vld [vmem:[%s13018_s17 + $0x334] ss:$8 sps:$4 sm:$0xff]  }
 0x749   : > { %5620 = vmatpush1.bf16.msra.mxu0 %v10278_v18  ;;  %5651 = vmatprep.mubr.bf16.mxu0 %v10542_v2 }
 0x74a   : > { %5621 = vmatprep.subr.bf16.mxu0 %v10283_v21 }
 0x74d   : > { %5622 = vmatpush1.bf16.msra.mxu0 %v10281_v1 }
 0x74e   : > { %8570 = vmatprep.subr.msk.bf16.mxu0 %vm3955_vm4, %v8569_v16 }
 0x751   : > { %5624 = vmatpush1.bf16.msra.mxu0 %v5614_v23 }
 0x752   : > { %5707 = vmatprep.subr.bf16.mxu0 %v10288_v24  ;;  %v10336_v24 = vld [vmem:[%s13022_s21 + $0xc0] sm:$0xff]  }
 0x754   : > { %8571 = vmatmul.mubr.msk.bf16.vlgmr.msra.gmra.mrb[88].mxu0 %vm3951_vm5, %v5578_v52  ;;  %v10299_v52 = vld [vmem:[%s13018_s17 + $0x35c] ss:$8 sps:$4 sm:$0xff]  }
 0x755   : > { %5708 = vmatpush1.bf16.msra.mxu0 %v10286_v29  ;;  %5739 = vmatprep.mubr.bf16.mxu0 %v10542_v2  ;;  %v10331_v29 = vld [vmem:[%s13020_s19] sm:$0xff]  }
 0x756   : > { %5709 = vmatprep.subr.bf16.mxu0 %v10291_v50  ;;  %v10337_v50 = vld [vmem:[%s13022_s21 + $0x80] sm:$0xff]  }
 0x759   : > { %5710 = vmatpush1.bf16.msra.mxu0 %v10289_v9  ;;  %v10339_v9 = vld [vmem:[%s13022_s21 + $0x88] sm:$0xff]  }
 0x75a   : > { %8583 = vmatprep.subr.msk.bf16.mxu0 %vm3955_vm4, %v8582_v34  ;;  %v10342_v34 = vld [vmem:[%s13022_s21 + $0xd0] sm:$0xff]  }
 0x75d   : > { %5712 = vmatpush1.bf16.msra.mxu0 %v5702_v51  ;;  %v10343_v51 = vld [vmem:[%s13022_s21 + $0x90] sm:$0xff]  }
 0x75e   : > { %5795 = vmatprep.subr.bf16.mxu0 %v10296_v28  ;;  %v10346_v28 = vld [vmem:[%s13022_s21 + $0xd8] sm:$0xff]  }
 0x760   : > { %8584 = vmatmul.mubr.msk.bf16.vlgmr.msra.gmra.mrb[88].mxu0 %vm3951_vm5, %v5666_v48  ;;  %v10307_v48 = vld [vmem:[%s13018_s17 + $0x384] ss:$8 sps:$4 sm:$0xff]  }
 0x761   : > { %5796 = vmatpush1.bf16.msra.mxu0 %v10294_v46  ;;  %5827 = vmatprep.mubr.bf16.mxu0 %v10542_v2  ;;  %v10347_v46 = vld [vmem:[%s13022_s21 + $0x98] sm:$0xff]  }
 0x762   : > { %5797 = vmatprep.subr.bf16.mxu0 %v10299_v52  ;;  %v10350_v52 = vld [vmem:[%s13022_s21 + $0xe0] sm:$0xff]  }
 0x765   : > { %5798 = vmatpush1.bf16.msra.mxu0 %v10297_v17  ;;  %v10351_v17 = vld [vmem:[%s13022_s21 + $0xa0] sm:$0xff]  }
 0x766   : > { %8596 = vmatprep.subr.msk.bf16.mxu0 %vm3955_vm4, %v8595_v59  ;;  %v10354_v59 = vld [vmem:[%s13022_s21 + $0xe8] sm:$0xff]  }
 0x769   : > { %5800 = vmatpush1.bf16.msra.mxu0 %v5790_v49  ;;  %v10358_v49 = vld [vmem:[%s13022_s21 + $0xf0] sm:$0xff]  }
 0x76a   : > { %5883 = vmatprep.subr.bf16.mxu0 %v10304_v61  ;;  %v10334_v61 = vld [vmem:[%s13020_s19 + $0x18] sm:$0xff]  }
 0x76c   : > { %8597 = vmatmul.mubr.msk.bf16.vlgmr.msra.gmra.mrb[88].mxu0 %vm3951_vm5, %v5754_v25  ;;  %v10315_v25 = vld [vmem:[%s13018_s17 + $0x3ac] ss:$8 sps:$4 sm:$0xff]  }
 0x76d   : > { %5884 = vmatpush1.bf16.msra.mxu0 %v10302_v32  ;;  %5915 = vmatprep.mubr.bf16.mxu0 %v10542_v2  ;;  %v10359_v32 = vld [vmem:[%s13022_s21 + $0xb0] sm:$0xff]  }
 0x76e   : > { %5885 = vmatprep.subr.bf16.mxu0 %v10307_v48  ;;  %v10335_v48 = vld [vmem:[%s13020_s19 + $0x20] ss:$0 sps:$4 sm:$0xff]  }
 0x771   : > { %5886 = vmatpush1.bf16.msra.mxu0 %v10305_v26  ;;  %v10361_v26 = vld [vmem:[%s13022_s21 + $0x128] sm:$0xff]  }
 0x772   : > { %8609 = vmatprep.subr.msk.bf16.mxu0 %vm3955_vm4, %v8608_v57  ;;  %v10363_v57 = vld [vmem:[%s13022_s21 + $0xb8] sm:$0xff]  }
 0x775   : > { %5888 = vmatpush1.bf16.msra.mxu0 %v5878_v19  ;;  %v10365_v19 = vld [vmem:[%s13022_s21 + $0x130] sm:$0xff]  }
 0x776   : > { %5971 = vmatprep.subr.bf16.mxu0 %v10312_v47  ;;  %v10366_v47 = vld [vmem:[%s13022_s21 + $0x40] sm:$0xff]  }
 0x778   : > { %8610 = vmatmul.mubr.msk.bf16.vlgmr.msra.gmra.mrb[88].mxu0 %vm3951_vm5, %v5842_v15  ;;  %v10323_v15 = vld [vmem:[%s13018_s17 + $0x3d4] ss:$8 sps:$4 sm:$0xff]  }
 0x779   : > { %5972 = vmatpush1.bf16.msra.mxu0 %v10310_v60  ;;  %6003 = vmatprep.mubr.bf16.mxu0 %v10542_v2  ;;  %v10368_v60 = vld [vmem:[%s13022_s21 + $0x178] sm:$0xff]  }
 0x77a   : > { %5973 = vmatprep.subr.bf16.mxu0 %v10315_v25  ;;  %v10369_v25 = vld [vmem:[%s13022_s21 + $0x138] sm:$0xff]  }
 0x77d   : > { %5974 = vmatpush1.bf16.msra.mxu0 %v10313_v54 }
 0x77e   : > { %8622 = vmatprep.subr.msk.bf16.mxu0 %vm3955_vm4, %v8621_v4 }
 0x781   : > { %5976 = vmatpush1.bf16.msra.mxu0 %v5966_v8 }
 0x782   : > { %6059 = vmatprep.subr.bf16.mxu0 %v10320_v6 }
 0x784   : > { %8623 = vmatmul.mubr.msk.bf16.vlgmr.msra.gmra.mrb[88].mxu0 %vm3951_vm5, %v5930_v11  ;;  %v10341_v11 = vld [vmem:[%s13022_s21 + $0x100] sm:$0xff]  }
 0x785   : > { %6060 = vmatpush1.bf16.msra.mxu0 %v10318_v30  ;;  %6091 = vmatprep.mubr.bf16.mxu0 %v10542_v2  ;;  %v10367_v30 = vld [vmem:[%s13022_s21] sm:$0xff]  }
 0x786   : > { %6061 = vmatprep.subr.bf16.mxu0 %v10323_v15 }
 0x789   : > { %6062 = vmatpush1.bf16.msra.mxu0 %v10321_v43 }
 0x78a   : > { %8635 = vmatprep.subr.msk.bf16.mxu0 %vm3955_vm4, %v8634_v5 }
 0x78d   : > { %6064 = vmatpush1.bf16.msra.mxu0 %v6054_v10 }
 0x78e   : > { %9272 = vmatprep.subr.bf16.mxu0 %v10340_v36 }
 0x790   : > { %8636 = vmatmul.mubr.msk.bf16.vlgmr.msra.gmra.mrb[88].mxu0 %vm3951_vm5, %v6018_v31  ;;  %v10348_v31 = vld [vmem:[%s13022_s21 + $0x150] sm:$0xff]  }
 0x791   : > { %9273 = vmatpush3.bf16.msra.mxu0 %v10341_v11  ;;  %v10373_v11 = vld [vmem:[%s13022_s21 + $0x200] sm:$0xff]  }
 0x792   : > { %9274 = vmatprep.subr.bf16.mxu0 %v10344_v38 }
 0x795   : > { %9275 = vmatpush3.bf16.msra.mxu0 %v10345_v58 }
 0x796   : > { %9276 = vmatprep.subr.bf16.mxu0 %v10348_v31  ;;  %v10376_v31 = vld [vmem:[%s13022_s21 + $0x248] sm:$0xff]  }
 0x799   : > { %9277 = vmatpush3.bf16.msra.mxu0 %v10349_v37 }
 0x79a   : > { %9278 = vmatprep.subr.bf16.mxu0 %v10352_v45  ;;  %v10375_v45 = vld [vmem:[%s13022_s21 + $0x10] sm:$0xff]  }
 0x79d   : > { %9279 = vmatpush3.bf16.msra.mxu0 %v10353_v14  ;;  %v10378_v14 = vld [vmem:[%s13022_s21 + $0x58] sm:$0xff]  }
 0x79e   : > { %9280 = vmatprep.subr.bf16.mxu0 %v10356_v22  ;;  %v10377_v22 = vld [vmem:[%s13022_s21 + $0x208] sm:$0xff]  }
 0x7a1   : > { %9281 = vmatpush3.bf16.msra.mxu0 %v10357_v63  ;;  %v10380_v63 = vld [vmem:[%s13022_s21 + $0x250] sm:$0xff]  }
 0x7a2   : > { %9282 = vmatprep.subr.bf16.mxu0 %v10360_v39  ;;  %v10400_v39 = vld [vmem:[%s13022_s21 + $0x278] sm:$0xff]  }
 0x7a5   : > { %9283 = vmatpush3.bf16.msra.mxu0 %v10361_v26 }
 0x7a6   : > { %9284 = vmatprep.subr.bf16.mxu0 %v10364_v53  ;;  %v10402_v53 = vld [vmem:[%s13022_s21 + $0x1c8] sm:$0xff]  }
 0x7a9   : > { %9285 = vmatpush3.bf16.msra.mxu0 %v10365_v19 }
 0x7aa   : > { %9286 = vmatprep.subr.bf16.mxu0 %v10368_v60  ;;  %v10404_v60 = vld [vmem:[%s13022_s21 + $0x340] sm:$0xff]  }
 0x7ad   : > { %9287 = vmatpush3.bf16.msra.mxu0 %v10369_v25  ;;  %v10403_v25 = vld [vmem:[%s13022_s21 + $0x188] sm:$0xff]  }
 0x7ae   : > { %9316 = vmatprep.subr.bf16.mxu0 %v10372_v55  ;;  %v10406_v55 = vld [vmem:[%s13022_s21 + $0x1d0] sm:$0xff]  }
 0x863   : > { %v6093_v35 = vpop.f32.mrb[88].mxu0 }
 0x864   : > { %v6095_v0 = vpop.f32.mrb[89].mxu0  ;;  %v6118_v18 = vadd.f32 %v6111_v13, %v6093_v35  ;;  %v10379_v35 = vld [vmem:[%s13022_s21 + $0x18] sm:$0xff]  }
 0x865   : > { %v6097_v62 = vpop.f32.mrb[90].mxu0  ;;  %v6119_v1 = vadd.f32 %v6111_v13, %v6095_v0  ;;  %v10382_v0 = vld [vmem:[%s13022_s21 + $0x60] sm:$0xff]  }
 0x866   : > { %v6120_v21 = vadd.f32 %v6116_v12, %v6097_v62  ;;  %v6099_v3 = vpop.f32.mrb[91].mxu0  ;;  %v10381_v62 = vld [vmem:[%s13022_s21 + $0x210] sm:$0xff]  }
 0x867   : > { %v6121_v16 = vadd.f32 %v6116_v12, %v6099_v3  ;;  %v10384_v3 = vld [vmem:[%s13022_s21 + $0x258] sm:$0xff]  }
 0x868   : > { %v6122_v20 = vpack.c.bf16 %v6120_v21, %v6118_v18 }
 0x869   : > { %v6123_v23 = vpack.c.bf16 %v6121_v16, %v6119_v1  ;;  %v10383_v16 = vld [vmem:[%s13022_s21 + $0x20] sm:$0xff]  }
 0x86b   : > { %6299 = vmatprep.subr.bf16.mxu1 %v6123_v23  ;;  %v10385_v23 = vld [vmem:[%s13022_s21 + $0x218] sm:$0xff]  }
 0x86c   : > { %6300 = vmatpush1.bf16.msra.mxu1 %v6122_v20  ;;  %v10386_v20 = vld [vmem:[%s13022_s21 + $0x68] sm:$0xff]  }
 0x86d   : > { %9228 = vmatprep.subr.bf16.mxu1 %v10336_v24  ;;  %v10388_v24 = vld [vmem:[%s13022_s21 + $0x260] sm:$0xff]  }
 0x86f   : > { %8652 = vmatmul.mubr.msk.bf16.vlgmr.msra.gmra.mrb[204].mxu1 %vm1792_vm15, %v10331_v29  ;;  %v10387_v29 = vld [vmem:[%s13022_s21 + $0x28] sm:$0xff]  }
 0x870   : > { %6341 = vmatprep.mubr.bf16.mxu1 %v10542_v2  ;;  %9229 = vmatpush3.bf16.msra.mxu1 %v10337_v50 }
 0x871   : > { %9230 = vmatprep.subr.bf16.mxu1 %v10338_v27  ;;  %v10390_v27 = vld [vmem:[%s13022_s21 + $0x70] sm:$0xff]  }
 0x874   : > { %9231 = vmatpush3.bf16.msra.mxu1 %v10339_v9 }
 0x875   : > { %9232 = vmatprep.subr.bf16.mxu1 %v10342_v34  ;;  %v10389_v34 = vld [vmem:[%s13022_s21 + $0x220] sm:$0xff]  }
 0x877   : > { %8653 = vmatmul.mubr.msk.bf16.gmra.mrb[208].mxu1 %vm1792_vm15, %v10332_v41 }
 0x878   : > { %6351 = vmatprep.mubr.bf16.mxu1 %v10542_v2  ;;  %9233 = vmatpush3.bf16.msra.mxu1 %v10343_v51  ;;  %v10392_v51 = vld [vmem:[%s13022_s21 + $0x268] sm:$0xff]  }
 0x879   : > { %9234 = vmatprep.subr.bf16.mxu1 %v10346_v28 }
 0x87c   : > { %9235 = vmatpush3.bf16.msra.mxu1 %v10347_v46  ;;  %v10391_v46 = vld [vmem:[%s13022_s21 + $0x30] sm:$0xff]  }
 0x87d   : > { %9236 = vmatprep.subr.bf16.mxu1 %v10350_v52  ;;  %v10394_v52 = vld [vmem:[%s13022_s21 + $0x78] sm:$0xff]  }
 0x87f   : > { %8654 = vmatmul.mubr.msk.bf16.gmra.mrb[212].mxu1 %vm1792_vm15, %v10333_v7  ;;  %v10393_v7 = vld [vmem:[%s13022_s21 + $0x228] sm:$0xff]  }
 0x880   : > { %6361 = vmatprep.mubr.bf16.mxu1 %v10542_v2  ;;  %9237 = vmatpush3.bf16.msra.mxu1 %v10351_v17  ;;  %v10396_v17 = vld [vmem:[%s13022_s21 + $0x270] sm:$0xff]  }
 0x881   : > { %9238 = vmatprep.subr.bf16.mxu1 %v10354_v59  ;;  %v10395_v59 = vld [vmem:[%s13022_s21 + $0x38] sm:$0xff]  }
 0x884   : > { %9239 = vmatpush3.bf16.msra.mxu1 %v10355_v44 }
 0x885   : > { %9240 = vmatprep.subr.bf16.mxu1 %v10358_v49  ;;  %v10398_v49 = vld [vmem:[%s13022_s21 + $0x1c0] sm:$0xff]  }
 0x887   : > { %8655 = vmatmul.mubr.msk.bf16.gmra.mrb[216].mxu1 %vm1792_vm15, %v10334_v61 }
 0x888   : > { %6371 = vmatprep.mubr.bf16.mxu1 %v10542_v2  ;;  %9241 = vmatpush3.bf16.msra.mxu1 %v10359_v32  ;;  %v10362_v2 = vld [vmem:[%s13022_s21 + $0xf8] sm:$0xff]   ;;  %v10397_v32 = vld [vmem:[%s13022_s21 + $0x230] sm:$0xff]  }
 0x889   : > { %9242 = vmatprep.subr.bf16.mxu1 %v10362_v2  ;;  %v10399_v2 = vld [vmem:[%s13022_s21 + $0x180] sm:$0xff]  }
 0x88c   : > { %9243 = vmatpush3.bf16.msra.mxu1 %v10363_v57 }
 0x88d   : > { %9250 = vmatprep.subr.bf16.mxu1 %v10366_v47  ;;  %v10401_v47 = vld [vmem:[%s13022_s21 + $0x238] sm:$0xff]  }
 0x88f   : > { %8656 = vmatmul.mubr.msk.bf16.gmra.mrb[220].mxu1 %vm1792_vm15, %v10335_v48 }
 0x942   : > { %v12618_v54 = vpop.f32.mrb[204].mxu1 }
 0x943   : > { %v6335_v4 = vpop.f32.mrb[205].mxu1  ;;  %v6380_v57 = vpack.c.bf16 %v12618_v54, %v12618_v54  ;;  %v10405_v54 = vld [vmem:[%s13022_s21 + $0x300] sm:$0xff]  }
 0x944   : > { %v6337_v42 = vpop.f32.mrb[206].mxu1  ;;  %v6381_v43 = vpack.c.bf16 %v6335_v4, %v6335_v4 }
 0x945   : > { %v6339_v8 = vpop.f32.mrb[207].mxu1  ;;  %v6414_v15 = vpack.c.bf16 %v6337_v42, %v6337_v42  ;;  %v10408_v42 = vld [vmem:[%s13022_s21 + $0x348] sm:$0xff]  }
 0x946   : > { %v6415_v6 = vpack.c.bf16 %v6339_v8, %v6339_v8  ;;  %v10407_v8 = vld [vmem:[%s13022_s21 + $0x190] sm:$0xff]  }
 0x948   : > { %6577 = vmatprep.mubr.bf16.mxu1 %v6415_v6 }
 0x949   : > { %6578 = vmatmul.mubr.bf16.vlgmr.msra.gmra.mrb[224].mxu1 %v6414_v15  ;;  %v10409_v15 = vld [vmem:[%s13022_s21 + $0x308] sm:$0xff]  }
 0x94a   : > { %9251 = vmatpush3.bf16.msra.mxu1 %v10367_v30  ;;  %v6343_v5 = vpop.f32.mrb[208].mxu1  ;;  %6713 = vmatprep.mubr.bf16.mxu1 %v6381_v43  ;;  %v10410_v30 = vld [vmem:[%s13022_s21 + $0x1d8] sm:$0xff]  }
 0x94b   : > { %v6345_v10 = vpop.f32.mrb[209].mxu1  ;;  %9252 = vmatprep.subr.bf16.mxu1 %v10370_v33  ;;  %v6721_v58 = vpack.c.bf16 %v6343_v5, %v6343_v5  ;;  %v10412_v33 = vld [vmem:[%s13022_s21 + $0x350] sm:$0xff]   ;;  %v10411_v43 = vld [vmem:[%s13022_s21 + $0x198] sm:$0xff]   ;;  %v10414_v5 = vld [vmem:[%s13022_s21 + $0x1e0] sm:$0xff]  }
 0x94c   : > { %v6722_v36 = vpack.c.bf16 %v6345_v10, %v6345_v10  ;;  %v12635_v38 = vpop.f32.mrb[210].mxu1  ;;  %v10416_v10 = vld [vmem:[%s13022_s21 + $0x358] sm:$0xff]  }
 0x94d   : > { %v12640_v37 = vpop.f32.mrb[211].mxu1 }
 0x94e   : > { %9253 = vmatpush3.bf16.msra.mxu1 %v10371_v56  ;;  %6884 = vmatprep.mubr.bf16.mxu0 %v6722_v36  ;;  %v6894_v19 = vpack.c.bf16 %v12640_v37, %v12640_v37  ;;  %v10413_v56 = vld [vmem:[%s13022_s21 + $0x310] sm:$0xff]   ;;  %v10418_v36 = vld [vmem:[%s13022_s21 + $0x1e8] sm:$0xff]  }
 0x94f   : > { %6885 = vmatmul.mubr.bf16.vlgmr.msra.gmra.mrb[92].mxu0 %v6721_v58  ;;  %9254 = vmatprep.subr.bf16.mxu1 %v10374_v40  ;;  %v10415_v40 = vld [vmem:[%s13022_s21 + $0x1a0] sm:$0xff]   ;;  %v10422_v37 = vld [vmem:[%s13022_s21 + $0x1f0] sm:$0xff]  }
 0x950   : > { %9317 = vmatpush3.bf16.msra.mxu0 %v10373_v11  ;;  %v10417_v11 = vld [vmem:[%s13022_s21 + $0x318] sm:$0xff]   ;;  %v10420_v58 = vld [vmem:[%s13022_s21 + $0x360] sm:$0xff]  }
 0x951   : > { %9318 = vmatprep.subr.bf16.mxu0 %v10376_v31  ;;  %v10419_v31 = vld [vmem:[%s13022_s21 + $0x1a8] sm:$0xff]  }
 0x952   : > { %9255 = vmatpush3.bf16.msra.mxu1 %v10375_v45  ;;  %v12657_v13 = vpop.f32.mrb[212].mxu1  ;;  %v10421_v45 = vld [vmem:[%s13022_s21 + $0x320] sm:$0xff]  }
 0x953   : > { %9256 = vmatprep.subr.bf16.mxu1 %v10378_v14  ;;  %v6355_v12 = vpop.f32.mrb[213].mxu1  ;;  %v7065_v4 = vpack.c.bf16 %v12657_v13, %v12657_v13  ;;  %v10424_v14 = vld [vmem:[%s13022_s21 + $0x368] sm:$0xff]   ;;  %v10428_v13 = vld [vmem:[%s13022_s21 + $0x370] sm:$0xff]  }
 0x954   : > { %9319 = vmatpush3.bf16.msra.mxu0 %v10377_v22  ;;  %v7066_v18 = vpack.c.bf16 %v6355_v12, %v6355_v12  ;;  %v12665_v21 = vpop.f32.mrb[214].mxu1  ;;  %v10423_v22 = vld [vmem:[%s13022_s21 + $0x1b0] sm:$0xff]   ;;  %v10430_v12 = vld [vmem:[%s13022_s21 + $0x2c0] sm:$0xff]  }
 0x955   : > { %9320 = vmatprep.subr.bf16.mxu0 %v10380_v63  ;;  %v12670_v1 = vpop.f32.mrb[215].mxu1  ;;  %v10426_v63 = vld [vmem:[%s13022_s21 + $0x1f8] sm:$0xff]  }
 0x956   : > { %9257 = vmatpush3.bf16.msra.mxu1 %v10379_v35  ;;  %7228 = vmatprep.mubr.bf16.mxu0 %v7066_v18  ;;  %v10425_v35 = vld [vmem:[%s13022_s21 + $0x328] sm:$0xff]   ;;  %v10432_v18 = vld [vmem:[%s13022_s21 + $0x378] sm:$0xff]  }
 0x957   : > { %9258 = vmatprep.subr.bf16.mxu1 %v10382_v0  ;;  %v10427_v0 = vld [vmem:[%s13022_s21 + $0x1b8] sm:$0xff]  }
 0x958   : > { %9321 = vmatpush3.bf16.msra.mxu0 %v10381_v62  ;;  %v10429_v62 = vld [vmem:[%s13022_s21 + $0x330] sm:$0xff]  }
 0x959   : > { %9322 = vmatprep.subr.bf16.mxu0 %v10384_v3  ;;  %v10431_v3 = vld [vmem:[%s13022_s21 + $0x280] sm:$0xff]  }
 0x95a   : > { %9259 = vmatpush3.bf16.msra.mxu1 %v10383_v16  ;;  %v12687_v50 = vpop.f32.mrb[216].mxu1  ;;  %v6893_v16 = vpack.c.bf16 %v12635_v38, %v12635_v38  ;;  %v10435_v38 = vld [vmem:[%s13022_s21 + $0x288] sm:$0xff]  }
 0x95b   : > { %9260 = vmatprep.subr.bf16.mxu1 %v10386_v20  ;;  %v6365_v9 = vpop.f32.mrb[217].mxu1  ;;  %v10434_v20 = vld [vmem:[%s13022_s21 + $0x2c8] sm:$0xff]  }
 0x95c   : > { %9323 = vmatpush3.bf16.msra.mxu0 %v10385_v23  ;;  %v12695_v41 = vpop.f32.mrb[218].mxu1  ;;  %v7410_v6 = vpack.c.bf16 %v6365_v9, %v6365_v9  ;;  %v7238_v23 = vpack.c.bf16 %v12670_v1, %v12670_v1  ;;  %v10438_v1 = vld [vmem:[%s13022_s21 + $0x2d0] sm:$0xff]   ;;  %v7409_v9 = vpack.c.bf16 %v12687_v50, %v12687_v50  ;;  %v10441_v50 = vld [vmem:[%s13022_s21 + $0x408] sm:$0xff]  }
 0x95d   : > { %9324 = vmatprep.subr.bf16.mxu0 %v10388_v24  ;;  %v12700_v28 = vpop.f32.mrb[219].mxu1  ;;  %v10433_v24 = vld [vmem:[%s13022_s21 + $0x338] sm:$0xff]  }
 0x95e   : > { %9261 = vmatpush3.bf16.msra.mxu1 %v10387_v29  ;;  %v10436_v29 = vld [vmem:[%s13022_s21 + $0x440] sm:$0xff]  }
 0x95f   : > { %9262 = vmatprep.subr.bf16.mxu1 %v10390_v27  ;;  %v10437_v27 = vld [vmem:[%s13022_s21 + $0x400] sm:$0xff]  }
 0x960   : > { %9325 = vmatpush3.bf16.msra.mxu0 %v10389_v34  ;;  %v10440_v34 = vld [vmem:[%s13022_s21 + $0x448] sm:$0xff]  }
 0x961   : > { %9326 = vmatprep.subr.bf16.mxu0 %v10392_v51 }
 0x962   : > { %9263 = vmatpush3.bf16.msra.mxu1 %v10391_v46  ;;  %v12717_v44 = vpop.f32.mrb[220].mxu1  ;;  %v10439_v46 = vld [vmem:[%s13022_s21 + $0x290] sm:$0xff]  }
 0x963   : > { %9264 = vmatprep.subr.bf16.mxu1 %v10394_v52  ;;  %v12722_v61 = vpop.f32.mrb[221].mxu1  ;;  %v10442_v52 = vld [vmem:[%s13022_s21 + $0x2d8] sm:$0xff]  }
 0x964   : > { %9327 = vmatpush3.bf16.msra.mxu0 %v10393_v7  ;;  %v6377_v48 = vpop.f32.mrb[222].mxu1  ;;  %v7754_v51 = vpack.c.bf16 %v12722_v61, %v12722_v61  ;;  %v10444_v7 = vld [vmem:[%s13022_s21 + $0x450] sm:$0xff]   ;;  %v10448_v61 = vld [vmem:[%s13022_s21 + $0x458] sm:$0xff]  }
 0x965   : > { %9328 = vmatprep.subr.bf16.mxu0 %v10396_v17  ;;  %v6378_v26 = vpop.f32.mrb[223].mxu1  ;;  %v10443_v17 = vld [vmem:[%s13022_s21 + $0x298] sm:$0xff]   ;;  %v10450_v48 = vld [vmem:[%s13022_s21 + $0x2e8] sm:$0xff]  }
 0x966   : > { %9265 = vmatpush3.bf16.msra.mxu1 %v10395_v59  ;;  %v10446_v59 = vld [vmem:[%s13022_s21 + $0x2e0] sm:$0xff]  }
 0x967   : > { %9294 = vmatprep.subr.bf16.mxu1 %v10398_v49  ;;  %v10445_v49 = vld [vmem:[%s13022_s21 + $0x410] sm:$0xff]   ;;  %v10452_v26 = vld [vmem:[%s13022_s21 + $0x460] sm:$0xff]  }
 0x968   : > { %9329 = vmatpush3.bf16.msra.mxu0 %v10397_v32  ;;  %v10447_v32 = vld [vmem:[%s13022_s21 + $0x2a0] sm:$0xff]  }
 0x969   : > { %6714 = vmatmul.mubr.bf16.vlgmr.msra.gmra.mrb[228].mxu1 %v6380_v57  ;;  %9330 = vmatprep.subr.bf16.mxu0 %v10400_v39  ;;  %v10449_v39 = vld [vmem:[%s13022_s21 + $0x418] sm:$0xff]   ;;  %v10454_v57 = vld [vmem:[%s13022_s21 + $0x2f0] sm:$0xff]  }
 0x96a   : > { %9295 = vmatpush3.bf16.msra.mxu1 %v10399_v2  ;;  %7056 = vmatprep.mubr.bf16.mxu1 %v6894_v19  ;;  %v10451_v2 = vld [vmem:[%s13022_s21 + $0x2a8] sm:$0xff]  }
 0x96b   : > { %9296 = vmatprep.subr.bf16.mxu1 %v10402_v53  ;;  %v10453_v53 = vld [vmem:[%s13022_s21 + $0x420] sm:$0xff]   ;;  %v10456_v19 = vld [vmem:[%s13022_s21 + $0x468] sm:$0xff]  }
 0x96c   : > { %9331 = vmatpush3.bf16.msra.mxu0 %v10401_v47  ;;  %v10455_v47 = vld [vmem:[%s13022_s21 + $0x2b0] sm:$0xff]  }
 0x96d   : > { %9360 = vmatprep.subr.bf16.mxu0 %v10404_v60  ;;  %v10458_v60 = vld [vmem:[%s13022_s21 + $0x2f8] sm:$0xff]  }
 0x96e   : > { %9297 = vmatpush3.bf16.msra.mxu1 %v10403_v25  ;;  %v10457_v25 = vld [vmem:[%s13022_s21 + $0x428] sm:$0xff]  }
 0x96f   : > { %7229 = vmatmul.mubr.bf16.vlgmr.msra.gmra.mrb[96].mxu0 %v7065_v4  ;;  %9298 = vmatprep.subr.bf16.mxu1 %v10406_v55  ;;  %v10460_v55 = vld [vmem:[%s13022_s21 + $0x470] sm:$0xff]   ;;  %v10462_v4 = vld [vmem:[%s13022_s21 + $0x3c0] sm:$0xff]  }
 0x970   : > { %9361 = vmatpush3.bf16.msra.mxu0 %v10405_v54  ;;  %7572 = vmatprep.mubr.bf16.mxu0 %v7410_v6  ;;  %v10459_v54 = vld [vmem:[%s13022_s21 + $0x2b8] sm:$0xff]   ;;  %v10463_v6 = vld [vmem:[%s13022_s21 + $0x380] sm:$0xff]  }
 0x971   : > { %9362 = vmatprep.subr.bf16.mxu0 %v10408_v42  ;;  %v10461_v42 = vld [vmem:[%s13022_s21 + $0x430] sm:$0xff]  }
 0x972   : > { %9299 = vmatpush3.bf16.msra.mxu1 %v10407_v8  ;;  %v10464_v8 = vld [vmem:[%s13022_s21 + $0x478] sm:$0xff]  }
 0x973   : > { %9300 = vmatprep.subr.bf16.mxu1 %v10410_v30  ;;  %v7237_v30 = vpack.c.bf16 %v12665_v21, %v12665_v21  ;;  %v10467_v21 = vld [vmem:[%s13022_s21 + $0x388] sm:$0xff]  }
 0x974   : > { %9363 = vmatpush3.bf16.msra.mxu0 %v10409_v15  ;;  %v10466_v15 = vld [vmem:[%s13022_s21 + $0x3c8] sm:$0xff]  }
 0x975   : > { %9364 = vmatprep.subr.bf16.mxu0 %v10412_v33  ;;  %v7582_v33 = vpack.c.bf16 %v12700_v28, %v12700_v28  ;;  %v7753_v28 = vpack.c.bf16 %v12717_v44, %v12717_v44  ;;  %v10472_v44 = vld [vmem:[%s13022_s21 + $0x3e0] sm:$0xff]  }
 0x976   : > { %9301 = vmatpush3.bf16.msra.mxu1 %v10411_v43  ;;  %v10465_v43 = vld [vmem:[%s13022_s21 + $0x438] sm:$0xff]  }
 0x977   : > { %9302 = vmatprep.subr.bf16.mxu1 %v10414_v5  ;;  %v10468_v5 = vld [vmem:[%s13022_s21 + $0x3d0] sm:$0xff]  }
 0x978   : > { %9365 = vmatpush3.bf16.msra.mxu0 %v10413_v56  ;;  %v10469_v56 = vld [vmem:[%s13022_s21 + $0x390] sm:$0xff]  }
 0x979   : > { %9366 = vmatprep.subr.bf16.mxu0 %v10416_v10  ;;  %v10470_v10 = vld [vmem:[%s13022_s21 + $0x3d8] sm:$0xff]  }
 0x97a   : > { %9303 = vmatpush3.bf16.msra.mxu1 %v10415_v40  ;;  %v10471_v40 = vld [vmem:[%s13022_s21 + $0x398] sm:$0xff]  }
 0x97b   : > { %9304 = vmatprep.subr.bf16.mxu1 %v10418_v36  ;;  %v10473_v36 = vld [vmem:[%s13022_s21 + $0x3a0] sm:$0xff]  }
 0x97c   : > { %9367 = vmatpush3.bf16.msra.mxu0 %v10417_v11  ;;  %v10474_v11 = vld [vmem:[%s13022_s21 + $0x3e8] sm:$0xff]  }
 0x97d   : > { %9368 = vmatprep.subr.bf16.mxu0 %v10420_v58  ;;  %v10475_v58 = vld [vmem:[%s13022_s21 + $0x3a8] sm:$0xff]  }
 0x97e   : > { %9305 = vmatpush3.bf16.msra.mxu1 %v10419_v31  ;;  %v10476_v31 = vld [vmem:[%s13022_s21 + $0x3f0] sm:$0xff]  }
 0x97f   : > { %9306 = vmatprep.subr.bf16.mxu1 %v10422_v37  ;;  %v10477_v37 = vld [vmem:[%s13022_s21 + $0x3b0] sm:$0xff]  }
 0x980   : > { %9369 = vmatpush3.bf16.msra.mxu0 %v10421_v45  ;;  %v10478_v45 = vld [vmem:[%s13022_s21 + $0x3f8] sm:$0xff]  }
 0x981   : > { %9370 = vmatprep.subr.bf16.mxu0 %v10424_v14  ;;  %v10479_v14 = vld [vmem:[%s13022_s21 + $0x3b8] sm:$0xff]  }
 0x982   : > { %9307 = vmatpush3.bf16.msra.mxu1 %v10423_v22  ;;  %v7581_v22 = vpack.c.bf16 %v12695_v41, %v12695_v41 }
 0x983   : > { %9308 = vmatprep.subr.bf16.mxu1 %v10426_v63 }
 0x984   : > { %9371 = vmatpush3.bf16.msra.mxu0 %v10425_v35 }
 0x985   : > { %9372 = vmatprep.subr.bf16.mxu0 %v10428_v13 }
 0x986   : > { %9309 = vmatpush3.bf16.msra.mxu1 %v10427_v0 }
 0x987   : > { %9338 = vmatprep.subr.bf16.mxu1 %v10430_v12 }
 0x988   : > { %9373 = vmatpush3.bf16.msra.mxu0 %v10429_v62 }
 0x989   : > { %7057 = vmatmul.mubr.bf16.vlgmr.msra.gmra.mrb[232].mxu1 %v6893_v16  ;;  %9374 = vmatprep.subr.bf16.mxu0 %v10432_v18 }
 0x98a   : > { %9339 = vmatpush3.bf16.msra.mxu1 %v10431_v3  ;;  %7400 = vmatprep.mubr.bf16.mxu1 %v7238_v23 }
 0x98b   : > { %9340 = vmatprep.subr.bf16.mxu1 %v10434_v20 }
 0x98c   : > { %9375 = vmatpush3.bf16.msra.mxu0 %v10433_v24 }
 0x98d   : > { %9404 = vmatprep.subr.bf16.mxu0 %v10436_v29 }
 0x98e   : > { %9341 = vmatpush3.bf16.msra.mxu1 %v10435_v38 }
 0x98f   : > { %7573 = vmatmul.mubr.bf16.vlgmr.msra.gmra.mrb[100].mxu0 %v7409_v9  ;;  %9342 = vmatprep.subr.bf16.mxu1 %v10438_v1 }
 0x990   : > { %9405 = vmatpush3.bf16.msra.mxu0 %v10437_v27  ;;  %7916 = vmatprep.mubr.bf16.mxu0 %v7754_v51 }
 0x991   : > { %9406 = vmatprep.subr.bf16.mxu0 %v10440_v34 }
 0x992   : > { %9343 = vmatpush3.bf16.msra.mxu1 %v10439_v46 }
 0x993   : > { %9344 = vmatprep.subr.bf16.mxu1 %v10442_v52 }
 0x994   : > { %9407 = vmatpush3.bf16.msra.mxu0 %v10441_v50 }
 0x995   : > { %9408 = vmatprep.subr.bf16.mxu0 %v10444_v7 }
 0x996   : > { %9345 = vmatpush3.bf16.msra.mxu1 %v10443_v17 }
 0x997   : > { %9346 = vmatprep.subr.bf16.mxu1 %v10446_v59 }
 0x998   : > { %9409 = vmatpush3.bf16.msra.mxu0 %v10445_v49 }
 0x999   : > { %9410 = vmatprep.subr.bf16.mxu0 %v10448_v61 }
 0x99a   : > { %9347 = vmatpush3.bf16.msra.mxu1 %v10447_v32 }
 0x99b   : > { %9348 = vmatprep.subr.bf16.mxu1 %v10450_v48 }
 0x99c   : > { %9411 = vmatpush3.bf16.msra.mxu0 %v10449_v39 }
 0x99d   : > { %9412 = vmatprep.subr.bf16.mxu0 %v10452_v26 }
 0x99e   : > { %9349 = vmatpush3.bf16.msra.mxu1 %v10451_v2 }
 0x99f   : > { %9350 = vmatprep.subr.bf16.mxu1 %v10454_v57 }
 0x9a0   : > { %9413 = vmatpush3.bf16.msra.mxu0 %v10453_v53 }
 0x9a1   : > { %9414 = vmatprep.subr.bf16.mxu0 %v10456_v19 }
 0x9a2   : > { %9351 = vmatpush3.bf16.msra.mxu1 %v10455_v47 }
 0x9a3   : > { %9352 = vmatprep.subr.bf16.mxu1 %v10458_v60 }
 0x9a4   : > { %9415 = vmatpush3.bf16.msra.mxu0 %v10457_v25 }
 0x9a5   : > { %9416 = vmatprep.subr.bf16.mxu0 %v10460_v55 }
 0x9a6   : > { %9353 = vmatpush3.bf16.msra.mxu1 %v10459_v54 }
 0x9a7   : > { %9382 = vmatprep.subr.bf16.mxu1 %v10462_v4 }
 0x9a8   : > { %9417 = vmatpush3.bf16.msra.mxu0 %v10461_v42 }
 0x9a9   : > { %7401 = vmatmul.mubr.bf16.vlgmr.msra.gmra.mrb[236].mxu1 %v7237_v30  ;;  %9418 = vmatprep.subr.bf16.mxu0 %v10464_v8 }
 0x9aa   : > { %9383 = vmatpush3.bf16.msra.mxu1 %v10463_v6  ;;  %7744 = vmatprep.mubr.bf16.mxu1 %v7582_v33 }
 0x9ab   : > { %9384 = vmatprep.subr.bf16.mxu1 %v10466_v15 }
 0x9ac   : > { %9419 = vmatpush3.bf16.msra.mxu0 %v10465_v43 }
 0x9ae   : > { %9385 = vmatpush3.bf16.msra.mxu1 %v10467_v21 }
 0x9af   : > { %7917 = vmatmul.mubr.bf16.vlgmr.msra.gmra.mrb[104].mxu0 %v7753_v28  ;;  %9386 = vmatprep.subr.bf16.mxu1 %v10468_v5 }
 0x9b2   : > { %9387 = vmatpush3.bf16.msra.mxu1 %v10469_v56 }
 0x9b3   : > { %9388 = vmatprep.subr.bf16.mxu1 %v10470_v10  ;;  %v7929_v10 = vpop.permute.xlu0 %7928 }
 0x9b6   : > { %9389 = vmatpush3.bf16.msra.mxu1 %v10471_v40 }
 0x9b7   : > { %9390 = vmatprep.subr.bf16.mxu1 %v10472_v44 }
 0x9ba   : > { %9391 = vmatpush3.bf16.msra.mxu1 %v10473_v36 }
 0x9bb   : > { %9392 = vmatprep.subr.bf16.mxu1 %v10474_v11 }
 0x9be   : > { %9393 = vmatpush3.bf16.msra.mxu1 %v10475_v58 }
 0x9bf   : > { %9394 = vmatprep.subr.bf16.mxu1 %v10476_v31 }
 0x9c2   : > { %9395 = vmatpush3.bf16.msra.mxu1 %v10477_v37 }
 0x9c3   : > { %9396 = vmatprep.subr.bf16.mxu1 %v10478_v45 }
 0x9c6   : > { %9397 = vmatpush3.bf16.msra.mxu1 %v10479_v14 }
 0x9c9   : > { %7745 = vmatmul.mubr.bf16.vlgmr.msra.gmra.mrb[240].mxu1 %v7581_v22 }
 0xa1c   : > { %v9244_v63 = vpop.f32.mrb[224].mxu1 }
 0xa1d   : > { %v9245_v35 = vpop.f32.mrb[225].mxu1 }
 0xa1e   : > { %v9246_v13 = vadd.f32 %v9245_v35, %v9244_v63  ;;  %v9247_v0 = vpop.f32.mrb[226].mxu1 }
 0xa1f   : > { %v9248_v12 = vpop.f32.mrb[227].mxu1 }
 0xa22   : > { %v9288_v62 = vpop.f32.mrb[92].mxu0 }
 0xa23   : > { %v9289_v18 = vpop.f32.mrb[93].mxu0 }
 0xa24   : > { %v9290_v3 = vadd.f32 %v9289_v18, %v9288_v62  ;;  %v9291_v16 = vpop.f32.mrb[94].mxu0 }
 0xa25   : > { %v9292_v20 = vpop.f32.mrb[95].mxu0 }
 0xa3c   : > { %v9266_v23 = vpop.f32.mrb[228].mxu1 }
 0xa3d   : > { %v9267_v24 = vpop.f32.mrb[229].mxu1 }
 0xa3e   : > { %v9268_v29 = vadd.f32 %v9267_v24, %v9266_v23  ;;  %v9269_v38 = vpop.f32.mrb[230].mxu1 }
 0xa3f   : > { %v9270_v1 = vpop.f32.mrb[231].mxu1 }
 0xa40   : > { %v6716_v27 = vadd.f32 %v9268_v29, %v9246_v13 }
 0xa42   : > { %v9332_v9 = vpop.f32.mrb[96].mxu0  ;;  %v6892_v34 = vadd.f32 %v9290_v3, %v6716_v27 }
 0xa43   : > { %v9333_v41 = vpop.f32.mrb[97].mxu0 }
 0xa44   : > { %v9334_v51 = vadd.f32 %v9333_v41, %v9332_v9  ;;  %v9335_v46 = vpop.f32.mrb[98].mxu0 }
 0xa45   : > { %v9336_v52 = vpop.f32.mrb[99].mxu0 }
 0xa5c   : > { %v9310_v50 = vpop.f32.mrb[232].mxu1 }
 0xa5d   : > { %v9311_v7 = vpop.f32.mrb[233].mxu1 }
 0xa5e   : > { %v9312_v17 = vadd.f32 %v9311_v7, %v9310_v50  ;;  %v9313_v59 = vpop.f32.mrb[234].mxu1 }
 0xa5f   : > { %v9314_v49 = vpop.f32.mrb[235].mxu1 }
 0xa60   : > { %v7064_v61 = vadd.f32 %v9312_v17, %v6892_v34 }
 0xa62   : > { %v9376_v32 = vpop.f32.mrb[100].mxu0  ;;  %v7236_v48 = vadd.f32 %v9334_v51, %v7064_v61 }
 0xa63   : > { %v9377_v39 = vpop.f32.mrb[101].mxu0 }
 0xa64   : > { %v9378_v26 = vadd.f32 %v9377_v39, %v9376_v32  ;;  %v9379_v2 = vpop.f32.mrb[102].mxu0 }
 0xa65   : > { %v9380_v57 = vpop.f32.mrb[103].mxu0 }
 0xa7c   : > { %v9354_v53 = vpop.f32.mrb[236].mxu1 }
 0xa7d   : > { %v9355_v19 = vpop.f32.mrb[237].mxu1 }
 0xa7e   : > { %v9356_v47 = vadd.f32 %v9355_v19, %v9354_v53  ;;  %v9357_v60 = vpop.f32.mrb[238].mxu1 }
 0xa7f   : > { %v9358_v25 = vpop.f32.mrb[239].mxu1 }
 0xa80   : > { %v7408_v55 = vadd.f32 %v9356_v47, %v7236_v48 }
 0xa82   : > { %v9420_v54 = vpop.f32.mrb[104].mxu0  ;;  %v7580_v4 = vadd.f32 %v9378_v26, %v7408_v55 }
 0xa83   : > { %v9421_v42 = vpop.f32.mrb[105].mxu0 }
 0xa84   : > { %v9422_v8 = vadd.f32 %v9421_v42, %v9420_v54  ;;  %v9423_v6 = vpop.f32.mrb[106].mxu0 }
 0xa85   : > { %v9424_v30 = vpop.f32.mrb[107].mxu0 }
 0xa9c   : > { %v9398_v15 = vpop.f32.mrb[240].mxu1 }
 0xa9d   : > { %v9399_v33 = vpop.f32.mrb[241].mxu1 }
 0xa9e   : > { %v9400_v43 = vadd.f32 %v9399_v33, %v9398_v15  ;;  %v9401_v21 = vpop.f32.mrb[242].mxu1 }
 0xa9f   : > { %v9402_v5 = vpop.f32.mrb[243].mxu1 }
 0xaa0   : > { %v7752_v28 = vadd.f32 %v9400_v43, %v7580_v4 }
 0xaa2   : > { %v7924_v56 = vadd.f32 %v9422_v8, %v7752_v28 }
 0xaa4   : > { %v7931_v40 = vadd.f32 %v7929_v10, %v7924_v56 }
 0xaa6   : > { %7932 = vst.msk [vmem:[%s757_s1] sm:$0xff] %vm1197_vm1, %v7931_v40 }
 0xaa7 PF: > { %s33_s4 = sadd.s32 1, %s10538_s4  }
 0xaa8   : > { %p30_p7 = scmp.ge.s32.totalorder %s33_s4, 4  }
 0xaaa   :  { %32 = sbr.rel (!%p30_p7) target bundleno = 9 (0x9), region = 196 }

</bundles_post_ra>
